<compile_context>
chip_gen: v7x
topology: tpu7x:2x2x1
jax: 0.10.0
libtpu: 0.0.40
codegen_flags: <defaults>
</compile_context>

<pallas_src>
import functools

import jax
import jax.numpy as jnp
from jax.experimental import pallas as pl
from jax.experimental.pallas import tpu as pltpu


LANES = 128
BLOCK_CFGS = [  # (context_size, dilation) for tdnn1..tdnn8
    (5, 1), (5, 2), (5, 4), (5, 8),
    (3, 1), (3, 2), (3, 4), (3, 8),
]


# ----------------------------------------------------------------------------
# Fused kernel: 8x (unfold -> Linear -> ReLU -> BN(eval)) -> attention ->
# softmax over classes.  One grid step == one batch row.
# ----------------------------------------------------------------------------
def _fused_tdnn_kernel(x_ref, w_ref, aux_ref, w1_ref, attaux_ref, w2_ref, o_ref,
                       *, t_in, out_valid):
    h = x_ref[0]                                   # (T, 128) f32, padded cols = 0
    t = t_in
    off = 0
    for i, (cs, dil) in enumerate(BLOCK_CFGS):
        t_out = t - dil * (cs - 1)
        hb = h.astype(jnp.bfloat16)
        # Deep-K unfold: concat the dilated temporal context along lanes
        # (context-major, matching F.unfold flattening) -> one MXU matmul.
        xu = jnp.concatenate(
            [hb[k * dil: k * dil + t_out, :] for k in range(cs)], axis=1)
        wk = w_ref[off: off + cs * LANES, :]       # (cs*128, 128) bf16
        y = jnp.dot(xu, wk, preferred_element_type=jnp.float32)
        bias = aux_ref[3 * i + 0: 3 * i + 1, :]    # (1, 128) f32
        scale = aux_ref[3 * i + 1: 3 * i + 2, :]
        shift = aux_ref[3 * i + 2: 3 * i + 3, :]
        y = jnp.maximum(y + bias, 0.0)             # Linear bias + ReLU
        # Eval-mode BatchNorm folded into (scale, shift) in the wrapper.
        # TODO(synk): training-mode batch statistics are not implemented.
        h = y * scale + shift
        t = t_out
        off += cs * LANES

    # ---- attention head (dropout is identity in eval mode) ----
    hb = h.astype(jnp.bfloat16)
    a = jnp.tanh(jnp.dot(hb, w1_ref[...], preferred_element_type=jnp.float32)
                 + attaux_ref[0:1, :])             # (t, 128)
    v = attaux_ref[1:2, :]                         # (1, 128)
    e = jnp.sum(a * v, axis=-1, keepdims=True)     # (t, 1)  lane reduce, no MXU
    e = e - jnp.max(e, axis=0, keepdims=True)
    p = jnp.exp(e)
    alpha = p * pl.reciprocal(jnp.sum(p, axis=0, keepdims=True), approx=True)
    ctx = jnp.sum(h * alpha, axis=0, keepdims=True)        # (1, 128) f32
    logits = jnp.dot(ctx.astype(jnp.bfloat16), w2_ref[...],
                     preferred_element_type=jnp.float32)   # (1, 128)
    # Final class softmax (exact divide so rows sum to 1 within f32 rounding);
    # padded class columns are masked out.
    col = jax.lax.broadcasted_iota(jnp.int32, (1, LANES), 1)
    logits = jnp.where(col < out_valid, logits, -1e30)
    logits = logits - jnp.max(logits, axis=-1, keepdims=True)
    pe = jnp.exp(logits)
    o_ref[0] = (pe / jnp.sum(pe, axis=-1, keepdims=True)).astype(o_ref.dtype)


def tdnn_forward(x, packed, *, out_size):
    """x: (N, C, T, F) -> (N, out_size), rows sum to 1."""
    w_packed, aux_packed, w1p, att_aux, w2p = packed
    N, _, T, Fdim = x.shape
    h = x[:, 0, :, :]
    h = jnp.pad(h, ((0, 0), (0, 0), (0, LANES - Fdim)))    # lane-dense (N, T, 128)

    kern = functools.partial(_fused_tdnn_kernel, t_in=T, out_valid=out_size)
    res = pl.pallas_call(
        kern,
        out_shape=jax.ShapeDtypeStruct((N, 1, LANES), jnp.float32),
        grid=(N,),
        in_specs=[
            pl.BlockSpec((1, T, LANES), lambda b: (b, 0, 0)),
            pl.BlockSpec(w_packed.shape, lambda b: (0, 0)),
            pl.BlockSpec(aux_packed.shape, lambda b: (0, 0)),
            pl.BlockSpec(w1p.shape, lambda b: (0, 0)),
            pl.BlockSpec(att_aux.shape, lambda b: (0, 0)),
            pl.BlockSpec(w2p.shape, lambda b: (0, 0)),
        ],
        out_specs=pl.BlockSpec((1, 1, LANES), lambda b: (b, 0, 0)),
        compiler_params=pltpu.CompilerParams(dimension_semantics=("parallel",)),
    )(h, w_packed, aux_packed, w1p, att_aux, w2p)
    return res[:, 0, :out_size]


# ----------------------------------------------------------------------------
# Parameter construction (deterministic, synthetic) and packing
# ----------------------------------------------------------------------------
def init_params(key, input_dim=23, tdnn_dim=64, att_feat=128, output_size=4):
    params = {"blocks": [], "att": None}
    d_in = input_dim
    for (cs, _dil) in BLOCK_CFGS:
        key, k_w, k_b, k_g, k_be, k_mu, k_var = jax.random.split(key, 7)
        fan_in = cs * d_in
        w = jax.random.normal(k_w, (fan_in, tdnn_dim), jnp.float32) / jnp.sqrt(fan_in)
        b = 0.01 * jax.random.normal(k_b, (1, tdnn_dim), jnp.float32)
        gamma = 1.0 + 0.1 * jax.random.normal(k_g, (1, tdnn_dim), jnp.float32)
        beta = 0.05 * jax.random.normal(k_be, (1, tdnn_dim), jnp.float32)
        mu = 0.1 * jax.random.normal(k_mu, (1, tdnn_dim), jnp.float32)
        var = 1.0 + 0.1 * jax.random.uniform(k_var, (1, tdnn_dim), jnp.float32)
        params["blocks"].append((w, b, gamma, beta, mu, var))
        d_in = tdnn_dim
    key, k1, kb1, kv, k2 = jax.random.split(key, 5)
    w1 = jax.random.normal(k1, (tdnn_dim, att_feat), jnp.float32) / jnp.sqrt(tdnn_dim)
    b1 = 0.01 * jax.random.normal(kb1, (1, att_feat), jnp.float32)
    v = jax.random.normal(kv, (att_feat, 1), jnp.float32) / jnp.sqrt(att_feat)
    w2 = jax.random.normal(k2, (tdnn_dim, output_size), jnp.float32) / jnp.sqrt(tdnn_dim)
    params["att"] = (w1, b1, v, w2)
    return params


def pack_params(params, input_dim=23, tdnn_dim=64):
    """Zero-pad all feature dims to 128 lanes, fold eval-BN into (scale, shift),
    pack per-block vectors into one array, cast MXU weights to bf16."""
    def pad_vec(vec):
        return jnp.pad(vec, (0, LANES - vec.shape[0]))

    w_rows, aux_rows = [], []
    d_in = input_dim
    for (cs, _dil), (w, b, gamma, beta, mu, var) in zip(BLOCK_CFGS, params["blocks"]):
        d_out = w.shape[1]
        # context-major (cs, d_in, d_out) -> pad features/outputs to 128 lanes.
        w3 = w.reshape(cs, d_in, d_out)
        w3 = jnp.pad(w3, ((0, 0), (0, LANES - d_in), (0, LANES - d_out)))
        w_rows.append(w3.reshape(cs * LANES, LANES))
        scale = gamma[0] * jax.lax.rsqrt(var[0] + 1e-5)
        shift = beta[0] - mu[0] * scale
        aux_rows += [pad_vec(b[0]), pad_vec(scale), pad_vec(shift)]
        d_in = d_out
    w_packed = jnp.concatenate(w_rows, axis=0).astype(jnp.bfloat16)   # (4096, 128)
    aux_packed = jnp.stack(aux_rows, axis=0).astype(jnp.float32)      # (24, 128)

    w1, b1, v, w2 = params["att"]
    att_feat = w1.shape[1]
    out_size = w2.shape[1]
    w1p = jnp.pad(w1, ((0, LANES - tdnn_dim), (0, LANES - att_feat))).astype(jnp.bfloat16)
    att_aux = jnp.stack([pad_vec(b1[0]), pad_vec(v[:, 0])], axis=0).astype(jnp.float32)
    w2p = jnp.pad(w2, ((0, LANES - tdnn_dim), (0, LANES - out_size))).astype(jnp.bfloat16)
    return w_packed, aux_packed, w1p, att_aux, w2p


# ----------------------------------------------------------------------------
# Pure-JAX f32 reference (same unfold ordering) for a correctness sanity check
# ----------------------------------------------------------------------------
def tdnn_forward_ref(x, params):
    h = x[:, 0, :, :]
    for (cs, dil), (w, b, gamma, beta, mu, var) in zip(BLOCK_CFGS, params["blocks"]):
        T = h.shape[1]
        t_out = T - dil * (cs - 1)
        xu = jnp.concatenate([h[:, k * dil: k * dil + t_out, :] for k in range(cs)],
                             axis=-1)
        y = jnp.maximum(jnp.einsum("btk,kd->btd", xu, w) + b[0], 0.0)
        inv = gamma[0] * jax.lax.rsqrt(var[0] + 1e-5)
        h = (y - mu[0]) * inv + beta[0]
    w1, b1, v, w2 = params["att"]
    a = jnp.tanh(jnp.einsum("btd,da->bta", h, w1) + b1[0])
    e = jnp.einsum("bta,ao->bto", a, v)
    alpha = jax.nn.softmax(e, axis=1)
    ctx = jnp.sum(h * alpha, axis=1)
    return jax.nn.softmax(ctx @ w2, axis=-1)


if __name__ == "__main__":
    key = jax.random.PRNGKey(0)
    key, k_x, k_p = jax.random.split(key, 3)

    N, C, T, F = 2, 2, 100, 23   # T must exceed the total context shrink of 90 frames
    x = jax.random.normal(k_x, (N, C, T, F), jnp.float32)
    params = init_params(k_p, input_dim=F, tdnn_dim=64, att_feat=128, output_size=4)
    packed = pack_params(params, input_dim=F, tdnn_dim=64)

    fwd = jax.jit(functools.partial(tdnn_forward, out_size=4))
    out = jax.block_until_ready(fwd(x, packed))

    assert out.shape == (N, 4), out.shape
    assert bool(jnp.all(jnp.isfinite(out)))
    assert bool(jnp.allclose(jnp.sum(out, axis=-1), 1.0, atol=1e-4))
    ref = tdnn_forward_ref(x, params)
    assert bool(jnp.allclose(out, ref, atol=0.1)), (out, ref)
    print("KERNEL_OK")
</pallas_src>

<mosaic_0001>
module attributes {stable_mosaic.version = 11 : i64} {
  func.func @_fused_tdnn_kernel(%arg0: i32, %arg1: memref<1x100x128xf32, #tpu.memory_space<vmem>>, %arg2: memref<4096x128xbf16, #tpu.memory_space<vmem>>, %arg3: memref<24x128xf32, #tpu.memory_space<vmem>>, %arg4: memref<128x128xbf16, #tpu.memory_space<vmem>>, %arg5: memref<2x128xf32, #tpu.memory_space<vmem>>, %arg6: memref<128x128xbf16, #tpu.memory_space<vmem>>, %arg7: memref<1x1x128xf32, #tpu.memory_space<vmem>>) attributes {dimension_semantics = [#tpu.dimension_semantics<parallel>], iteration_bounds = array<i64: 2>, scalar_prefetch = 0 : i64, scratch_operands = 0 : i64, tpu.core_type = #tpu.core_type<tc>, window_params = [{transform_indices = @transform_0, window_bounds = array<i64: 1, 100, 128>}, {pipeline_mode = #tpu.pipeline_mode<synchronous>, transform_indices = @transform_1, window_bounds = array<i64: 4096, 128>}, {pipeline_mode = #tpu.pipeline_mode<synchronous>, transform_indices = @transform_2, window_bounds = array<i64: 24, 128>}, {pipeline_mode = #tpu.pipeline_mode<synchronous>, transform_indices = @transform_3, window_bounds = array<i64: 128, 128>}, {pipeline_mode = #tpu.pipeline_mode<synchronous>, transform_indices = @transform_4, window_bounds = array<i64: 2, 128>}, {pipeline_mode = #tpu.pipeline_mode<synchronous>, transform_indices = @transform_5, window_bounds = array<i64: 128, 128>}, {transform_indices = @transform_6, window_bounds = array<i64: 1, 1, 128>}]} {
    %c0 = arith.constant 0 : index
    %c0_0 = arith.constant 0 : index
    %c0_1 = arith.constant 0 : index
    %0 = vector.load %arg1[%c0, %c0_0, %c0_1] : memref<1x100x128xf32, #tpu.memory_space<vmem>>, vector<1x100x128xf32>
    %1 = vector.shape_cast %0 : vector<1x100x128xf32> to vector<100x128xf32>
    %2 = arith.truncf %1 : vector<100x128xf32> to vector<100x128xbf16>
    %3 = vector.extract_strided_slice %2 {offsets = [0, 0], sizes = [96, 128], strides = [1, 1]} : vector<100x128xbf16> to vector<96x128xbf16>
    %4 = vector.extract_strided_slice %2 {offsets = [1, 0], sizes = [96, 128], strides = [1, 1]} : vector<100x128xbf16> to vector<96x128xbf16>
    %5 = vector.extract_strided_slice %2 {offsets = [2, 0], sizes = [96, 128], strides = [1, 1]} : vector<100x128xbf16> to vector<96x128xbf16>
    %6 = vector.extract_strided_slice %2 {offsets = [3, 0], sizes = [96, 128], strides = [1, 1]} : vector<100x128xbf16> to vector<96x128xbf16>
    %7 = vector.extract_strided_slice %2 {offsets = [4, 0], sizes = [96, 128], strides = [1, 1]} : vector<100x128xbf16> to vector<96x128xbf16>
    %8 = tpu.concatenate %3, %4, %5, %6, %7 in 1 : vector<96x128xbf16>, vector<96x128xbf16>, vector<96x128xbf16>, vector<96x128xbf16>, vector<96x128xbf16> -> vector<96x640xbf16>
    %c0_2 = arith.constant 0 : index
    %c0_3 = arith.constant 0 : index
    %9 = vector.load %arg2[%c0_2, %c0_3] : memref<4096x128xbf16, #tpu.memory_space<vmem>>, vector<640x128xbf16>
    %cst = arith.constant dense<0.000000e+00> : vector<96x128xf32>
    %10 = tpu.matmul %8, %9, %cst {dimension_numbers = #tpu.dot_dimension_numbers<[1], [0], [0], [1], [0, 0, 1, 1], [], []>} : vector<96x640xbf16>, vector<640x128xbf16>, vector<96x128xf32> -> vector<96x128xf32>
    %c0_4 = arith.constant 0 : index
    %c0_5 = arith.constant 0 : index
    %11 = vector.load %arg3[%c0_4, %c0_5] : memref<24x128xf32, #tpu.memory_space<vmem>>, vector<1x128xf32>
    %c1 = arith.constant 1 : index
    %c0_6 = arith.constant 0 : index
    %12 = vector.load %arg3[%c1, %c0_6] : memref<24x128xf32, #tpu.memory_space<vmem>>, vector<1x128xf32>
    %c2 = arith.constant 2 : index
    %c0_7 = arith.constant 0 : index
    %13 = vector.load %arg3[%c2, %c0_7] : memref<24x128xf32, #tpu.memory_space<vmem>>, vector<1x128xf32>
    %14 = vector.broadcast %11 : vector<1x128xf32> to vector<96x128xf32>
    %15 = arith.addf %10, %14 : vector<96x128xf32>
    %cst_8 = arith.constant 0.000000e+00 : f32
    %16 = vector.broadcast %cst_8 : f32 to vector<96x128xf32>
    %17 = arith.maximumf %15, %16 : vector<96x128xf32>
    %18 = vector.broadcast %12 : vector<1x128xf32> to vector<96x128xf32>
    %19 = arith.mulf %17, %18 : vector<96x128xf32>
    %20 = vector.broadcast %13 : vector<1x128xf32> to vector<96x128xf32>
    %21 = arith.addf %19, %20 : vector<96x128xf32>
    %22 = arith.truncf %21 : vector<96x128xf32> to vector<96x128xbf16>
    %23 = vector.extract_strided_slice %22 {offsets = [0, 0], sizes = [88, 128], strides = [1, 1]} : vector<96x128xbf16> to vector<88x128xbf16>
    %24 = vector.extract_strided_slice %22 {offsets = [2, 0], sizes = [88, 128], strides = [1, 1]} : vector<96x128xbf16> to vector<88x128xbf16>
    %25 = vector.extract_strided_slice %22 {offsets = [4, 0], sizes = [88, 128], strides = [1, 1]} : vector<96x128xbf16> to vector<88x128xbf16>
    %26 = vector.extract_strided_slice %22 {offsets = [6, 0], sizes = [88, 128], strides = [1, 1]} : vector<96x128xbf16> to vector<88x128xbf16>
    %27 = vector.extract_strided_slice %22 {offsets = [8, 0], sizes = [88, 128], strides = [1, 1]} : vector<96x128xbf16> to vector<88x128xbf16>
    %28 = tpu.concatenate %23, %24, %25, %26, %27 in 1 : vector<88x128xbf16>, vector<88x128xbf16>, vector<88x128xbf16>, vector<88x128xbf16>, vector<88x128xbf16> -> vector<88x640xbf16>
    %c640 = arith.constant 640 : index
    %c0_9 = arith.constant 0 : index
    %29 = vector.load %arg2[%c640, %c0_9] : memref<4096x128xbf16, #tpu.memory_space<vmem>>, vector<640x128xbf16>
    %cst_10 = arith.constant dense<0.000000e+00> : vector<88x128xf32>
    %30 = tpu.matmul %28, %29, %cst_10 {dimension_numbers = #tpu.dot_dimension_numbers<[1], [0], [0], [1], [0, 0, 1, 1], [], []>} : vector<88x640xbf16>, vector<640x128xbf16>, vector<88x128xf32> -> vector<88x128xf32>
    %c3 = arith.constant 3 : index
    %c0_11 = arith.constant 0 : index
    %31 = vector.load %arg3[%c3, %c0_11] : memref<24x128xf32, #tpu.memory_space<vmem>>, vector<1x128xf32>
    %c4 = arith.constant 4 : index
    %c0_12 = arith.constant 0 : index
    %32 = vector.load %arg3[%c4, %c0_12] : memref<24x128xf32, #tpu.memory_space<vmem>>, vector<1x128xf32>
    %c5 = arith.constant 5 : index
    %c0_13 = arith.constant 0 : index
    %33 = vector.load %arg3[%c5, %c0_13] : memref<24x128xf32, #tpu.memory_space<vmem>>, vector<1x128xf32>
    %34 = vector.broadcast %31 : vector<1x128xf32> to vector<88x128xf32>
    %35 = arith.addf %30, %34 : vector<88x128xf32>
    %cst_14 = arith.constant 0.000000e+00 : f32
    %36 = vector.broadcast %cst_14 : f32 to vector<88x128xf32>
    %37 = arith.maximumf %35, %36 : vector<88x128xf32>
    %38 = vector.broadcast %32 : vector<1x128xf32> to vector<88x128xf32>
    %39 = arith.mulf %37, %38 : vector<88x128xf32>
    %40 = vector.broadcast %33 : vector<1x128xf32> to vector<88x128xf32>
    %41 = arith.addf %39, %40 : vector<88x128xf32>
    %42 = arith.truncf %41 : vector<88x128xf32> to vector<88x128xbf16>
    %43 = vector.extract_strided_slice %42 {offsets = [0, 0], sizes = [72, 128], strides = [1, 1]} : vector<88x128xbf16> to vector<72x128xbf16>
    %44 = vector.extract_strided_slice %42 {offsets = [4, 0], sizes = [72, 128], strides = [1, 1]} : vector<88x128xbf16> to vector<72x128xbf16>
    %45 = vector.extract_strided_slice %42 {offsets = [8, 0], sizes = [72, 128], strides = [1, 1]} : vector<88x128xbf16> to vector<72x128xbf16>
    %46 = vector.extract_strided_slice %42 {offsets = [12, 0], sizes = [72, 128], strides = [1, 1]} : vector<88x128xbf16> to vector<72x128xbf16>
    %47 = vector.extract_strided_slice %42 {offsets = [16, 0], sizes = [72, 128], strides = [1, 1]} : vector<88x128xbf16> to vector<72x128xbf16>
    %48 = tpu.concatenate %43, %44, %45, %46, %47 in 1 : vector<72x128xbf16>, vector<72x128xbf16>, vector<72x128xbf16>, vector<72x128xbf16>, vector<72x128xbf16> -> vector<72x640xbf16>
    %c1280 = arith.constant 1280 : index
    %c0_15 = arith.constant 0 : index
    %49 = vector.load %arg2[%c1280, %c0_15] : memref<4096x128xbf16, #tpu.memory_space<vmem>>, vector<640x128xbf16>
    %cst_16 = arith.constant dense<0.000000e+00> : vector<72x128xf32>
    %50 = tpu.matmul %48, %49, %cst_16 {dimension_numbers = #tpu.dot_dimension_numbers<[1], [0], [0], [1], [0, 0, 1, 1], [], []>} : vector<72x640xbf16>, vector<640x128xbf16>, vector<72x128xf32> -> vector<72x128xf32>
    %c6 = arith.constant 6 : index
    %c0_17 = arith.constant 0 : index
    %51 = vector.load %arg3[%c6, %c0_17] : memref<24x128xf32, #tpu.memory_space<vmem>>, vector<1x128xf32>
    %c7 = arith.constant 7 : index
    %c0_18 = arith.constant 0 : index
    %52 = vector.load %arg3[%c7, %c0_18] : memref<24x128xf32, #tpu.memory_space<vmem>>, vector<1x128xf32>
    %c8 = arith.constant 8 : index
    %c0_19 = arith.constant 0 : index
    %53 = vector.load %arg3[%c8, %c0_19] : memref<24x128xf32, #tpu.memory_space<vmem>>, vector<1x128xf32>
    %54 = vector.broadcast %51 : vector<1x128xf32> to vector<72x128xf32>
    %55 = arith.addf %50, %54 : vector<72x128xf32>
    %cst_20 = arith.constant 0.000000e+00 : f32
    %56 = vector.broadcast %cst_20 : f32 to vector<72x128xf32>
    %57 = arith.maximumf %55, %56 : vector<72x128xf32>
    %58 = vector.broadcast %52 : vector<1x128xf32> to vector<72x128xf32>
    %59 = arith.mulf %57, %58 : vector<72x128xf32>
    %60 = vector.broadcast %53 : vector<1x128xf32> to vector<72x128xf32>
    %61 = arith.addf %59, %60 : vector<72x128xf32>
    %62 = arith.truncf %61 : vector<72x128xf32> to vector<72x128xbf16>
    %63 = vector.extract_strided_slice %62 {offsets = [0, 0], sizes = [40, 128], strides = [1, 1]} : vector<72x128xbf16> to vector<40x128xbf16>
    %64 = vector.extract_strided_slice %62 {offsets = [8, 0], sizes = [40, 128], strides = [1, 1]} : vector<72x128xbf16> to vector<40x128xbf16>
    %65 = vector.extract_strided_slice %62 {offsets = [16, 0], sizes = [40, 128], strides = [1, 1]} : vector<72x128xbf16> to vector<40x128xbf16>
    %66 = vector.extract_strided_slice %62 {offsets = [24, 0], sizes = [40, 128], strides = [1, 1]} : vector<72x128xbf16> to vector<40x128xbf16>
    %67 = vector.extract_strided_slice %62 {offsets = [32, 0], sizes = [40, 128], strides = [1, 1]} : vector<72x128xbf16> to vector<40x128xbf16>
    %68 = tpu.concatenate %63, %64, %65, %66, %67 in 1 : vector<40x128xbf16>, vector<40x128xbf16>, vector<40x128xbf16>, vector<40x128xbf16>, vector<40x128xbf16> -> vector<40x640xbf16>
    %c1920 = arith.constant 1920 : index
    %c0_21 = arith.constant 0 : index
    %69 = vector.load %arg2[%c1920, %c0_21] : memref<4096x128xbf16, #tpu.memory_space<vmem>>, vector<640x128xbf16>
    %cst_22 = arith.constant dense<0.000000e+00> : vector<40x128xf32>
    %70 = tpu.matmul %68, %69, %cst_22 {dimension_numbers = #tpu.dot_dimension_numbers<[1], [0], [0], [1], [0, 0, 1, 1], [], []>} : vector<40x640xbf16>, vector<640x128xbf16>, vector<40x128xf32> -> vector<40x128xf32>
    %c9 = arith.constant 9 : index
    %c0_23 = arith.constant 0 : index
    %71 = vector.load %arg3[%c9, %c0_23] : memref<24x128xf32, #tpu.memory_space<vmem>>, vector<1x128xf32>
    %c10 = arith.constant 10 : index
    %c0_24 = arith.constant 0 : index
    %72 = vector.load %arg3[%c10, %c0_24] : memref<24x128xf32, #tpu.memory_space<vmem>>, vector<1x128xf32>
    %c11 = arith.constant 11 : index
    %c0_25 = arith.constant 0 : index
    %73 = vector.load %arg3[%c11, %c0_25] : memref<24x128xf32, #tpu.memory_space<vmem>>, vector<1x128xf32>
    %74 = vector.broadcast %71 : vector<1x128xf32> to vector<40x128xf32>
    %75 = arith.addf %70, %74 : vector<40x128xf32>
    %cst_26 = arith.constant 0.000000e+00 : f32
    %76 = vector.broadcast %cst_26 : f32 to vector<40x128xf32>
    %77 = arith.maximumf %75, %76 : vector<40x128xf32>
    %78 = vector.broadcast %72 : vector<1x128xf32> to vector<40x128xf32>
    %79 = arith.mulf %77, %78 : vector<40x128xf32>
    %80 = vector.broadcast %73 : vector<1x128xf32> to vector<40x128xf32>
    %81 = arith.addf %79, %80 : vector<40x128xf32>
    %82 = arith.truncf %81 : vector<40x128xf32> to vector<40x128xbf16>
    %83 = vector.extract_strided_slice %82 {offsets = [0, 0], sizes = [38, 128], strides = [1, 1]} : vector<40x128xbf16> to vector<38x128xbf16>
    %84 = vector.extract_strided_slice %82 {offsets = [1, 0], sizes = [38, 128], strides = [1, 1]} : vector<40x128xbf16> to vector<38x128xbf16>
    %85 = vector.extract_strided_slice %82 {offsets = [2, 0], sizes = [38, 128], strides = [1, 1]} : vector<40x128xbf16> to vector<38x128xbf16>
    %86 = tpu.concatenate %83, %84, %85 in 1 : vector<38x128xbf16>, vector<38x128xbf16>, vector<38x128xbf16> -> vector<38x384xbf16>
    %c2560 = arith.constant 2560 : index
    %c0_27 = arith.constant 0 : index
    %87 = vector.load %arg2[%c2560, %c0_27] : memref<4096x128xbf16, #tpu.memory_space<vmem>>, vector<384x128xbf16>
    %cst_28 = arith.constant dense<0.000000e+00> : vector<38x128xf32>
    %88 = tpu.matmul %86, %87, %cst_28 {dimension_numbers = #tpu.dot_dimension_numbers<[1], [0], [0], [1], [0, 0, 1, 1], [], []>} : vector<38x384xbf16>, vector<384x128xbf16>, vector<38x128xf32> -> vector<38x128xf32>
    %c12 = arith.constant 12 : index
    %c0_29 = arith.constant 0 : index
    %89 = vector.load %arg3[%c12, %c0_29] : memref<24x128xf32, #tpu.memory_space<vmem>>, vector<1x128xf32>
    %c13 = arith.constant 13 : index
    %c0_30 = arith.constant 0 : index
    %90 = vector.load %arg3[%c13, %c0_30] : memref<24x128xf32, #tpu.memory_space<vmem>>, vector<1x128xf32>
    %c14 = arith.constant 14 : index
    %c0_31 = arith.constant 0 : index
    %91 = vector.load %arg3[%c14, %c0_31] : memref<24x128xf32, #tpu.memory_space<vmem>>, vector<1x128xf32>
    %92 = vector.broadcast %89 : vector<1x128xf32> to vector<38x128xf32>
    %93 = arith.addf %88, %92 : vector<38x128xf32>
    %cst_32 = arith.constant 0.000000e+00 : f32
    %94 = vector.broadcast %cst_32 : f32 to vector<38x128xf32>
    %95 = arith.maximumf %93, %94 : vector<38x128xf32>
    %96 = vector.broadcast %90 : vector<1x128xf32> to vector<38x128xf32>
    %97 = arith.mulf %95, %96 : vector<38x128xf32>
    %98 = vector.broadcast %91 : vector<1x128xf32> to vector<38x128xf32>
    %99 = arith.addf %97, %98 : vector<38x128xf32>
    %100 = arith.truncf %99 : vector<38x128xf32> to vector<38x128xbf16>
    %101 = vector.extract_strided_slice %100 {offsets = [0, 0], sizes = [34, 128], strides = [1, 1]} : vector<38x128xbf16> to vector<34x128xbf16>
    %102 = vector.extract_strided_slice %100 {offsets = [2, 0], sizes = [34, 128], strides = [1, 1]} : vector<38x128xbf16> to vector<34x128xbf16>
    %103 = vector.extract_strided_slice %100 {offsets = [4, 0], sizes = [34, 128], strides = [1, 1]} : vector<38x128xbf16> to vector<34x128xbf16>
    %104 = tpu.concatenate %101, %102, %103 in 1 : vector<34x128xbf16>, vector<34x128xbf16>, vector<34x128xbf16> -> vector<34x384xbf16>
    %c2944 = arith.constant 2944 : index
    %c0_33 = arith.constant 0 : index
    %105 = vector.load %arg2[%c2944, %c0_33] : memref<4096x128xbf16, #tpu.memory_space<vmem>>, vector<384x128xbf16>
    %cst_34 = arith.constant dense<0.000000e+00> : vector<34x128xf32>
    %106 = tpu.matmul %104, %105, %cst_34 {dimension_numbers = #tpu.dot_dimension_numbers<[1], [0], [0], [1], [0, 0, 1, 1], [], []>} : vector<34x384xbf16>, vector<384x128xbf16>, vector<34x128xf32> -> vector<34x128xf32>
    %c15 = arith.constant 15 : index
    %c0_35 = arith.constant 0 : index
    %107 = vector.load %arg3[%c15, %c0_35] : memref<24x128xf32, #tpu.memory_space<vmem>>, vector<1x128xf32>
    %c16 = arith.constant 16 : index
    %c0_36 = arith.constant 0 : index
    %108 = vector.load %arg3[%c16, %c0_36] : memref<24x128xf32, #tpu.memory_space<vmem>>, vector<1x128xf32>
    %c17 = arith.constant 17 : index
    %c0_37 = arith.constant 0 : index
    %109 = vector.load %arg3[%c17, %c0_37] : memref<24x128xf32, #tpu.memory_space<vmem>>, vector<1x128xf32>
    %110 = vector.broadcast %107 : vector<1x128xf32> to vector<34x128xf32>
    %111 = arith.addf %106, %110 : vector<34x128xf32>
    %cst_38 = arith.constant 0.000000e+00 : f32
    %112 = vector.broadcast %cst_38 : f32 to vector<34x128xf32>
    %113 = arith.maximumf %111, %112 : vector<34x128xf32>
    %114 = vector.broadcast %108 : vector<1x128xf32> to vector<34x128xf32>
    %115 = arith.mulf %113, %114 : vector<34x128xf32>
    %116 = vector.broadcast %109 : vector<1x128xf32> to vector<34x128xf32>
    %117 = arith.addf %115, %116 : vector<34x128xf32>
    %118 = arith.truncf %117 : vector<34x128xf32> to vector<34x128xbf16>
    %119 = vector.extract_strided_slice %118 {offsets = [0, 0], sizes = [26, 128], strides = [1, 1]} : vector<34x128xbf16> to vector<26x128xbf16>
    %120 = vector.extract_strided_slice %118 {offsets = [4, 0], sizes = [26, 128], strides = [1, 1]} : vector<34x128xbf16> to vector<26x128xbf16>
    %121 = vector.extract_strided_slice %118 {offsets = [8, 0], sizes = [26, 128], strides = [1, 1]} : vector<34x128xbf16> to vector<26x128xbf16>
    %122 = tpu.concatenate %119, %120, %121 in 1 : vector<26x128xbf16>, vector<26x128xbf16>, vector<26x128xbf16> -> vector<26x384xbf16>
    %c3328 = arith.constant 3328 : index
    %c0_39 = arith.constant 0 : index
    %123 = vector.load %arg2[%c3328, %c0_39] : memref<4096x128xbf16, #tpu.memory_space<vmem>>, vector<384x128xbf16>
    %cst_40 = arith.constant dense<0.000000e+00> : vector<26x128xf32>
    %124 = tpu.matmul %122, %123, %cst_40 {dimension_numbers = #tpu.dot_dimension_numbers<[1], [0], [0], [1], [0, 0, 1, 1], [], []>} : vector<26x384xbf16>, vector<384x128xbf16>, vector<26x128xf32> -> vector<26x128xf32>
    %c18 = arith.constant 18 : index
    %c0_41 = arith.constant 0 : index
    %125 = vector.load %arg3[%c18, %c0_41] : memref<24x128xf32, #tpu.memory_space<vmem>>, vector<1x128xf32>
    %c19 = arith.constant 19 : index
    %c0_42 = arith.constant 0 : index
    %126 = vector.load %arg3[%c19, %c0_42] : memref<24x128xf32, #tpu.memory_space<vmem>>, vector<1x128xf32>
    %c20 = arith.constant 20 : index
    %c0_43 = arith.constant 0 : index
    %127 = vector.load %arg3[%c20, %c0_43] : memref<24x128xf32, #tpu.memory_space<vmem>>, vector<1x128xf32>
    %128 = vector.broadcast %125 : vector<1x128xf32> to vector<26x128xf32>
    %129 = arith.addf %124, %128 : vector<26x128xf32>
    %cst_44 = arith.constant 0.000000e+00 : f32
    %130 = vector.broadcast %cst_44 : f32 to vector<26x128xf32>
    %131 = arith.maximumf %129, %130 : vector<26x128xf32>
    %132 = vector.broadcast %126 : vector<1x128xf32> to vector<26x128xf32>
    %133 = arith.mulf %131, %132 : vector<26x128xf32>
    %134 = vector.broadcast %127 : vector<1x128xf32> to vector<26x128xf32>
    %135 = arith.addf %133, %134 : vector<26x128xf32>
    %136 = arith.truncf %135 : vector<26x128xf32> to vector<26x128xbf16>
    %137 = vector.extract_strided_slice %136 {offsets = [0, 0], sizes = [10, 128], strides = [1, 1]} : vector<26x128xbf16> to vector<10x128xbf16>
    %138 = vector.extract_strided_slice %136 {offsets = [8, 0], sizes = [10, 128], strides = [1, 1]} : vector<26x128xbf16> to vector<10x128xbf16>
    %139 = vector.extract_strided_slice %136 {offsets = [16, 0], sizes = [10, 128], strides = [1, 1]} : vector<26x128xbf16> to vector<10x128xbf16>
    %140 = tpu.concatenate %137, %138, %139 in 1 : vector<10x128xbf16>, vector<10x128xbf16>, vector<10x128xbf16> -> vector<10x384xbf16>
    %c3712 = arith.constant 3712 : index
    %c0_45 = arith.constant 0 : index
    %141 = vector.load %arg2[%c3712, %c0_45] : memref<4096x128xbf16, #tpu.memory_space<vmem>>, vector<384x128xbf16>
    %cst_46 = arith.constant dense<0.000000e+00> : vector<10x128xf32>
    %142 = tpu.matmul %140, %141, %cst_46 {dimension_numbers = #tpu.dot_dimension_numbers<[1], [0], [0], [1], [0, 0, 1, 1], [], []>} : vector<10x384xbf16>, vector<384x128xbf16>, vector<10x128xf32> -> vector<10x128xf32>
    %c21 = arith.constant 21 : index
    %c0_47 = arith.constant 0 : index
    %143 = vector.load %arg3[%c21, %c0_47] : memref<24x128xf32, #tpu.memory_space<vmem>>, vector<1x128xf32>
    %c22 = arith.constant 22 : index
    %c0_48 = arith.constant 0 : index
    %144 = vector.load %arg3[%c22, %c0_48] : memref<24x128xf32, #tpu.memory_space<vmem>>, vector<1x128xf32>
    %c23 = arith.constant 23 : index
    %c0_49 = arith.constant 0 : index
    %145 = vector.load %arg3[%c23, %c0_49] : memref<24x128xf32, #tpu.memory_space<vmem>>, vector<1x128xf32>
    %146 = vector.broadcast %143 : vector<1x128xf32> to vector<10x128xf32>
    %147 = arith.addf %142, %146 : vector<10x128xf32>
    %cst_50 = arith.constant 0.000000e+00 : f32
    %148 = vector.broadcast %cst_50 : f32 to vector<10x128xf32>
    %149 = arith.maximumf %147, %148 : vector<10x128xf32>
    %150 = vector.broadcast %144 : vector<1x128xf32> to vector<10x128xf32>
    %151 = arith.mulf %149, %150 : vector<10x128xf32>
    %152 = vector.broadcast %145 : vector<1x128xf32> to vector<10x128xf32>
    %153 = arith.addf %151, %152 : vector<10x128xf32>
    %154 = arith.truncf %153 : vector<10x128xf32> to vector<10x128xbf16>
    %c0_51 = arith.constant 0 : index
    %c0_52 = arith.constant 0 : index
    %155 = vector.load %arg4[%c0_51, %c0_52] : memref<128x128xbf16, #tpu.memory_space<vmem>>, vector<128x128xbf16>
    %cst_53 = arith.constant dense<0.000000e+00> : vector<10x128xf32>
    %156 = tpu.matmul %154, %155, %cst_53 {dimension_numbers = #tpu.dot_dimension_numbers<[1], [0], [0], [1], [0, 0, 1, 1], [], []>} : vector<10x128xbf16>, vector<128x128xbf16>, vector<10x128xf32> -> vector<10x128xf32>
    %c0_54 = arith.constant 0 : index
    %c0_55 = arith.constant 0 : index
    %157 = vector.load %arg5[%c0_54, %c0_55] : memref<2x128xf32, #tpu.memory_space<vmem>>, vector<1x128xf32>
    %158 = vector.broadcast %157 : vector<1x128xf32> to vector<10x128xf32>
    %159 = arith.addf %156, %158 : vector<10x128xf32>
    %160 = math.tanh %159 : vector<10x128xf32>
    %c1_56 = arith.constant 1 : index
    %c0_57 = arith.constant 0 : index
    %161 = vector.load %arg5[%c1_56, %c0_57] : memref<2x128xf32, #tpu.memory_space<vmem>>, vector<1x128xf32>
    %162 = vector.broadcast %161 : vector<1x128xf32> to vector<10x128xf32>
    %163 = arith.mulf %160, %162 : vector<10x128xf32>
    %cst_58 = arith.constant dense<0.000000e+00> : vector<10xf32>
    %164 = vector.multi_reduction <add>, %163, %cst_58 [1] : vector<10x128xf32> to vector<10xf32>
    %165 = vector.shape_cast %164 : vector<10xf32> to vector<10x1xf32>
    %cst_59 = arith.constant dense<0xFF800000> : vector<1xf32>
    %166 = vector.multi_reduction <maximumf>, %165, %cst_59 [0] : vector<10x1xf32> to vector<1xf32>
    %167 = vector.shape_cast %166 : vector<1xf32> to vector<1x1xf32>
    %168 = vector.broadcast %167 : vector<1x1xf32> to vector<10x1xf32>
    %169 = arith.subf %165, %168 : vector<10x1xf32>
    %170 = math.exp %169 : vector<10x1xf32>
    %cst_60 = arith.constant dense<0.000000e+00> : vector<1xf32>
    %171 = vector.multi_reduction <add>, %170, %cst_60 [0] : vector<10x1xf32> to vector<1xf32>
    %172 = vector.shape_cast %171 : vector<1xf32> to vector<1x1xf32>
    %173 = tpu.reciprocal %172 {approx = true} : vector<1x1xf32> -> vector<1x1xf32>
    %174 = vector.broadcast %173 : vector<1x1xf32> to vector<10x1xf32>
    %175 = arith.mulf %170, %174 : vector<10x1xf32>
    %176 = vector.broadcast %175 : vector<10x1xf32> to vector<10x128xf32>
    %177 = arith.mulf %153, %176 : vector<10x128xf32>
    %cst_61 = arith.constant dense<0.000000e+00> : vector<128xf32>
    %178 = vector.multi_reduction <add>, %177, %cst_61 [0] : vector<10x128xf32> to vector<128xf32>
    %179 = vector.shape_cast %178 : vector<128xf32> to vector<1x128xf32>
    %180 = arith.truncf %179 : vector<1x128xf32> to vector<1x128xbf16>
    %c0_62 = arith.constant 0 : index
    %c0_63 = arith.constant 0 : index
    %181 = vector.load %arg6[%c0_62, %c0_63] : memref<128x128xbf16, #tpu.memory_space<vmem>>, vector<128x128xbf16>
    %cst_64 = arith.constant dense<0.000000e+00> : vector<1x128xf32>
    %182 = tpu.matmul %180, %181, %cst_64 {dimension_numbers = #tpu.dot_dimension_numbers<[1], [0], [0], [1], [0, 0, 1, 1], [], []>} : vector<1x128xbf16>, vector<128x128xbf16>, vector<1x128xf32> -> vector<1x128xf32>
    %183 = tpu.iota {dimensions = array<i32: 1>} : vector<1x128xi32>
    %c4_i32 = arith.constant 4 : i32
    %184 = vector.broadcast %c4_i32 : i32 to vector<1x128xi32>
    %185 = arith.cmpi slt, %183, %184 : vector<1x128xi32>
    %cst_65 = arith.constant -1.000000e+30 : f32
    %186 = vector.broadcast %cst_65 : f32 to vector<1x128xf32>
    %187 = arith.select %185, %182, %186 : vector<1x128xi1>, vector<1x128xf32>
    %cst_66 = arith.constant dense<0xFF800000> : vector<1xf32>
    %188 = vector.multi_reduction <maximumf>, %187, %cst_66 [1] : vector<1x128xf32> to vector<1xf32>
    %189 = vector.shape_cast %188 : vector<1xf32> to vector<1x1xf32>
    %190 = vector.broadcast %189 : vector<1x1xf32> to vector<1x128xf32>
    %191 = arith.subf %187, %190 : vector<1x128xf32>
    %192 = math.exp %191 : vector<1x128xf32>
    %cst_67 = arith.constant dense<0.000000e+00> : vector<1xf32>
    %193 = vector.multi_reduction <add>, %192, %cst_67 [1] : vector<1x128xf32> to vector<1xf32>
    %194 = vector.shape_cast %193 : vector<1xf32> to vector<1x1xf32>
    %195 = vector.broadcast %194 : vector<1x1xf32> to vector<1x128xf32>
    %196 = arith.divf %192, %195 : vector<1x128xf32>
    %c0_68 = arith.constant 0 : index
    %c0_69 = arith.constant 0 : index
    %c0_70 = arith.constant 0 : index
    %197 = vector.load %arg7[%c0_68, %c0_69, %c0_70] : memref<1x1x128xf32, #tpu.memory_space<vmem>>, vector<1x1x128xf32>
    %198 = vector.shape_cast %197 : vector<1x1x128xf32> to vector<1x128xf32>
    %199 = vector.shape_cast %196 : vector<1x128xf32> to vector<1x1x128xf32>
    tpu.vector_store %arg7[%c0_68, %c0_69, %c0_70], %199 {strides = array<i32>} : memref<1x1x128xf32, #tpu.memory_space<vmem>>, vector<1x1x128xf32>,
    return
  }
  func.func @transform_0(%arg0: i32) -> (i32, i32, i32) {
    %c0_i32 = arith.constant 0 : i32
    %c0_i32_0 = arith.constant 0 : i32
    %c0_i32_1 = arith.constant 0 : i32
    return %arg0, %c0_i32, %c0_i32_0 : i32, i32, i32
  }
  func.func @transform_1(%arg0: i32) -> (i32, i32) {
    %c0_i32 = arith.constant 0 : i32
    %c0_i32_0 = arith.constant 0 : i32
    %c0_i32_1 = arith.constant 0 : i32
    return %c0_i32, %c0_i32_0 : i32, i32
  }
  func.func @transform_2(%arg0: i32) -> (i32, i32) {
    %c0_i32 = arith.constant 0 : i32
    %c0_i32_0 = arith.constant 0 : i32
    %c0_i32_1 = arith.constant 0 : i32
    return %c0_i32, %c0_i32_0 : i32, i32
  }
  func.func @transform_3(%arg0: i32) -> (i32, i32) {
    %c0_i32 = arith.constant 0 : i32
    %c0_i32_0 = arith.constant 0 : i32
    %c0_i32_1 = arith.constant 0 : i32
    return %c0_i32, %c0_i32_0 : i32, i32
  }
  func.func @transform_4(%arg0: i32) -> (i32, i32) {
    %c0_i32 = arith.constant 0 : i32
    %c0_i32_0 = arith.constant 0 : i32
    %c0_i32_1 = arith.constant 0 : i32
    return %c0_i32, %c0_i32_0 : i32, i32
  }
  func.func @transform_5(%arg0: i32) -> (i32, i32) {
    %c0_i32 = arith.constant 0 : i32
    %c0_i32_0 = arith.constant 0 : i32
    %c0_i32_1 = arith.constant 0 : i32
    return %c0_i32, %c0_i32_0 : i32, i32
  }
  func.func @transform_6(%arg0: i32) -> (i32, i32, i32) {
    %c0_i32 = arith.constant 0 : i32
    %c0_i32_0 = arith.constant 0 : i32
    %c0_i32_1 = arith.constant 0 : i32
    return %arg0, %c0_i32, %c0_i32_0 : i32, i32, i32
  }
}

</mosaic_0001>

<bundles_post_ra>
// kernel: tdnn_forward.1
= control target key start
LH: loop header
LB: loop body
LE: loop exit
PB: predicated region body
PF: predicated region fallthrough
CT: control target
= control target key end

     0   :  { %11 = vsyncpa [#allocation3], 0  ;;  %s7017_s0 = inlined_call_operand.vmem [shape: f32[2,100,128], index: 0, kind: input, shape index: {}]   ;;  %s7018_s1 = inlined_call_operand.hbm [shape: bf16[4096,128], index: 1, kind: input, shape index: {}]   ;;  %s7019_s2 = inlined_call_operand.vmem [shape: f32[24,128], index: 2, kind: input, shape index: {}]   ;;  %s7020_s3 = inlined_call_operand.vmem [shape: bf16[128,128], index: 3, kind: input, shape index: {}]   ;;  %s7021_s4 = inlined_call_operand.vmem [shape: f32[2,128], index: 4, kind: input, shape index: {}]   ;;  %s7022_s5 = inlined_call_operand.vmem [shape: bf16[128,128], index: 5, kind: input, shape index: {}]   ;;  %s7023_s6 = inlined_call_operand.hbm [shape: f32[2,1,128], index: 6, kind: output, shape index: {}]  }
   0x1   :  { %12 = vsyncpa [#allocation4], 0 }
   0x2   :  { %14 = vsyncpa [#allocation4 + $0x1], 0  ;;  %s6275_s21 = smov 0   ;;  %s6277_s22 = smov 0  }
   0x3   :  { %s6279_s23 = smov 0   ;;  %s6281_s24 = smov 0  }
   0x4 LB: > { %s6296_s25 = sadd.s32 4294967295, %s6232_s24   ;;  %s4636_s26 = sadd.s32 4294967294, %s6232_s24   ;;  %s6232_s24 = sphi %s6281_s24, %s7039_s24   ;;  %s6228_s23 = sphi %s6279_s23, %s7038_s23   ;;  %s6224_s22 = sphi %s6277_s22, %s7037_s22   ;;  %s6220_s21 = sphi %s6275_s21, %s7036_s21  }
   0x5   : > { %s6300_s27 = sadd.s32 1, %s6232_s24   ;;  %s158_s28 = sadd.s32 1, %s6228_s23 }
   0x6   : > { %s155_s29 = ssub.s32 %s6232_s24, %s6300_s27  ;;  %p168_p0 = scmp.ne.s32.totalorder %s6228_s23, %s6224_s22 }
   0x7   : > { %p156_p1 = scmp.eq.s32.totalorder %s155_s29, 0  ;;  %p169_p2 = scmp.eq.s32.totalorder %s6296_s25, 1 }
   0x8   : > { %p174_p3 = scmp.ne.s32.totalorder %s6224_s22, %s6220_s21  ;;  %p175_p4 = scmp.eq.s32.totalorder %s4636_s26, 1 }
   0x9   : > { %s6311_s30 = scalar_select %p156_p1, %s6228_s23, %s158_s28  }
   0xa   : > { %p6313_p5 = por %p169_p2, %p168_p0  ;;  %p6317_p6 = por %p175_p4, %p174_p3 }
   0xb   : > { %p4637_p7 = scmp.ge.s32.totalorder %s6232_s24, 1  ;;  %p182_p8 = scmp.lt.s32.totalorder %s6232_s24, 3 }
   0xc   : > { %s7027_s7 = scalar_select %p6313_p5, 1, 0 }
   0xd   : > { %s7028_s8 = scalar_select %p6317_p6, 1, 0 }
   0xe   : > { %p7024_p9 = scmp.eq.s32.totalorder %s6296_s25, 0  ;;  %p6324_p10 = pnand %p4637_p7, %p182_p8 }
   0xf   : > { %s6234_s10 = smov [#allocation2]   ;;  %s6138_s15 = scalar_lea.hbm %s7018_s1, 32768 }
  0x10   : > { %s7029_s9 = scalar_select %p6324_p10, 1, 0 }
  0x11   : > { %s194_s11 = sshll.u32 %s6234_s10, 4  ;;  %p5804_p11 = pneg %p6324_p10  ;;  %s195_s11 = int_to_ptr.vmem [resolvable:$true] %s194_s11 }
  0x12   : > { %p6139_p13 = scmp.ne.s32.totalorder %s7018_s1, %s6138_s15  ;;  %p6145_p3 = scmp.lt.u32.totalorder %s6138_s15, %s7018_s1 }
  0x13   : > { %p6332_p12 = pnand %p7024_p9, %p5804_p11 }
  0x15   : > { %p6140_p0 = pneg %p6332_p12 }
  0x17   : > { %p6141_p1 = pnand %p6140_p0, %p6139_p13 }
  0x19   : > { %p6142_p2 = pneg %p6141_p1 }
  0x1b   : > { %p6147_p4 = pnand %p6145_p3, %p6142_p2 }
  0x1d   : > { %6150 = shalt.err (!%p6147_p4)
}
  0x1e   : > { %s6151_s20 = scalar_lea.vmem %s195_s11, 32768  ;;  %p6159_p9 = scmp.lt.s32.totalorder %s195_s11, %s195_s11 }
  0x1f   : > { %p6152_p7 = scmp.ne.s32.totalorder %s195_s11, %s6151_s20  ;;  %p6160_p6 = scmp.lt.s32.totalorder %s6151_s20, %s6151_s20 }
  0x21   : > { %p6154_p8 = pnand %p6152_p7, %p6140_p0  ;;  %p6161_p5 = por %p6160_p6, %p6159_p9 }
  0x23   : > { %p6155_p11 = pneg %p6154_p8 }
  0x25   : > { %p6162_p10 = pnand %p6161_p5, %p6155_p11 }
  0x27   : > { %6165 = shalt.err (!%p6162_p10)
}
  0x28   : > { %s6235_s26 = smov 64   ;;  %s6236_s28 = smov 4  }
  0x29   : > { %5807 = dma.hbm_to_vmem [thread:$0]  (!%p6332_p12), %s7018_s1, 32768, %s195_s11, [#allocation3], %s6235_s26, %s6235_s26, %s6236_s28  }
  0x2a   : > { %p7031_p13 = scmp.ne.s32.totalorder %s7029_s9, 0 }
  0x2b   : > { %p7032_p1 = scmp.eq.s32.totalorder (!%p7031_p13), %s6296_s25, 0 }
  0x2c   : > { %230 = sbr.rel (%p7031_p13) target bundleno = 3136 (0xc40), region = 44 }
  0x33   : > { %6211 = dma.done.wait (%p7032_p1), [#allocation3], 32768   ;;  %p7033_p0 = pmov %p7032_p1 }
  0x34   : > { %v5852_v0 = vld [vmem:[#allocation2 + $0x40] sm:$0xff]   ;;  %v5856_v4 = vld [vmem:[#allocation2 + $0x48] sm:$0xff]   ;;  %v5860_v8 = vld [vmem:[#allocation2 + $0x50] sm:$0xff]   ;;  %p259_p5 = scmp.lt.s32.totalorder %s6296_s25, 1  ;;  %vm285_vm0 = vsmask.f32 7424 }
  0x35   : > { %6213 = vsyncadd (%p7033_p0), [#allocation3], 4294934528  ;;  %v5853_v1 = vld [vmem:[#allocation2] sm:$0xff]   ;;  %4944 = vmatprep.subr.bf16.mxu0 %v5852_v0  ;;  %v5857_v5 = vld [vmem:[#allocation2 + $0x8] sm:$0xff]   ;;  %vm371_vm1 = vsmask.f32 6400 }
  0x36   : > { %v5854_v2 = vld [vmem:[#allocation2 + $0xc0] sm:$0xff]   ;;  %4945 = vmatpush3.bf16.msra.mxu0 %v5853_v1  ;;  %v5858_v6 = vld [vmem:[#allocation2 + $0xc8] sm:$0xff]   ;;  %v5861_v9 = vld [vmem:[#allocation2 + $0x10] sm:$0xff]   ;;  %s260_s9 = scalar_select %p259_p5, %s6296_s25, 1  ;;  %vm351_vm2 = vcmask 1046528   ;;  %vm407_vm3 = vcmask 1045504  }
  0x37   : > { %v5855_v3 = vld [vmem:[#allocation2 + $0x80] sm:$0xff]   ;;  %4996 = vmatprep.subr.bf16.mxu1 %v5854_v2  ;;  %4946 = vmatprep.subr.bf16.mxu0 %v5856_v4  ;;  %v5859_v7 = vld [vmem:[#allocation2 + $0x88] sm:$0xff]   ;;  %v5862_v10 = vld [vmem:[#allocation2 + $0xd0] sm:$0xff]   ;;  %vm1087_vm4 = vcmask 1044480   ;;  %vm1105_vm5 = vcmask 1043456   ;;  %vm1771_vm6 = vcmask 1041408  }
  0x38   : > { %4997 = vmatpush3.bf16.msra.mxu1 %v5855_v3  ;;  %v5863_v11 = vld [vmem:[#allocation2 + $0x90] sm:$0xff]   ;;  %v5864_v12 = vld [vmem:[#allocation2 + $0x58] sm:$0xff]   ;;  %v5868_v16 = vld [vmem:[#allocation2 + $0x60] sm:$0xff]   ;;  %s5797_s11 = smul.u32 104, %s260_s9  ;;  %vm6238_vm7 = vmmov 0   ;;  %vm4543_vm9 = vcmask 1040384  }
  0x39   : > { %4998 = vmatprep.subr.bf16.mxu1 %v5858_v6  ;;  %v5865_v13 = vld [vmem:[#allocation2 + $0x18] sm:$0xff]   ;;  %v5869_v17 = vld [vmem:[#allocation2 + $0x20] sm:$0xff]   ;;  %v5872_v20 = vld [vmem:[#allocation2 + $0x68] sm:$0xff]   ;;  %s257_s10 = sand.u32 1, %s6224_s22   ;;  %s4941_s9 = sshll.u32 %s6296_s25, 4 }
  0x3a   : > { %4947 = vmatpush3.bf16.msra.mxu0 %v5857_v5  ;;  %v5866_v14 = vld [vmem:[#allocation2 + $0xd8] sm:$0xff]   ;;  %v5870_v18 = vld [vmem:[#allocation2 + $0xe0] sm:$0xff]   ;;  %v5873_v21 = vld [vmem:[#allocation2 + $0x28] sm:$0xff]   ;;  %s6363_s14 = scalar_lea.vmem %s7017_s0, %s5797_s11  ;;  %s258_s11 = scalar_lea.vmem [#allocation5], %s257_s10 }
  0x3b   : > { %4948 = vmatprep.subr.bf16.mxu0 %v5860_v8  ;;  %v5867_v15 = vld [vmem:[#allocation2 + $0x98] sm:$0xff]   ;;  %v5871_v19 = vld [vmem:[#allocation2 + $0xa0] sm:$0xff]   ;;  %v5874_v22 = vld [vmem:[#allocation2 + $0xe8] sm:$0xff]   ;;  %s4569_s12 = sshll.u32 %s258_s11, 4  ;;  %s6975_s15 = scalar_lea.hbm %s7023_s6, %s4941_s9  ;;  %s6977_s12 = int_to_ptr.vmem [resolvable:$true] %s4569_s12 }
  0x3c   : > { %4999 = vmatpush3.bf16.msra.mxu1 %v5859_v7  ;;  %v5875_v23 = vld [vmem:[#allocation2 + $0xa8] sm:$0xff]   ;;  %v5876_v24 = vld [vmem:[#allocation2 + $0x70] sm:$0xff]   ;;  %v5880_v28 = vld [vmem:[#allocation2 + $0x78] sm:$0xff]   ;;  %s4557_s16 = scalar_lea.sflag [#allocation4], %s257_s10  ;;  %s6166_s17 = scalar_lea.vmem %s6977_s12, 16 }
  0x3d   : > { %5000 = vmatprep.subr.bf16.mxu1 %v5862_v10  ;;  %v5877_v25 = vld [vmem:[#allocation2 + $0x30] sm:$0xff]   ;;  %v5881_v29 = vld [vmem:[#allocation2 + $0x38] sm:$0xff]   ;;  %v265_v31 = vld [vmem:[%s6363_s14] sm:$0xff]  ;;  %p6167_p6 = scmp.ne.s32.totalorder %s6977_s12, %s6166_s17  ;;  %p7034_p9 = scmp.ne.s32.totalorder %s7027_s7, 0 }
  0x3e   : > { %4949 = vmatpush3.bf16.msra.mxu0 %v5861_v9  ;;  %v5878_v26 = vld [vmem:[#allocation2 + $0xf0] sm:$0xff]   ;;  %v5882_v30 = vld [vmem:[#allocation2 + $0xf8] sm:$0xff]   ;;  %v266_v32 = vld [vmem:[%s6363_s14 + $0x8] sm:$0xff]  ;;  %s6239_s25 = smov [#allocation5]  }
  0x3f   : > { %4950 = vmatprep.subr.bf16.mxu0 %v5864_v12  ;;  %v5879_v27 = vld [vmem:[#allocation2 + $0xb0] sm:$0xff]   ;;  %v268_v34 = vld [vmem:[%s6363_s14 + $0x18] sm:$0xff]  ;;  %v6369_v35 = vpack.c.bf16 %v266_v32, %v265_v31  ;;  %v5884_v40 = vld [vmem:[#allocation2 + $0x100] sm:$0xff]   ;;  %p6168_p10 = pnand %p6167_p6, %p7034_p9  ;;  %s6170_s18 = sshll.u32 %s6239_s25, 4  ;;  %s6171_s18 = int_to_ptr.vmem [resolvable:$false] %s6170_s18 }
  0x40   : > { %5001 = vmatpush3.bf16.msra.mxu1 %v5863_v11  ;;  %v267_v33 = vld [vmem:[%s6363_s14 + $0x10] sm:$0xff]  ;;  %v5883_v37 = vld [vmem:[#allocation2 + $0xb8] sm:$0xff]   ;;  %v269_v48 = vld [vmem:[%s6363_s14 + $0x20] sm:$0xff]  ;;  %s6172_s19 = scalar_lea.vmem %s6171_s18, 32  ;;  %p6173_p2 = scmp.lt.s32.totalorder %s6977_s12, %s6171_s18 }
  0x41   : > { %5002 = vmatprep.subr.bf16.mxu1 %v5866_v14  ;;  %v6371_v36 = vpack.c.bf16 %v268_v34, %v267_v33  ;;  %v287_v38 = vshrl.u32 %v6369_v35, 16  ;;  %v289_v39 = vshll.u32 %v6369_v35, 16  ;;  %v352_v43 = vrot.slane %v6369_v35, 1  ;;  %v270_v49 = vld [vmem:[%s6363_s14 + $0x28] sm:$0xff]  ;;  %v271_v53 = vld [vmem:[%s6363_s14 + $0x30] sm:$0xff]  ;;  %v272_v57 = vld [vmem:[%s6363_s14 + $0x38] sm:$0xff]  ;;  %p6169_p12 = pneg %p6168_p10  ;;  %p6174_p3 = scmp.lt.s32.totalorder %s6172_s19, %s6166_s17 }
  0x42   : > { %4951 = vmatpush3.bf16.msra.mxu0 %v5865_v13  ;;  %v6382_v56 = vpack.c.bf16 %v270_v49, %v269_v48  ;;  %v6386_v60 = vpack.c.bf16 %v272_v57, %v271_v53  ;;  %v5885_v62 = vld [vmem:[#allocation2 + $0x108] sm:$0xff]   ;;  %v273_v5 = vld [vmem:[%s6363_s14 + $0x40] sm:$0xff]  ;;  %v5886_v11 = vld [vmem:[#allocation2 + $0x110] sm:$0xff]  }
  0x43   : > { %4952 = vmatprep.subr.bf16.mxu0 %v5868_v16  ;;  %v294_v41 = vshll.u32 %v6371_v36, 16  ;;  %v298_v42 = vshrl.u32 %v6371_v36, 16  ;;  %v353_v44 = vrot.slane %v6371_v36, 1  ;;  %v291_v45 = vrot.slane %v289_v39, 1  ;;  %v274_v6 = vld [vmem:[%s6363_s14 + $0x48] sm:$0xff]  ;;  %v5887_v33 = vld [vmem:[#allocation2 + $0x118] sm:$0xff]   ;;  %p6175_p4 = por %p6174_p3, %p6173_p2 }
  0x44   : > { %5003 = vmatpush3.bf16.msra.mxu1 %v5867_v15  ;;  %v372_v46 = vrot.slane %v287_v38, 1  ;;  %v373_v47 = vrot.slane %v289_v39, 2  ;;  %v302_v0 = vshll.u32 %v6382_v56, 16  ;;  %v306_v1 = vshrl.u32 %v6382_v56, 16  ;;  %v275_v15 = vld [vmem:[%s6363_s14 + $0x50] sm:$0xff] }
  0x45   : > { %5004 = vmatprep.subr.bf16.mxu1 %v5870_v18  ;;  %v296_v50 = vrot.slane %v294_v41, 1  ;;  %v375_v51 = vrot.slane %v298_v42, 1  ;;  %v376_v52 = vrot.slane %v294_v41, 2  ;;  %v292_v54 = vor.u32 %v291_v45, %v287_v38  ;;  %p6176_p7 = pnand %p6175_p4, %p6169_p12 }
  0x46   : > { %4953 = vmatpush3.bf16.msra.mxu0 %v5869_v17  ;;  %v374_v55 = vor.u32 %v373_v47, %v372_v46  ;;  %v354_v59 = vsel %vm351_vm2, %v352_v43, %v353_v44  ;;  %v310_v3 = vshll.u32 %v6386_v60, 16  ;;  %v314_v4 = vshrl.u32 %v6386_v60, 16 }
  0x47   : > { %4954 = vmatprep.subr.bf16.mxu0 %v5872_v20  ;;  %v377_v58 = vor.u32 %v376_v52, %v375_v51  ;;  %v297_v61 = vsel %vm285_vm0, %v292_v54, %v296_v50  ;;  %v300_v63 = vor.u32 %v298_v42, %v296_v50  ;;  %v304_v7 = vrot.slane %v302_v0, 1  ;;  %v276_v20 = vld [vmem:[%s6363_s14 + $0x58] sm:$0xff]  ;;  %v5888_v42 = vld [vmem:[#allocation2 + $0x120] sm:$0xff]  }
  0x48   : > { %5005 = vmatpush3.bf16.msra.mxu1 %v5871_v19  ;;  %786 = vmatprep.mubr.bf16.mxu0 %v297_v61  ;;  %v379_v8 = vrot.slane %v306_v1, 1  ;;  %v380_v9 = vrot.slane %v302_v0, 2  ;;  %v355_v10 = vrot.slane %v6382_v56, 1  ;;  %v312_v12 = vrot.slane %v310_v3, 1 }
  0x49   : > { %5006 = vmatprep.subr.bf16.mxu1 %v5874_v22  ;;  %v378_v2 = vsel %vm371_vm1, %v374_v55, %v377_v58  ;;  %v383_v13 = vrot.slane %v314_v4, 1  ;;  %v384_v14 = vrot.slane %v310_v3, 2  ;;  %v305_v16 = vsel %vm285_vm0, %v300_v63, %v304_v7  ;;  %v5889_v55 = vld [vmem:[#allocation2 + $0x128] sm:$0xff]   ;;  %v5890_v3 = vld [vmem:[#allocation2 + $0x130] sm:$0xff]  }
  0x4a   : > { %4955 = vmatpush3.bf16.msra.mxu0 %v5873_v21  ;;  %867 = vmatprep.mubr.bf16.mxu1 %v378_v2  ;;  %v381_v17 = vor.u32 %v380_v9, %v379_v8  ;;  %v308_v18 = vor.u32 %v306_v1, %v304_v7  ;;  %v6400_v19 = vpack.c.bf16 %v274_v6, %v273_v5  ;;  %v411_v52 = vrot.slane %v6382_v56, 2  ;;  %v5891_v6 = vld [vmem:[#allocation2 + $0x138] sm:$0xff]  }
  0x4b   : > { %4956 = vmatprep.subr.bf16.mxu0 %v5876_v24  ;;  %v385_v21 = vor.u32 %v384_v14, %v383_v13  ;;  %v6403_v22 = vpack.c.bf16 %v276_v20, %v275_v15  ;;  %v316_v46 = vor.u32 %v314_v4, %v312_v12  ;;  %v413_v53 = vrot.slane %v6386_v60, 2  ;;  %v5893_v20 = vld [vmem:[#allocation2 + $0x140] sm:$0xff]  }
  0x4c   : > { %5007 = vmatpush3.bf16.msra.mxu1 %v5875_v23  ;;  %v382_v23 = vsel %vm371_vm1, %v377_v58, %v381_v17  ;;  %v318_v24 = vshll.u32 %v6400_v19, 16  ;;  %v313_v31 = vsel %vm285_vm0, %v308_v18, %v312_v12  ;;  %v359_v41 = vrot.slane %v6400_v19, 1 }
  0x4d   : > { %5008 = vmatprep.subr.bf16.mxu1 %v5878_v26  ;;  %v357_v26 = vrot.slane %v6386_v60, 1  ;;  %v386_v32 = vsel %vm371_vm1, %v381_v17, %v385_v21  ;;  %v330_v34 = vshrl.u32 %v6403_v22, 16  ;;  %v415_v54 = vrot.slane %v6400_v19, 2 }
  0x4e   : > { %4957 = vmatpush3.bf16.msra.mxu0 %v5877_v25  ;;  %v322_v25 = vshrl.u32 %v6400_v19, 16  ;;  %v320_v38 = vrot.slane %v318_v24, 1  ;;  %v417_v61 = vrot.slane %v6403_v22, 2 }
  0x4f   : > { %4958 = vmatprep.subr.bf16.mxu0 %v5880_v28  ;;  %v408_v28 = vrot.slane %v6369_v35, 2  ;;  %v391_v47 = vrot.slane %v330_v34, 1  ;;  %v360_v7 = vsel %vm351_vm2, %v357_v26, %v359_v41  ;;  %v416_v17 = vsel %vm407_vm3, %v413_v53, %v415_v54 }
  0x50   : > { %5009 = vmatpush3.bf16.msra.mxu1 %v5879_v27  ;;  %v326_v27 = vshll.u32 %v6403_v22, 16  ;;  %v387_v39 = vrot.slane %v322_v25, 1  ;;  %v321_v63 = vsel %vm285_vm0, %v316_v46, %v320_v38  ;;  %v324_v4 = vor.u32 %v322_v25, %v320_v38  ;;  %v5899_v25 = vld [vmem:[#allocation2 + $0x1c0] sm:$0xff]   ;;  %v5916_v46 = vld [vmem:[#allocation2 + $0x170] sm:$0xff]  }
  0x51   : > { %5010 = vmatprep.subr.bf16.mxu1 %v5882_v30  ;;  %v356_v30 = vsel %vm351_vm2, %v353_v44, %v355_v10  ;;  %v361_v44 = vrot.slane %v6403_v22, 1  ;;  %v418_v18 = vsel %vm407_vm3, %v415_v54, %v417_v61  ;;  %v5912_v38 = vld [vmem:[#allocation2 + $0x220] sm:$0xff]  }
  0x52   : > { %4959 = vmatpush3.bf16.msra.mxu0 %v5881_v29  ;;  %v409_v29 = vrot.slane %v6371_v36, 2  ;;  %v328_v43 = vrot.slane %v326_v27, 1  ;;  %v392_v48 = vrot.slane %v326_v27, 2  ;;  %v5903_v27 = vld [vmem:[#allocation2 + $0x1c8] sm:$0xff]   ;;  %v6466_v54 = vld [vmem:[%s7019_s2] ss:$0 sm:$0xff] }
  0x53   : > { %5541 = vmatprep.subr.bf16.mxu0 %v5884_v40 }
  0x54   : > { %5011 = vmatpush3.bf16.msra.mxu1 %v5883_v37  ;;  %v277_v37 = vld [vmem:[%s6363_s14 + $0x60] sm:$0xf]  ;;  %v393_v5 = vor.u32 %v392_v48, %v391_v47  ;;  %v329_v8 = vsel %vm285_vm0, %v324_v4, %v328_v43  ;;  %v410_v14 = vsel %vm407_vm3, %v408_v28, %v409_v29  ;;  %v412_v15 = vsel %vm407_vm3, %v409_v29, %v411_v52  ;;  %v5900_v28 = vld [vmem:[#allocation2 + $0x198] sm:$0xff]   ;;  %v5919_v47 = vld [vmem:[#allocation2 + $0x1f0] sm:$0xff]  }
  0x55   : > { %787 = vmatmul.mubr.bf16.vlgmr.msra.gmra.mrb[0].mxu0 %v6369_v35  ;;  %v6422_v45 = vpack.c.bf16 %v277_v37, %v277_v37  ;;  %v5901_v29 = vld [vmem:[#allocation2 + $0x158] sm:$0xff]   ;;  %v5906_v37 = vld [vmem:[#allocation2 + $0x160] sm:$0xff]  }
  0x56   : > { %5542 = vmatpush3.bf16.msra.mxu0 %v5884_v40  ;;  %794 = vmatprep.mubr.bf16.mxu0 %v305_v16  ;;  %v388_v40 = vrot.slane %v318_v24, 2  ;;  %v414_v16 = vsel %vm407_vm3, %v411_v52, %v413_v53  ;;  %v5898_v24 = vld [vmem:[#allocation2 + $0x200] sm:$0xff]   ;;  %v5920_v48 = vld [vmem:[#allocation2 + $0x1b8] sm:$0xff]  }
  0x57   : > { %868 = vmatmul.mubr.bf16.vlgmr.msra.gmra.mrb[0].mxu1 %v354_v59  ;;  %5543 = vmatprep.subr.bf16.mxu0 %v5885_v62  ;;  %v334_v50 = vshll.u32 %v6422_v45, 16  ;;  %v395_v51 = vshrl.u32 %v6422_v45, 16  ;;  %v363_v59 = vrot.slane %v6422_v45, 1  ;;  %v419_v1 = vrot.slane %v6422_v45, 2  ;;  %v5918_v45 = vld [vmem:[#allocation2 + $0x230] sm:$0xff]   ;;  %v6460_v52 = vld [vmem:[#allocation2 + $0x240] sm:$0xff]  }
  0x58   : > { %875 = vmatprep.mubr.bf16.mxu1 %v382_v23  ;;  %v389_v49 = vor.u32 %v388_v40, %v387_v39  ;;  %v5897_v23 = vld [vmem:[#allocation2 + $0x150] sm:$0xff]   ;;  %v5913_v39 = vld [vmem:[#allocation2 + $0x1e0] sm:$0xff]   ;;  %v5910_v40 = vld [vmem:[#allocation2 + $0x1a8] sm:$0xff]  }
  0x59   : > { %v336_v57 = vrot.slane %v334_v50, 1  ;;  %v397_v58 = vrot.slane %v395_v51, 1  ;;  %v398_v0 = vrot.slane %v334_v50, 2  ;;  %v420_v35 = vsel %vm407_vm3, %v417_v61, %v419_v1  ;;  %v5921_v50 = vld [vmem:[#allocation2 + $0x178] sm:$0xff]  }
  0x5a   : > { %5544 = vmatpush3.bf16.msra.mxu0 %v5885_v62  ;;  %v358_v62 = vsel %vm351_vm2, %v355_v10, %v357_v26  ;;  %v390_v2 = vsel %vm371_vm1, %v385_v21, %v389_v49  ;;  %v394_v9 = vsel %vm371_vm1, %v389_v49, %v393_v5  ;;  %v5895_v21 = vld [vmem:[#allocation2 + $0x148] sm:$0xff]   ;;  %v5922_v49 = vld [vmem:[#allocation2 + $0x238] sm:$0xff]  }
  0x5b   : > { %5545 = vmatprep.subr.bf16.mxu0 %v5886_v11  ;;  %v399_v10 = vor.u32 %v398_v0, %v397_v58  ;;  %v5902_v26 = vld [vmem:[#allocation2 + $0x208] sm:$0xff]   ;;  %v5923_v51 = vld [vmem:[#allocation2 + $0x1f8] sm:$0xff]  }
  0x5d   : > { %795 = vmatmul.mubr.bf16.gmra.mrb[4].mxu0 %v6371_v36  ;;  %v400_v13 = vsel %vm371_vm1, %v393_v5, %v399_v10  ;;  %v5894_v36 = vld [vmem:[#allocation2 + $0x188] sm:$0xff]  }
  0x5e   : > { %5546 = vmatpush3.bf16.msra.mxu0 %v5886_v11  ;;  %802 = vmatprep.mubr.bf16.mxu0 %v313_v31  ;;  %v362_v11 = vsel %vm351_vm2, %v359_v41, %v361_v44  ;;  %v5907_v31 = vld [vmem:[#allocation2 + $0x1d0] sm:$0xff]   ;;  %v5915_v41 = vld [vmem:[#allocation2 + $0x228] sm:$0xff]  }
  0x5f   : > { %876 = vmatmul.mubr.bf16.gmra.mrb[4].mxu1 %v356_v30  ;;  %5547 = vmatprep.subr.bf16.mxu0 %v5887_v33  ;;  %v5905_v30 = vld [vmem:[#allocation2 + $0x210] sm:$0xff]  }
  0x60   : > { %883 = vmatprep.mubr.bf16.mxu1 %v386_v32  ;;  %v5904_v32 = vld [vmem:[#allocation2 + $0x1a0] sm:$0xff]  }
  0x62   : > { %5548 = vmatpush3.bf16.msra.mxu0 %v5887_v33  ;;  %v5908_v33 = vld [vmem:[#allocation2 + $0x218] sm:$0xff]  }
  0x63   : > { %5549 = vmatprep.subr.bf16.mxu0 %v5888_v42 }
  0x65   : > { %803 = vmatmul.mubr.bf16.gmra.mrb[8].mxu0 %v6382_v56  ;;  %v332_v56 = vor.u32 %v330_v34, %v328_v43  ;;  %v5909_v34 = vld [vmem:[#allocation2 + $0x1d8] sm:$0xff]   ;;  %v5917_v43 = vld [vmem:[#allocation2 + $0x1e8] sm:$0xff]  }
  0x66   : > { %810 = vmatprep.mubr.bf16.mxu0 %v321_v63  ;;  %5550 = vmatpush3.bf16.msra.mxu0 %v5888_v42  ;;  %v5911_v42 = vld [vmem:[#allocation2 + $0x168] sm:$0xff]  }
  0x67   : > { %884 = vmatmul.mubr.bf16.gmra.mrb[8].mxu1 %v358_v62  ;;  %5551 = vmatprep.subr.bf16.mxu0 %v5889_v55  ;;  %v337_v12 = vsel %vm285_vm0, %v332_v56, %v336_v57 }
  0x68   : > { %891 = vmatprep.mubr.bf16.mxu1 %v390_v2 }
  0x6a   : > { %5552 = vmatpush3.bf16.msra.mxu0 %v5889_v55 }
  0x6b   : > { %5553 = vmatprep.subr.bf16.mxu0 %v5890_v3 }
  0x6d   : > { %811 = vmatmul.mubr.bf16.gmra.mrb[12].mxu0 %v6386_v60  ;;  %v364_v60 = vsel %vm351_vm2, %v361_v44, %v363_v59  ;;  %v5914_v44 = vld [vmem:[#allocation2 + $0x1b0] sm:$0xff]  }
  0x6e   : > { %818 = vmatprep.mubr.bf16.mxu0 %v329_v8  ;;  %5554 = vmatpush3.bf16.msra.mxu0 %v5890_v3 }
  0x6f   : > { %892 = vmatmul.mubr.bf16.gmra.mrb[12].mxu1 %v360_v7  ;;  %5555 = vmatprep.subr.bf16.mxu0 %v5891_v6 }
  0x70   : > { %899 = vmatprep.mubr.bf16.mxu1 %v394_v9 }
  0x72   : > { %5556 = vmatpush3.bf16.msra.mxu0 %v5891_v6 }
  0x73   : > { %5114 = vmatprep.subr.bf16.mxu0 %v5898_v24 }
  0x75   : > { %819 = vmatmul.mubr.bf16.gmra.mrb[16].mxu0 %v6400_v19  ;;  %v5892_v19 = vld [vmem:[#allocation2 + $0x180] sm:$0xff]  }
  0x76   : > { %826 = vmatprep.mubr.bf16.mxu0 %v337_v12  ;;  %5062 = vmatprep.subr.bf16.mxu1 %v5892_v19 }
  0x77   : > { %900 = vmatmul.mubr.bf16.gmra.mrb[16].mxu1 %v362_v11 }
  0x78   : > { %907 = vmatprep.mubr.bf16.mxu1 %v400_v13  ;;  %5063 = vmatpush3.bf16.msra.mxu1 %v5893_v20 }
  0x79   : > { %5064 = vmatprep.subr.bf16.mxu1 %v5894_v36 }
  0x7c   : > { %5065 = vmatpush3.bf16.msra.mxu1 %v5895_v21 }
  0x7d   : > { %827 = vmatmul.mubr.bf16.gmra.mrb[20].mxu0 %v6403_v22  ;;  %v5896_v22 = vld [vmem:[#allocation2 + $0x190] sm:$0xff]  }
  0x7e   : > { %5557 = vmatprep.mubr.bf16.mxu0 %v410_v14  ;;  %5066 = vmatprep.subr.bf16.mxu1 %v5896_v22 }
  0x7f   : > { %908 = vmatmul.mubr.bf16.gmra.mrb[20].mxu1 %v364_v60 }
  0x80   : > { %5067 = vmatpush3.bf16.msra.mxu1 %v5897_v23 }
  0x81   : > { %5068 = vmatprep.subr.bf16.mxu1 %v5900_v28 }
  0x84   : > { %5069 = vmatpush3.bf16.msra.mxu1 %v5901_v29 }
  0x85   : > { %5558 = vmatmul.mubr.bf16.vlgmr.msra.gmra.mrb[24].mxu0 %v412_v15  ;;  %5070 = vmatprep.subr.bf16.mxu1 %v5904_v32 }
  0x86   : > { %5561 = vmatprep.mubr.bf16.mxu0 %v414_v16  ;;  %5115 = vmatpush3.bf16.msra.mxu0 %v5899_v25 }
  0x87   : > { %5116 = vmatprep.subr.bf16.mxu0 %v5902_v26 }
  0x88   : > { %5071 = vmatpush3.bf16.msra.mxu1 %v5906_v37 }
  0x89   : > { %5072 = vmatprep.subr.bf16.mxu1 %v5910_v40 }
  0x8a   : > { %5117 = vmatpush3.bf16.msra.mxu0 %v5903_v27 }
  0x8b   : > { %5118 = vmatprep.subr.bf16.mxu0 %v5905_v30 }
  0x8c   : > { %5073 = vmatpush3.bf16.msra.mxu1 %v5911_v42 }
  0x8d   : > { %5562 = vmatmul.mubr.bf16.gmra.mrb[28].mxu0 %v416_v17  ;;  %5074 = vmatprep.subr.bf16.mxu1 %v5914_v44 }
  0x8e   : > { %5565 = vmatprep.mubr.bf16.mxu0 %v418_v18  ;;  %5119 = vmatpush3.bf16.msra.mxu0 %v5907_v31 }
  0x8f   : > { %5120 = vmatprep.subr.bf16.mxu0 %v5908_v33 }
  0x90   : > { %5075 = vmatpush3.bf16.msra.mxu1 %v5916_v46 }
  0x91   : > { %5076 = vmatprep.subr.bf16.mxu1 %v5920_v48 }
  0x92   : > { %5121 = vmatpush3.bf16.msra.mxu0 %v5909_v34 }
  0x93   : > { %5122 = vmatprep.subr.bf16.mxu0 %v5912_v38 }
  0x94   : > { %5077 = vmatpush3.bf16.msra.mxu1 %v5921_v50 }
  0x95   : > { %5566 = vmatmul.mubr.bf16.gmra.mrb[32].mxu0 %v420_v35  ;;  %5569 = vmatprep.subr.bf16.mxu1 %v6460_v52 }
  0x96   : > { %5123 = vmatpush3.bf16.msra.mxu0 %v5913_v39 }
  0x97   : > { %5124 = vmatprep.subr.bf16.mxu0 %v5915_v41 }
  0x9a   : > { %5125 = vmatpush3.bf16.msra.mxu0 %v5917_v43 }
  0x9b   : > { %5126 = vmatprep.subr.bf16.mxu0 %v5918_v45 }
  0x9e   : > { %5127 = vmatpush3.bf16.msra.mxu0 %v5919_v47 }
  0x9f   : > { %5128 = vmatprep.subr.bf16.mxu0 %v5922_v49 }
  0xa2   : > { %5129 = vmatpush3.bf16.msra.mxu0 %v5923_v51 }
 0x128   : > { %v4960_v53 = vpop.f32.mrb[0].mxu0 }
 0x129   : > { %v4961_v55 = vpop.f32.mrb[1].mxu0 }
 0x12a   : > { %v5012_v57 = vpop.f32.mrb[0].mxu1  ;;  %v4962_v58 = vadd.f32 %v4961_v55, %v4960_v53  ;;  %v4963_v59 = vpop.f32.mrb[2].mxu0 }
 0x12b   : > { %v5013_v61 = vpop.f32.mrb[1].mxu1  ;;  %v4964_v62 = vpop.f32.mrb[3].mxu0 }
 0x12c   : > { %v5014_v63 = vadd.f32 %v5013_v61, %v5012_v57  ;;  %v5015_v0 = vpop.f32.mrb[2].mxu1  ;;  %v789_v1 = vadd.f32 %v4962_v58, %v6466_v54  ;;  %v4965_v2 = vadd.f32 %v4964_v62, %v4963_v59 }
 0x12d   : > { %v5016_v3 = vpop.f32.mrb[3].mxu1 }
 0x12e   : > { %v5017_v4 = vadd.f32 %v5016_v3, %v5015_v0  ;;  %v792_v5 = vadd.f32 %v4965_v2, %v6466_v54  ;;  %v6470_v6 = vadd.f32 %v5014_v63, %v789_v1 }
 0x130   : > { %v4966_v7 = vpop.f32.mrb[4].mxu0  ;;  %v6472_v8 = vadd.f32 %v5017_v4, %v792_v5 }
 0x131   : > { %v4967_v9 = vpop.f32.mrb[5].mxu0 }
 0x132   : > { %v5018_v56 = vpop.f32.mrb[4].mxu1  ;;  %v4968_v10 = vadd.f32 %v4967_v9, %v4966_v7  ;;  %v4969_v11 = vpop.f32.mrb[6].mxu0 }
 0x133   : > { %v5019_v12 = vpop.f32.mrb[5].mxu1  ;;  %v4970_v13 = vpop.f32.mrb[7].mxu0 }
 0x134   : > { %v5020_v60 = vadd.f32 %v5019_v12, %v5018_v56  ;;  %v5021_v14 = vpop.f32.mrb[6].mxu1  ;;  %v797_v15 = vadd.f32 %v4968_v10, %v6466_v54  ;;  %v4971_v16 = vadd.f32 %v4970_v13, %v4969_v11 }
 0x135   : > { %v5022_v17 = vpop.f32.mrb[7].mxu1 }
 0x136   : > { %v5023_v18 = vadd.f32 %v5022_v17, %v5021_v14  ;;  %v800_v35 = vadd.f32 %v4971_v16, %v6466_v54  ;;  %v6476_v19 = vadd.f32 %v5020_v60, %v797_v15 }
 0x138   : > { %v4972_v20 = vpop.f32.mrb[8].mxu0  ;;  %v6478_v36 = vadd.f32 %v5023_v18, %v800_v35 }
 0x139   : > { %v4973_v21 = vpop.f32.mrb[9].mxu0 }
 0x13a   : > { %v5024_v22 = vpop.f32.mrb[8].mxu1  ;;  %v4974_v23 = vadd.f32 %v4973_v21, %v4972_v20  ;;  %v4975_v24 = vpop.f32.mrb[10].mxu0 }
 0x13b   : > { %v5025_v25 = vpop.f32.mrb[9].mxu1  ;;  %v4976_v26 = vpop.f32.mrb[11].mxu0 }
 0x13c   : > { %v5026_v27 = vadd.f32 %v5025_v25, %v5024_v22  ;;  %v5027_v28 = vpop.f32.mrb[10].mxu1  ;;  %v805_v29 = vadd.f32 %v4974_v23, %v6466_v54  ;;  %v4977_v30 = vadd.f32 %v4976_v26, %v4975_v24 }
 0x13d   : > { %v5028_v31 = vpop.f32.mrb[11].mxu1 }
 0x13e   : > { %v5029_v32 = vadd.f32 %v5028_v31, %v5027_v28  ;;  %v808_v33 = vadd.f32 %v4977_v30, %v6466_v54  ;;  %v6482_v34 = vadd.f32 %v5026_v27, %v805_v29  ;;  %v6502_v29 = vld [vmem:[%s7019_s2 + $0x1] ss:$0 sm:$0xff] }
 0x140   : > { %v4978_v37 = vpop.f32.mrb[12].mxu0  ;;  %v6484_v38 = vadd.f32 %v5029_v32, %v808_v33 }
 0x141   : > { %v4979_v39 = vpop.f32.mrb[13].mxu0 }
 0x142   : > { %v5030_v40 = vpop.f32.mrb[12].mxu1  ;;  %v4980_v41 = vadd.f32 %v4979_v39, %v4978_v37  ;;  %v4981_v42 = vpop.f32.mrb[14].mxu0 }
 0x143   : > { %v5031_v43 = vpop.f32.mrb[13].mxu1  ;;  %v4982_v44 = vpop.f32.mrb[15].mxu0 }
 0x144   : > { %v5032_v45 = vadd.f32 %v5031_v43, %v5030_v40  ;;  %v5033_v46 = vpop.f32.mrb[14].mxu1  ;;  %v813_v47 = vadd.f32 %v4980_v41, %v6466_v54  ;;  %v4983_v48 = vadd.f32 %v4982_v44, %v4981_v42 }
 0x145   : > { %v5034_v49 = vpop.f32.mrb[15].mxu1 }
 0x146   : > { %v5035_v50 = vadd.f32 %v5034_v49, %v5033_v46  ;;  %v816_v51 = vadd.f32 %v4983_v48, %v6466_v54  ;;  %v894_v53 = vadd.f32 %v5032_v45, %v813_v47 }
 0x148   : > { %v4984_v55 = vpop.f32.mrb[16].mxu0  ;;  %v897_v57 = vadd.f32 %v5035_v50, %v816_v51 }
 0x149   : > { %v4985_v58 = vpop.f32.mrb[17].mxu0 }
 0x14a   : > { %v5036_v59 = vpop.f32.mrb[16].mxu1  ;;  %v4986_v61 = vadd.f32 %v4985_v58, %v4984_v55  ;;  %v4987_v62 = vpop.f32.mrb[18].mxu0 }
 0x14b   : > { %v5037_v63 = vpop.f32.mrb[17].mxu1  ;;  %v4988_v0 = vpop.f32.mrb[19].mxu0 }
 0x14c   : > { %v5038_v1 = vadd.f32 %v5037_v63, %v5036_v59  ;;  %v5039_v2 = vpop.f32.mrb[18].mxu1  ;;  %v821_v3 = vadd.f32 %v4986_v61, %v6466_v54  ;;  %v4989_v4 = vadd.f32 %v4988_v0, %v4987_v62 }
 0x14d   : > { %v5040_v5 = vpop.f32.mrb[19].mxu1 }
 0x14e   : > { %v5041_v7 = vadd.f32 %v5040_v5, %v5039_v2  ;;  %v824_v9 = vadd.f32 %v4989_v4, %v6466_v54  ;;  %v6490_v56 = vadd.f32 %v5038_v1, %v821_v3 }
 0x150   : > { %v4990_v10 = vpop.f32.mrb[20].mxu0  ;;  %v6492_v11 = vadd.f32 %v5041_v7, %v824_v9 }
 0x151   : > { %v4991_v12 = vpop.f32.mrb[21].mxu0 }
 0x152   : > { %v5042_v13 = vpop.f32.mrb[20].mxu1  ;;  %v4992_v60 = vadd.f32 %v4991_v12, %v4990_v10  ;;  %v4993_v14 = vpop.f32.mrb[22].mxu0 }
 0x153   : > { %v5043_v15 = vpop.f32.mrb[21].mxu1  ;;  %v4994_v16 = vpop.f32.mrb[23].mxu0 }
 0x154   : > { %v5044_v17 = vadd.f32 %v5043_v15, %v5042_v13  ;;  %v5045_v18 = vpop.f32.mrb[22].mxu1  ;;  %v829_v35 = vadd.f32 %v4992_v60, %v6466_v54  ;;  %v4995_v20 = vadd.f32 %v4994_v16, %v4993_v14  ;;  %v5925_v15 = vld [vmem:[#allocation2 + $0x248] sm:$0xff]  }
 0x155   : > { %v5046_v21 = vpop.f32.mrb[23].mxu1 }
 0x156   : > { %v5047_v22 = vadd.f32 %v5046_v21, %v5045_v18  ;;  %v832_v23 = vadd.f32 %v4995_v20, %v6466_v54  ;;  %v910_v24 = vadd.f32 %v5044_v17, %v829_v35 }
 0x158   : > { %v5559_v25 = vpop.f32.mrb[24].mxu0  ;;  %v6496_v26 = vadd.f32 %v5047_v22, %v832_v23 }
 0x159   : > { %v959_v27 = vadd.f32 %v5559_v25, %v6476_v19  ;;  %v950_v28 = vpop.f32.mrb[25].mxu0  ;;  %v6511_v19 = vld [vmem:[%s7019_s2 + $0x2] ss:$0 sm:$0xff] }
 0x15a   : > { %v951_v30 = vadd.f32 %v950_v28, %v6470_v6  ;;  %v5560_v31 = vpop.f32.mrb[26].mxu0 }
 0x15b   : > { %v999_v32 = vmax.f32 %v959_v27, 0.0  ;;  %v962_v33 = vadd.f32 %v5560_v31, %v6478_v36  ;;  %v953_v37 = vpop.f32.mrb[27].mxu0 }
 0x15c   : > { %v997_v54 = vmax.f32 %v951_v30, 0.0  ;;  %v954_v39 = vadd.f32 %v953_v37, %v6472_v8 }
 0x15d   : > { %v1015_v40 = vmul.f32 %v6502_v29, %v999_v32  ;;  %v1000_v41 = vmax.f32 %v962_v33, 0.0 }
 0x15e   : > { %v1013_v42 = vmul.f32 %v6502_v29, %v997_v54  ;;  %v998_v43 = vmax.f32 %v954_v39, 0.0 }
 0x15f   : > { %v1016_v6 = vmul.f32 %v6502_v29, %v1000_v41  ;;  %v1031_v45 = vadd.f32 %v6511_v19, %v1015_v40 }
 0x160   : > { %v1014_v44 = vmul.f32 %v6502_v29, %v998_v43  ;;  %v5563_v36 = vpop.f32.mrb[28].mxu0  ;;  %v1029_v48 = vadd.f32 %v6511_v19, %v1013_v42 }
 0x161   : > { %v1032_v8 = vadd.f32 %v6511_v19, %v1016_v6  ;;  %v975_v46 = vadd.f32 %v5563_v36, %v894_v53  ;;  %v966_v47 = vpop.f32.mrb[29].mxu0 }
 0x162   : > { %v1030_v49 = vadd.f32 %v6511_v19, %v1014_v44  ;;  %v967_v50 = vadd.f32 %v966_v47, %v6482_v34  ;;  %v5564_v51 = vpop.f32.mrb[30].mxu0 }
 0x163   : > { %v6521_v55 = vpack.c.bf16 %v1032_v8, %v1031_v45  ;;  %v1003_v58 = vmax.f32 %v975_v46, 0.0  ;;  %v978_v59 = vadd.f32 %v5564_v51, %v897_v57  ;;  %v969_v61 = vpop.f32.mrb[31].mxu0 }
 0x164   : > { %v1041_v62 = vpack.c.bf16 %v1030_v49, %v1029_v48  ;;  %v1001_v63 = vmax.f32 %v967_v50, 0.0  ;;  %v970_v0 = vadd.f32 %v969_v61, %v6484_v38 }
 0x165   : > { %v1019_v53 = vmul.f32 %v6502_v29, %v1003_v58  ;;  %v1004_v1 = vmax.f32 %v978_v59, 0.0  ;;  %v1054_v2 = vrot.slane %v6521_v55, 1  ;;  %v1089_v3 = vrot.slane %v6521_v55, 3  ;;  %v5927_v58 = vld [vmem:[#allocation2 + $0x258] sm:$0xff]  }
 0x166   : > { %v1017_v34 = vmul.f32 %v6502_v29, %v1001_v63  ;;  %v1002_v4 = vmax.f32 %v970_v0, 0.0  ;;  %v1053_v5 = vrot.slane %v1041_v62, 1  ;;  %v1088_v7 = vrot.slane %v1041_v62, 3 }
 0x167   : > { %v1020_v57 = vmul.f32 %v6502_v29, %v1004_v1  ;;  %v1070_v9 = vrot.slane %v1041_v62, 2  ;;  %v1071_v10 = vrot.slane %v6521_v55, 2  ;;  %v1035_v38 = vadd.f32 %v6511_v19, %v1019_v53 }
 0x168   : > { %v1018_v12 = vmul.f32 %v6502_v29, %v1002_v4  ;;  %v5567_v13 = vpop.f32.mrb[32].mxu0  ;;  %v1055_v60 = vsel %vm351_vm2, %v1053_v5, %v1054_v2  ;;  %v1090_v14 = vsel %vm1087_vm4, %v1088_v7, %v1089_v3  ;;  %v1106_v20 = vrot.slane %v1041_v62, 4 }
 0x169   : > { %v1036_v16 = vadd.f32 %v6511_v19, %v1020_v57  ;;  %v991_v17 = vadd.f32 %v5567_v13, %v910_v24  ;;  %v982_v18 = vpop.f32.mrb[33].mxu0  ;;  %1482 = vmatprep.mubr.bf16.mxu1 %v1055_v60  ;;  %1562 = vmatprep.mubr.bf16.mxu0 %v1090_v14  ;;  %v1072_v35 = vsel %vm407_vm3, %v1070_v9, %v1071_v10  ;;  %v1107_v27 = vrot.slane %v6521_v55, 4  ;;  %v5929_v14 = vld [vmem:[#allocation2 + $0x268] sm:$0xff]  }
 0x16a   : > { %v1033_v21 = vadd.f32 %v6511_v19, %v1017_v34  ;;  %v1034_v22 = vadd.f32 %v6511_v19, %v1018_v12  ;;  %v983_v23 = vadd.f32 %v982_v18, %v6490_v56  ;;  %v5568_v25 = vpop.f32.mrb[34].mxu0  ;;  %1483 = vmatmul.mubr.bf16.vlgmr.msra.gmra.mrb[24].mxu1 %v1041_v62  ;;  %1563 = vmatmul.mubr.bf16.vlgmr.msra.gmra.mrb[36].mxu0 %v1072_v35  ;;  %v5926_v56 = vld [vmem:[#allocation2 + $0x250] sm:$0xff]   ;;  %v5931_v35 = vld [vmem:[#allocation2 + $0x278] sm:$0xff]  }
 0x16b   : > { %v6540_v28 = vpack.c.bf16 %v1036_v16, %v1035_v38  ;;  %v1007_v24 = vmax.f32 %v991_v17, 0.0  ;;  %v994_v30 = vadd.f32 %v5568_v25, %v6496_v26  ;;  %v985_v31 = vpop.f32.mrb[35].mxu0  ;;  %5570 = vmatpush3.bf16.msra.mxu1 %v6460_v52  ;;  %v6548_v54 = vsel %vm1105_vm5, %v1106_v20, %v1107_v27  ;;  %v5930_v18 = vld [vmem:[#allocation2 + $0x270] sm:$0xff]   ;;  %v5932_v20 = vld [vmem:[#allocation2 + $0x2c0] sm:$0xff]  }
 0x16c   : > { %v6544_v32 = vpack.c.bf16 %v1034_v22, %v1033_v21  ;;  %v1005_v33 = vmax.f32 %v983_v23, 0.0  ;;  %v986_v37 = vadd.f32 %v985_v31, %v6492_v11  ;;  %5571 = vmatprep.subr.bf16.mxu1 %v5925_v15  ;;  %5180 = vmatprep.subr.bf16.mxu0 %v5932_v20  ;;  %v5933_v21 = vld [vmem:[#allocation2 + $0x280] sm:$0xff]   ;;  %v5934_v22 = vld [vmem:[#allocation2 + $0x2c8] sm:$0xff]   ;;  %v5936_v25 = vld [vmem:[#allocation2 + $0x2d0] sm:$0xff]  }
 0x16d   : > { %v1023_v39 = vmul.f32 %v6502_v29, %v1007_v24  ;;  %v1008_v40 = vmax.f32 %v994_v30, 0.0  ;;  %v1058_v41 = vrot.slane %v6540_v28, 1  ;;  %v1093_v26 = vrot.slane %v6540_v28, 3  ;;  %5181 = vmatpush3.bf16.msra.mxu0 %v5933_v21  ;;  %v5935_v23 = vld [vmem:[#allocation2 + $0x288] sm:$0xff]   ;;  %v5939_v24 = vld [vmem:[#allocation2 + $0x300] sm:$0xff]   ;;  %v5940_v30 = vld [vmem:[#allocation2 + $0x2d8] sm:$0xff]  }
 0x16e   : > { %v1021_v42 = vmul.f32 %v6502_v29, %v1005_v33  ;;  %v1006_v52 = vmax.f32 %v986_v37, 0.0  ;;  %v1056_v43 = vrot.slane %v6544_v32, 1  ;;  %v1091_v6 = vrot.slane %v6544_v32, 3  ;;  %5182 = vmatprep.subr.bf16.mxu0 %v5934_v22  ;;  %v5941_v31 = vld [vmem:[#allocation2 + $0x298] sm:$0xff]   ;;  %v5943_v33 = vld [vmem:[#allocation2 + $0x308] sm:$0xff]   ;;  %v5944_v37 = vld [vmem:[#allocation2 + $0x2e0] sm:$0xff]  }
 0x16f   : > { %v1039_v11 = vadd.f32 %v6511_v19, %v1023_v39  ;;  %v1024_v44 = vmul.f32 %v6502_v29, %v1008_v40  ;;  %5572 = vmatpush3.bf16.msra.mxu1 %v5925_v15  ;;  %v1073_v36 = vrot.slane %v6544_v32, 2  ;;  %v1075_v45 = vrot.slane %v6540_v28, 2  ;;  %v5947_v39 = vld [vmem:[#allocation2 + $0x310] sm:$0xff]   ;;  %v5948_v40 = vld [vmem:[#allocation2 + $0x358] sm:$0xff]  }
 0x170   : > { %v1037_v8 = vadd.f32 %v6511_v19, %v1021_v42  ;;  %v1022_v46 = vmul.f32 %v6502_v29, %v1006_v52  ;;  %v1057_v47 = vsel %vm351_vm2, %v1054_v2, %v1056_v43  ;;  %v1092_v48 = vsel %vm1087_vm4, %v1089_v3, %v1091_v6  ;;  %5573 = vmatprep.subr.bf16.mxu1 %v5926_v56  ;;  %v5953_v42 = vld [vmem:[#allocation2 + $0x320] sm:$0xff]   ;;  %v5950_v52 = vld [vmem:[#allocation2 + $0x2e8] sm:$0xff]  }
 0x171   : > { %v1040_v49 = vadd.f32 %v6511_v19, %v1024_v44  ;;  %1490 = vmatprep.mubr.bf16.mxu1 %v1057_v47  ;;  %1570 = vmatprep.mubr.bf16.mxu0 %v1092_v48  ;;  %v1074_v50 = vsel %vm407_vm3, %v1071_v10, %v1073_v36  ;;  %v1059_v51 = vsel %vm351_vm2, %v1056_v43, %v1058_v41  ;;  %v1109_v59 = vrot.slane %v6544_v32, 4  ;;  %v5951_v43 = vld [vmem:[#allocation2 + $0x2a8] sm:$0xff]   ;;  %v5954_v44 = vld [vmem:[#allocation2 + $0x2f0] sm:$0xff]   ;;  %v5962_v47 = vld [vmem:[#allocation2 + $0x378] sm:$0xff]  }
 0x172   : > { %v1038_v61 = vadd.f32 %v6511_v19, %v1022_v46  ;;  %1491 = vmatmul.mubr.bf16.gmra.mrb[28].mxu1 %v6521_v55  ;;  %1571 = vmatmul.mubr.bf16.gmra.mrb[40].mxu0 %v1074_v50  ;;  %v1094_v29 = vsel %vm1087_vm4, %v1091_v6, %v1093_v26  ;;  %v1076_v62 = vsel %vm407_vm3, %v1073_v36, %v1075_v45  ;;  %v1111_v63 = vrot.slane %v6540_v28, 4  ;;  %v5928_v19 = vld [vmem:[#allocation2 + $0x260] sm:$0xff]   ;;  %v5955_v6 = vld [vmem:[#allocation2 + $0x368] sm:$0xff]   ;;  %v5956_v36 = vld [vmem:[#allocation2 + $0x2b0] sm:$0xff]  }
 0x173   : > { %v1046_v0 = vpack.c.bf16 %v1040_v49, %v1039_v11  ;;  %1498 = vmatprep.mubr.bf16.mxu1 %v1059_v51  ;;  %1578 = vmatprep.mubr.bf16.mxu0 %v1094_v29  ;;  %v1110_v53 = vsel %vm1105_vm5, %v1107_v27, %v1109_v59  ;;  %v5937_v27 = vld [vmem:[#allocation2 + $0x290] sm:$0xff]   ;;  %v5957_v11 = vld [vmem:[#allocation2 + $0x328] sm:$0xff]   ;;  %v5960_v46 = vld [vmem:[#allocation2 + $0x2f8] sm:$0xff]   ;;  %v6237_v50 = vmov 0.0  }
 0x174   : > { %v1045_v1 = vpack.c.bf16 %v1038_v61, %v1037_v8  ;;  %5574 = vmatpush3.bf16.msra.mxu1 %v5926_v56  ;;  %v1112_v2 = vsel %vm1105_vm5, %v1109_v59, %v1111_v63  ;;  %5183 = vmatpush3.bf16.msra.mxu0 %v5935_v23  ;;  %v5945_v56 = vld [vmem:[#allocation2 + $0x350] sm:$0xff]   ;;  %v5961_v48 = vld [vmem:[#allocation2 + $0x2b8] sm:$0xff]   ;;  %v6590_v59 = vld [vmem:[%s7019_s2 + $0x3] ss:$0 sm:$0xff] }
 0x175   : > { %5575 = vmatprep.subr.bf16.mxu1 %v5927_v58  ;;  %v1062_v3 = vrot.slane %v1046_v0, 1  ;;  %v1097_v55 = vrot.slane %v1046_v0, 3  ;;  %v1079_v34 = vrot.slane %v1046_v0, 2  ;;  %v1115_v4 = vrot.slane %v1046_v0, 4  ;;  %5184 = vmatprep.subr.bf16.mxu0 %v5936_v25  ;;  %v5959_v8 = vld [vmem:[#allocation2 + $0x330] sm:$0xff]   ;;  %v5963_v49 = vld [vmem:[#allocation2 + $0x338] sm:$0xff]  }
 0x176   : > { %v1060_v5 = vrot.slane %v1045_v1, 1  ;;  %v1095_v7 = vrot.slane %v1045_v1, 3  ;;  %v1077_v57 = vrot.slane %v1045_v1, 2  ;;  %v1113_v9 = vrot.slane %v1045_v1, 4 }
 0x178   : > { %v1061_v10 = vsel %vm351_vm2, %v1058_v41, %v1060_v5  ;;  %v1096_v38 = vsel %vm1087_vm4, %v1093_v26, %v1095_v7  ;;  %5576 = vmatpush3.bf16.msra.mxu1 %v5927_v58  ;;  %v1078_v12 = vsel %vm407_vm3, %v1075_v45, %v1077_v57  ;;  %v1063_v13 = vsel %vm351_vm2, %v1060_v5, %v1062_v3  ;;  %v5949_v41 = vld [vmem:[#allocation2 + $0x318] sm:$0xff]   ;;  %v5952_v26 = vld [vmem:[#allocation2 + $0x360] sm:$0xff]   ;;  %v5958_v45 = vld [vmem:[#allocation2 + $0x370] sm:$0xff]  }
 0x179   : > { %5577 = vmatprep.subr.bf16.mxu1 %v5928_v19  ;;  %v1098_v60 = vsel %vm1087_vm4, %v1095_v7, %v1097_v55  ;;  %v1080_v15 = vsel %vm407_vm3, %v1077_v57, %v1079_v34  ;;  %v1114_v16 = vsel %vm1105_vm5, %v1111_v63, %v1113_v9  ;;  %v1116_v17 = vsel %vm1105_vm5, %v1113_v9, %v1115_v4 }
 0x17a   : > { %1499 = vmatmul.mubr.bf16.gmra.mrb[32].mxu1 %v6544_v32  ;;  %1579 = vmatmul.mubr.bf16.gmra.mrb[44].mxu0 %v1076_v62  ;;  %v5942_v32 = vld [vmem:[#allocation2 + $0x348] sm:$0xff]  }
 0x17b   : > { %1506 = vmatprep.mubr.bf16.mxu1 %v1061_v10  ;;  %1586 = vmatprep.mubr.bf16.mxu0 %v1096_v38 }
 0x17c   : > { %5578 = vmatpush3.bf16.msra.mxu1 %v5928_v19  ;;  %5185 = vmatpush3.bf16.msra.mxu0 %v5937_v27 }
 0x17d   : > { %5579 = vmatprep.subr.bf16.mxu1 %v5929_v14  ;;  %5186 = vmatprep.subr.bf16.mxu0 %v5940_v30 }
 0x180   : > { %5580 = vmatpush3.bf16.msra.mxu1 %v5929_v14  ;;  %5187 = vmatpush3.bf16.msra.mxu0 %v5941_v31 }
 0x181   : > { %5581 = vmatprep.subr.bf16.mxu1 %v5930_v18  ;;  %5188 = vmatprep.subr.bf16.mxu0 %v5944_v37 }
 0x182   : > { %1507 = vmatmul.mubr.bf16.gmra.mrb[36].mxu1 %v6540_v28  ;;  %1587 = vmatmul.mubr.bf16.gmra.mrb[48].mxu0 %v1078_v12  ;;  %v5938_v28 = vld [vmem:[#allocation2 + $0x340] sm:$0xff]  }
 0x183   : > { %1514 = vmatprep.mubr.bf16.mxu1 %v1063_v13  ;;  %1594 = vmatprep.mubr.bf16.mxu0 %v1098_v60 }
 0x184   : > { %5582 = vmatpush3.bf16.msra.mxu1 %v5930_v18 }
 0x185   : > { %5583 = vmatprep.subr.bf16.mxu1 %v5931_v35 }
 0x188   : > { %5584 = vmatpush3.bf16.msra.mxu1 %v5931_v35 }
 0x189   : > { %5226 = vmatprep.subr.bf16.mxu1 %v5938_v28 }
 0x18a   : > { %1515 = vmatmul.mubr.bf16.gmra.mrb[40].mxu1 %v1045_v1  ;;  %1595 = vmatmul.mubr.bf16.gmra.mrb[52].mxu0 %v1080_v15 }
 0x18b   : > { %1522 = vmatprep.mubr.bf16.mxu1 %v1062_v3  ;;  %1602 = vmatprep.mubr.bf16.mxu0 %v1097_v55 }
 0x192   : > { %1523 = vmatmul.mubr.bf16.gmra.mrb[44].mxu1 %v1046_v0  ;;  %1603 = vmatmul.mubr.bf16.gmra.mrb[56].mxu0 %v1079_v34 }
 0x193   : > { %5585 = vmatprep.mubr.bf16.mxu1 %v6548_v54  ;;  %v5946_v54 = vld [vmem:[#allocation2 + $0x2a0] sm:$0xff]  }
 0x194   : > { %5189 = vmatpush3.bf16.msra.mxu0 %v5946_v54 }
 0x195   : > { %5190 = vmatprep.subr.bf16.mxu0 %v5950_v52 }
 0x198   : > { %5191 = vmatpush3.bf16.msra.mxu0 %v5951_v43 }
 0x199   : > { %5192 = vmatprep.subr.bf16.mxu0 %v5954_v44 }
 0x19a   : > { %5586 = vmatmul.mubr.bf16.vlgmr.msra.gmra.mrb[48].mxu1 %v1110_v53 }
 0x19b   : > { %5589 = vmatprep.mubr.bf16.mxu1 %v1112_v2  ;;  %5227 = vmatpush3.bf16.msra.mxu1 %v5939_v24 }
 0x19c   : > { %5228 = vmatprep.subr.bf16.mxu1 %v5942_v32  ;;  %5193 = vmatpush3.bf16.msra.mxu0 %v5956_v36 }
 0x19d   : > { %5194 = vmatprep.subr.bf16.mxu0 %v5960_v46 }
 0x19f   : > { %5229 = vmatpush3.bf16.msra.mxu1 %v5943_v33 }
 0x1a0   : > { %5230 = vmatprep.subr.bf16.mxu1 %v5945_v56  ;;  %5195 = vmatpush3.bf16.msra.mxu0 %v5961_v48 }
 0x1a1   : > { %5597 = vmatprep.subr.bf16.mxu0 %v6237_v50 }
 0x1a2   : > { %5590 = vmatmul.mubr.bf16.gmra.mrb[52].mxu1 %v1114_v16 }
 0x1a3   : > { %5593 = vmatprep.mubr.bf16.mxu1 %v1116_v17  ;;  %5231 = vmatpush3.bf16.msra.mxu1 %v5947_v39 }
 0x1a4   : > { %5232 = vmatprep.subr.bf16.mxu1 %v5948_v40 }
 0x1a7   : > { %5233 = vmatpush3.bf16.msra.mxu1 %v5949_v41 }
 0x1a8   : > { %5234 = vmatprep.subr.bf16.mxu1 %v5952_v26 }
 0x1aa   : > { %5594 = vmatmul.mubr.bf16.gmra.mrb[56].mxu1 %v1115_v4 }
 0x1ab   : > { %5235 = vmatpush3.bf16.msra.mxu1 %v5953_v42 }
 0x1ac   : > { %5236 = vmatprep.subr.bf16.mxu1 %v5955_v6 }
 0x1af   : > { %5237 = vmatpush3.bf16.msra.mxu1 %v5957_v11 }
 0x1b0   : > { %5238 = vmatprep.subr.bf16.mxu1 %v5958_v45 }
 0x1b3   : > { %5239 = vmatpush3.bf16.msra.mxu1 %v5959_v8 }
 0x1b4   : > { %5240 = vmatprep.subr.bf16.mxu1 %v5962_v47 }
 0x1b7   : > { %5241 = vmatpush3.bf16.msra.mxu1 %v5963_v49 }
 0x23d   : > { %v5078_v51 = vpop.f32.mrb[24].mxu1  ;;  %v5130_v58 = vpop.f32.mrb[36].mxu0 }
 0x23e   : > { %v5079_v61 = vpop.f32.mrb[25].mxu1  ;;  %v5131_v29 = vpop.f32.mrb[37].mxu0 }
 0x23f   : > { %v5080_v62 = vadd.f32 %v5079_v61, %v5078_v51  ;;  %v5132_v63 = vadd.f32 %v5131_v29, %v5130_v58  ;;  %v5081_v0 = vpop.f32.mrb[26].mxu1  ;;  %v5133_v53 = vpop.f32.mrb[38].mxu0 }
 0x240   : > { %v5082_v1 = vpop.f32.mrb[27].mxu1  ;;  %v5134_v2 = vpop.f32.mrb[39].mxu0 }
 0x241   : > { %v1485_v19 = vadd.f32 %v5080_v62, %v6590_v59  ;;  %v5083_v3 = vadd.f32 %v5082_v1, %v5081_v0  ;;  %v5135_v55 = vadd.f32 %v5134_v2, %v5133_v53 }
 0x243   : > { %v1488_v34 = vadd.f32 %v5083_v3, %v6590_v59  ;;  %v6594_v4 = vadd.f32 %v5132_v63, %v1485_v19 }
 0x245   : > { %v5084_v5 = vpop.f32.mrb[28].mxu1  ;;  %v5136_v7 = vpop.f32.mrb[40].mxu0  ;;  %v6596_v57 = vadd.f32 %v5135_v55, %v1488_v34 }
 0x246   : > { %v5085_v9 = vpop.f32.mrb[29].mxu1  ;;  %v5137_v10 = vpop.f32.mrb[41].mxu0 }
 0x247   : > { %v5086_v38 = vadd.f32 %v5085_v9, %v5084_v5  ;;  %v5138_v12 = vadd.f32 %v5137_v10, %v5136_v7  ;;  %v5087_v13 = vpop.f32.mrb[30].mxu1  ;;  %v5139_v60 = vpop.f32.mrb[42].mxu0 }
 0x248   : > { %v5088_v14 = vpop.f32.mrb[31].mxu1  ;;  %v5140_v15 = vpop.f32.mrb[43].mxu0 }
 0x249   : > { %v1493_v16 = vadd.f32 %v5086_v38, %v6590_v59  ;;  %v5089_v17 = vadd.f32 %v5088_v14, %v5087_v13  ;;  %v5141_v18 = vadd.f32 %v5140_v15, %v5139_v60 }
 0x24b   : > { %v1496_v35 = vadd.f32 %v5089_v17, %v6590_v59  ;;  %v6600_v20 = vadd.f32 %v5138_v12, %v1493_v16 }
 0x24d   : > { %v5090_v21 = vpop.f32.mrb[32].mxu1  ;;  %v5142_v22 = vpop.f32.mrb[44].mxu0  ;;  %v6602_v23 = vadd.f32 %v5141_v18, %v1496_v35 }
 0x24e   : > { %v5091_v25 = vpop.f32.mrb[33].mxu1  ;;  %v5143_v27 = vpop.f32.mrb[45].mxu0 }
 0x24f   : > { %v5092_v28 = vadd.f32 %v5091_v25, %v5090_v21  ;;  %v5144_v24 = vadd.f32 %v5143_v27, %v5142_v22  ;;  %v5093_v30 = vpop.f32.mrb[34].mxu1  ;;  %v5145_v31 = vpop.f32.mrb[46].mxu0 }
 0x250   : > { %v5094_v32 = vpop.f32.mrb[35].mxu1  ;;  %v5146_v33 = vpop.f32.mrb[47].mxu0 }
 0x251   : > { %v1501_v37 = vadd.f32 %v5092_v28, %v6590_v59  ;;  %v5095_v56 = vadd.f32 %v5094_v32, %v5093_v30  ;;  %v5147_v54 = vadd.f32 %v5146_v33, %v5145_v31 }
 0x253   : > { %v1504_v39 = vadd.f32 %v5095_v56, %v6590_v59  ;;  %v6606_v40 = vadd.f32 %v5144_v24, %v1501_v37  ;;  %v6623_v24 = vld [vmem:[%s7019_s2 + $0x4] ss:$0 sm:$0xff] }
 0x255   : > { %v5096_v41 = vpop.f32.mrb[36].mxu1  ;;  %v5148_v26 = vpop.f32.mrb[48].mxu0  ;;  %v6608_v42 = vadd.f32 %v5147_v54, %v1504_v39 }
 0x256   : > { %v5097_v52 = vpop.f32.mrb[37].mxu1  ;;  %v5149_v43 = vpop.f32.mrb[49].mxu0 }
 0x257   : > { %v5098_v6 = vadd.f32 %v5097_v52, %v5096_v41  ;;  %v5150_v11 = vadd.f32 %v5149_v43, %v5148_v26  ;;  %v5099_v44 = vpop.f32.mrb[38].mxu1  ;;  %v5151_v36 = vpop.f32.mrb[50].mxu0 }
 0x258   : > { %v5100_v45 = vpop.f32.mrb[39].mxu1  ;;  %v5152_v8 = vpop.f32.mrb[51].mxu0 }
 0x259   : > { %v1509_v46 = vadd.f32 %v5098_v6, %v6590_v59  ;;  %v5101_v47 = vadd.f32 %v5100_v45, %v5099_v44  ;;  %v5153_v48 = vadd.f32 %v5152_v8, %v5151_v36 }
 0x25b   : > { %v1512_v49 = vadd.f32 %v5101_v47, %v6590_v59  ;;  %v1589_v51 = vadd.f32 %v5150_v11, %v1509_v46 }
 0x25d   : > { %v5102_v58 = vpop.f32.mrb[40].mxu1  ;;  %v5154_v61 = vpop.f32.mrb[52].mxu0  ;;  %v1592_v29 = vadd.f32 %v5153_v48, %v1512_v49 }
 0x25e   : > { %v5103_v62 = vpop.f32.mrb[41].mxu1  ;;  %v5155_v63 = vpop.f32.mrb[53].mxu0 }
 0x25f   : > { %v5104_v0 = vadd.f32 %v5103_v62, %v5102_v58  ;;  %v5156_v53 = vadd.f32 %v5155_v63, %v5154_v61  ;;  %v5105_v1 = vpop.f32.mrb[42].mxu1  ;;  %v5157_v2 = vpop.f32.mrb[54].mxu0 }
 0x260   : > { %v5106_v19 = vpop.f32.mrb[43].mxu1  ;;  %v5158_v3 = vpop.f32.mrb[55].mxu0 }
 0x261   : > { %v1517_v55 = vadd.f32 %v5104_v0, %v6590_v59  ;;  %v5107_v34 = vadd.f32 %v5106_v19, %v5105_v1  ;;  %v5159_v5 = vadd.f32 %v5158_v3, %v5157_v2 }
 0x263   : > { %v1520_v7 = vadd.f32 %v5107_v34, %v6590_v59  ;;  %v6614_v9 = vadd.f32 %v5156_v53, %v1517_v55  ;;  %v5964_v34 = vld [vmem:[#allocation2 + $0x380] sm:$0xff]  }
 0x265   : > { %v5108_v10 = vpop.f32.mrb[44].mxu1  ;;  %v5160_v38 = vpop.f32.mrb[56].mxu0  ;;  %v6616_v12 = vadd.f32 %v5159_v5, %v1520_v7 }
 0x266   : > { %v5109_v13 = vpop.f32.mrb[45].mxu1  ;;  %v5161_v60 = vpop.f32.mrb[57].mxu0 }
 0x267   : > { %v5110_v14 = vadd.f32 %v5109_v13, %v5108_v10  ;;  %v5162_v15 = vadd.f32 %v5161_v60, %v5160_v38  ;;  %v5111_v16 = vpop.f32.mrb[46].mxu1  ;;  %v5163_v17 = vpop.f32.mrb[58].mxu0 }
 0x268   : > { %v5112_v18 = vpop.f32.mrb[47].mxu1  ;;  %v5164_v35 = vpop.f32.mrb[59].mxu0 }
 0x269   : > { %v1525_v21 = vadd.f32 %v5110_v14, %v6590_v59 }
 0x26b   : > { %v1605_v22 = vadd.f32 %v5162_v15, %v1525_v21 }
 0x26d   : > { %v5587_v25 = vpop.f32.mrb[48].mxu1 }
 0x26e   : > { %v1653_v27 = vadd.f32 %v5587_v25, %v6600_v20  ;;  %v1644_v28 = vpop.f32.mrb[49].mxu1  ;;  %v6632_v20 = vld [vmem:[%s7019_s2 + $0x5] ss:$0 sm:$0xff] }
 0x26f   : > { %v1645_v30 = vadd.f32 %v1644_v28, %v6594_v4  ;;  %v5588_v31 = vpop.f32.mrb[50].mxu1 }
 0x270   : > { %v1692_v32 = vmax.f32 %v1653_v27, 0.0  ;;  %v1656_v33 = vadd.f32 %v5588_v31, %v6602_v23  ;;  %v1647_v37 = vpop.f32.mrb[51].mxu1 }
 0x271   : > { %v1690_v56 = vmax.f32 %v1645_v30, 0.0  ;;  %v1648_v59 = vadd.f32 %v1647_v37, %v6596_v57 }
 0x272   : > { %v1707_v54 = vmul.f32 %v6623_v24, %v1692_v32  ;;  %v1693_v39 = vmax.f32 %v1656_v33, 0.0 }
 0x273   : > { %v1705_v41 = vmul.f32 %v6623_v24, %v1690_v56  ;;  %v1691_v26 = vmax.f32 %v1648_v59, 0.0 }
 0x274   : > { %v1708_v4 = vmul.f32 %v6623_v24, %v1693_v39  ;;  %v1722_v43 = vadd.f32 %v6632_v20, %v1707_v54 }
 0x275   : > { %v1706_v52 = vmul.f32 %v6623_v24, %v1691_v26  ;;  %v5591_v23 = vpop.f32.mrb[52].mxu1  ;;  %v1720_v44 = vadd.f32 %v6632_v20, %v1705_v41 }
 0x276   : > { %v1723_v57 = vadd.f32 %v6632_v20, %v1708_v4  ;;  %v1669_v6 = vadd.f32 %v5591_v23, %v1589_v51  ;;  %v1660_v11 = vpop.f32.mrb[53].mxu1 }
 0x277   : > { %v1721_v36 = vadd.f32 %v6632_v20, %v1706_v52  ;;  %v1661_v45 = vadd.f32 %v1660_v11, %v6606_v40  ;;  %v5592_v8 = vpop.f32.mrb[54].mxu1 }
 0x278   : > { %v6642_v46 = vpack.c.bf16 %v1723_v57, %v1722_v43  ;;  %v1696_v47 = vmax.f32 %v1669_v6, 0.0  ;;  %v1672_v48 = vadd.f32 %v5592_v8, %v1592_v29  ;;  %v1663_v49 = vpop.f32.mrb[55].mxu1  ;;  %v5966_v43 = vld [vmem:[#allocation2 + $0x390] sm:$0xff]   ;;  %v5967_v8 = vld [vmem:[#allocation2 + $0x398] sm:$0xff]  }
 0x279   : > { %v1731_v58 = vpack.c.bf16 %v1721_v36, %v1720_v44  ;;  %v1694_v61 = vmax.f32 %v1661_v45, 0.0  ;;  %v1664_v62 = vadd.f32 %v1663_v49, %v6608_v42 }
 0x27a   : > { %v1711_v51 = vmul.f32 %v6623_v24, %v1696_v47  ;;  %v1697_v63 = vmax.f32 %v1672_v48, 0.0  ;;  %v1743_v0 = vrot.slane %v6642_v46, 2  ;;  %v1773_v53 = vrot.slane %v6642_v46, 6 }
 0x27b   : > { %v1709_v40 = vmul.f32 %v6623_v24, %v1694_v61  ;;  %v1695_v1 = vmax.f32 %v1664_v62, 0.0  ;;  %v1742_v2 = vrot.slane %v1731_v58, 2  ;;  %v1772_v19 = vrot.slane %v1731_v58, 6  ;;  %v5968_v62 = vld [vmem:[#allocation2 + $0x3a0] sm:$0xff]  }
 0x27c   : > { %v1712_v29 = vmul.f32 %v6623_v24, %v1697_v63  ;;  %v1756_v3 = vrot.slane %v1731_v58, 4  ;;  %v1757_v55 = vrot.slane %v6642_v46, 4  ;;  %v1726_v42 = vadd.f32 %v6632_v20, %v1711_v51 }
 0x27d   : > { %v1710_v5 = vmul.f32 %v6623_v24, %v1695_v1  ;;  %v5595_v7 = vpop.f32.mrb[56].mxu1  ;;  %v1744_v10 = vsel %vm407_vm3, %v1742_v2, %v1743_v0  ;;  %v1774_v38 = vsel %vm1771_vm6, %v1772_v19, %v1773_v53  ;;  %v1724_v16 = vadd.f32 %v6632_v20, %v1709_v40  ;;  %v5971_v40 = vld [vmem:[#allocation2 + $0x3b8] sm:$0xff]   ;;  %v5973_v1 = vld [vmem:[#allocation2 + $0x3c0] sm:$0xff]   ;;  %v5974_v2 = vld [vmem:[#allocation2 + $0x408] sm:$0xff]  }
 0x27e   : > { %v1727_v13 = vadd.f32 %v6632_v20, %v1712_v29  ;;  %v1685_v60 = vadd.f32 %v5595_v7, %v1605_v22  ;;  %v1676_v14 = vpop.f32.mrb[57].mxu1  ;;  %2147 = vmatprep.mubr.bf16.mxu0 %v1744_v10  ;;  %2219 = vmatprep.mubr.bf16.mxu1 %v1774_v38  ;;  %v1758_v15 = vsel %vm1105_vm5, %v1756_v3, %v1757_v55  ;;  %v5965_v22 = vld [vmem:[#allocation2 + $0x388] sm:$0xff]   ;;  %v5976_v29 = vld [vmem:[#allocation2 + $0x410] sm:$0xff]   ;;  %v5982_v10 = vld [vmem:[#allocation2 + $0x420] sm:$0xff]  }
 0x27f   : > { %v1725_v17 = vadd.f32 %v6632_v20, %v1710_v5  ;;  %v1677_v18 = vadd.f32 %v1676_v14, %v6614_v9  ;;  %v5596_v35 = vpop.f32.mrb[58].mxu1  ;;  %2148 = vmatmul.mubr.bf16.vlgmr.msra.gmra.mrb[60].mxu0 %v1731_v58  ;;  %2220 = vmatmul.mubr.bf16.vlgmr.msra.gmra.mrb[60].mxu1 %v1758_v15  ;;  %v5975_v19 = vld [vmem:[#allocation2 + $0x3c8] sm:$0xff]   ;;  %v5977_v3 = vld [vmem:[#allocation2 + $0x3d0] sm:$0xff]   ;;  %v5980_v5 = vld [vmem:[#allocation2 + $0x3d8] sm:$0xff]  }
 0x280   : > { %v6660_v21 = vpack.c.bf16 %v1727_v13, %v1726_v42  ;;  %v1700_v25 = vmax.f32 %v1685_v60, 0.0  ;;  %v1679_v27 = vpop.f32.mrb[59].mxu1  ;;  %5598 = vmatpush3.bf16.msra.mxu0 %v5964_v34  ;;  %v5981_v34 = vld [vmem:[#allocation2 + $0x4c8] sm:$0xff]   ;;  %v5979_v42 = vld [vmem:[#allocation2 + $0x418] sm:$0xff]   ;;  %v5984_v7 = vld [vmem:[#allocation2 + $0x4d0] sm:$0xff]  }
 0x281   : > { %v6662_v28 = vpack.c.bf16 %v1725_v17, %v1724_v16  ;;  %v1698_v30 = vmax.f32 %v1677_v18, 0.0  ;;  %v1680_v31 = vadd.f32 %v1679_v27, %v6616_v12  ;;  %5599 = vmatprep.subr.bf16.mxu0 %v6237_v50  ;;  %v5983_v38 = vld [vmem:[#allocation2 + $0x3e0] sm:$0xff]   ;;  %v5986_v13 = vld [vmem:[#allocation2 + $0x4d8] sm:$0xff]   ;;  %v5985_v60 = vld [vmem:[#allocation2 + $0x428] sm:$0xff]  }
 0x282   : > { %v1715_v32 = vmul.f32 %v6623_v24, %v1700_v25  ;;  %v1747_v9 = vrot.slane %v6660_v21, 2  ;;  %v1777_v33 = vrot.slane %v6660_v21, 6  ;;  %v1761_v37 = vrot.slane %v6660_v21, 4  ;;  %v5987_v14 = vld [vmem:[#allocation2 + $0x3e8] sm:$0xff]   ;;  %v5988_v15 = vld [vmem:[#allocation2 + $0x4e0] sm:$0xff]   ;;  %v5989_v16 = vld [vmem:[#allocation2 + $0x430] sm:$0xff]  }
 0x283   : > { %v1713_v56 = vmul.f32 %v6623_v24, %v1698_v30  ;;  %v1699_v59 = vmax.f32 %v1680_v31, 0.0  ;;  %v1745_v54 = vrot.slane %v6662_v28, 2  ;;  %v1775_v39 = vrot.slane %v6662_v28, 6  ;;  %v5990_v17 = vld [vmem:[#allocation2 + $0x3f0] sm:$0xff]   ;;  %v5991_v18 = vld [vmem:[#allocation2 + $0x4e8] sm:$0xff]   ;;  %v5992_v35 = vld [vmem:[#allocation2 + $0x438] sm:$0xff]  }
 0x284   : > { %v1730_v41 = vadd.f32 %v6632_v20, %v1715_v32  ;;  %5600 = vmatpush3.bf16.msra.mxu0 %v5965_v22  ;;  %v1759_v12 = vrot.slane %v6662_v28, 4  ;;  %v5994_v25 = vld [vmem:[#allocation2 + $0x4f0] sm:$0xff]   ;;  %v5995_v27 = vld [vmem:[#allocation2 + $0x480] sm:$0xff]   ;;  %v5997_v22 = vld [vmem:[#allocation2 + $0x4f8] sm:$0xff]  }
 0x285   : > { %v1728_v26 = vadd.f32 %v6632_v20, %v1713_v56  ;;  %v1714_v4 = vmul.f32 %v6623_v24, %v1699_v59  ;;  %v1746_v52 = vsel %vm407_vm3, %v1743_v0, %v1745_v54  ;;  %v1776_v23 = vsel %vm1771_vm6, %v1773_v53, %v1775_v39  ;;  %5601 = vmatprep.subr.bf16.mxu0 %v6237_v50  ;;  %v5969_v0 = vld [vmem:[#allocation2 + $0x3a8] sm:$0xff]   ;;  %v5970_v53 = vld [vmem:[#allocation2 + $0x3b0] sm:$0xff]   ;;  %v6724_v31 = vld [vmem:[%s7019_s2 + $0x6] ss:$0 sm:$0xff] }
 0x286   : > { %v1736_v57 = vpack.c.bf16 %v1730_v41, %v1730_v41  ;;  %2155 = vmatprep.mubr.bf16.mxu0 %v1746_v52  ;;  %2227 = vmatprep.mubr.bf16.mxu1 %v1776_v23  ;;  %v1760_v6 = vsel %vm1105_vm5, %v1757_v55, %v1759_v12  ;;  %v1748_v11 = vsel %vm407_vm3, %v1745_v54, %v1747_v9  ;;  %v5978_v55 = vld [vmem:[#allocation2 + $0x4c0] sm:$0xff]  }
 0x287   : > { %v1729_v44 = vadd.f32 %v6632_v20, %v1714_v4  ;;  %2156 = vmatmul.mubr.bf16.gmra.mrb[64].mxu0 %v6642_v46  ;;  %2228 = vmatmul.mubr.bf16.gmra.mrb[64].mxu1 %v1760_v6  ;;  %v1778_v24 = vsel %vm1771_vm6, %v1775_v39, %v1777_v33  ;;  %v1762_v36 = vsel %vm1105_vm5, %v1759_v12, %v1761_v37 }
 0x288   : > { %2163 = vmatprep.mubr.bf16.mxu0 %v1748_v11  ;;  %2235 = vmatprep.mubr.bf16.mxu1 %v1778_v24  ;;  %v1781_v58 = vrot.slane %v1736_v57, 6 }
 0x289   : > { %v1735_v45 = vpack.c.bf16 %v1729_v44, %v1728_v26  ;;  %5602 = vmatpush3.bf16.msra.mxu0 %v5966_v43 }
 0x28a   : > { %5603 = vmatprep.subr.bf16.mxu0 %v6237_v50 }
 0x28b   : > { %v1749_v47 = vrot.slane %v1735_v45, 2  ;;  %v1779_v48 = vrot.slane %v1735_v45, 6  ;;  %v1763_v49 = vrot.slane %v1735_v45, 4 }
 0x28d   : > { %5604 = vmatpush3.bf16.msra.mxu0 %v5967_v8  ;;  %v1750_v20 = vsel %vm407_vm3, %v1747_v9, %v1749_v47  ;;  %v1780_v61 = vsel %vm1771_vm6, %v1777_v33, %v1779_v48  ;;  %v1764_v51 = vsel %vm1105_vm5, %v1761_v37, %v1763_v49  ;;  %v1782_v63 = vsel %vm1771_vm6, %v1779_v48, %v1781_v58 }
 0x28e   : > { %5605 = vmatprep.subr.bf16.mxu0 %v6237_v50 }
 0x28f   : > { %2164 = vmatmul.mubr.bf16.gmra.mrb[68].mxu0 %v6662_v28  ;;  %2236 = vmatmul.mubr.bf16.gmra.mrb[68].mxu1 %v1762_v36 }
 0x290   : > { %2171 = vmatprep.mubr.bf16.mxu0 %v1750_v20  ;;  %2243 = vmatprep.mubr.bf16.mxu1 %v1780_v61 }
 0x291   : > { %5606 = vmatpush3.bf16.msra.mxu0 %v5968_v62 }
 0x292   : > { %5607 = vmatprep.subr.bf16.mxu0 %v6237_v50 }
 0x295   : > { %5608 = vmatpush3.bf16.msra.mxu0 %v5969_v0 }
 0x296   : > { %5609 = vmatprep.subr.bf16.mxu0 %v6237_v50 }
 0x297   : > { %2172 = vmatmul.mubr.bf16.gmra.mrb[72].mxu0 %v6660_v21  ;;  %2244 = vmatmul.mubr.bf16.gmra.mrb[72].mxu1 %v1764_v51 }
 0x298   : > { %2179 = vmatprep.mubr.bf16.mxu0 %v1749_v47  ;;  %2251 = vmatprep.mubr.bf16.mxu1 %v1782_v63 }
 0x299   : > { %5610 = vmatpush3.bf16.msra.mxu0 %v5970_v53 }
 0x29a   : > { %5611 = vmatprep.subr.bf16.mxu0 %v6237_v50 }
 0x29d   : > { %5612 = vmatpush3.bf16.msra.mxu0 %v5971_v40 }
 0x29e   : > { %5633 = vmatprep.subr.bf16.mxu0 %v6237_v50 }
 0x29f   : > { %2180 = vmatmul.mubr.bf16.gmra.mrb[76].mxu0 %v1735_v45  ;;  %2252 = vmatmul.mubr.bf16.gmra.mrb[76].mxu1 %v1763_v49 }
 0x2a0   : > { %5613 = vmatprep.mubr.msk.bf16.mxu0 %vm6238_vm7, %v6237_v50 }
 0x2a7   : > { %5614 = vmatmul.mubr.bf16.vlgmr.msra.gmra.mrb[80].mxu0 %v6642_v46  ;;  %v5972_v46 = vld [vmem:[#allocation2 + $0x400] sm:$0xff]  }
 0x2a8   : > { %5617 = vmatprep.mubr.msk.bf16.mxu0 %vm6238_vm7, %v6237_v50  ;;  %5285 = vmatprep.subr.bf16.mxu1 %v5972_v46 }
 0x2a9   : > { %5286 = vmatpush3.bf16.msra.mxu1 %v5973_v1  ;;  %5634 = vmatpush3.bf16.msra.mxu0 %v5978_v55 }
 0x2aa   : > { %5287 = vmatprep.subr.bf16.mxu1 %v5974_v2  ;;  %5635 = vmatprep.subr.bf16.mxu0 %v6237_v50 }
 0x2ad   : > { %5288 = vmatpush3.bf16.msra.mxu1 %v5975_v19  ;;  %5636 = vmatpush3.bf16.msra.mxu0 %v5981_v34 }
 0x2ae   : > { %5289 = vmatprep.subr.bf16.mxu1 %v5976_v29  ;;  %5637 = vmatprep.subr.bf16.mxu0 %v6237_v50 }
 0x2af   : > { %5618 = vmatmul.mubr.bf16.gmra.mrb[84].mxu0 %v6662_v28 }
 0x2b0   : > { %5621 = vmatprep.mubr.msk.bf16.mxu0 %vm6238_vm7, %v6237_v50 }
 0x2b1   : > { %5290 = vmatpush3.bf16.msra.mxu1 %v5977_v3  ;;  %5638 = vmatpush3.bf16.msra.mxu0 %v5984_v7 }
 0x2b2   : > { %5291 = vmatprep.subr.bf16.mxu1 %v5979_v42  ;;  %5639 = vmatprep.subr.bf16.mxu0 %v6237_v50 }
 0x2b5   : > { %5292 = vmatpush3.bf16.msra.mxu1 %v5980_v5  ;;  %5640 = vmatpush3.bf16.msra.mxu0 %v5986_v13 }
 0x2b6   : > { %5293 = vmatprep.subr.bf16.mxu1 %v5982_v10  ;;  %5641 = vmatprep.subr.bf16.mxu0 %v6237_v50 }
 0x2b7   : > { %5622 = vmatmul.mubr.bf16.gmra.mrb[88].mxu0 %v6660_v21  ;;  %v5993_v21 = vld [vmem:[#allocation2 + $0x3f8] sm:$0xff]  }
 0x2b8   : > { %5625 = vmatprep.mubr.msk.bf16.mxu0 %vm6238_vm7, %v6237_v50 }
 0x2b9   : > { %5294 = vmatpush3.bf16.msra.mxu1 %v5983_v38  ;;  %5642 = vmatpush3.bf16.msra.mxu0 %v5988_v15 }
 0x2ba   : > { %5295 = vmatprep.subr.bf16.mxu1 %v5985_v60  ;;  %5643 = vmatprep.subr.bf16.mxu0 %v6237_v50 }
 0x2bd   : > { %5296 = vmatpush3.bf16.msra.mxu1 %v5987_v14  ;;  %5644 = vmatpush3.bf16.msra.mxu0 %v5991_v18 }
 0x2be   : > { %5297 = vmatprep.subr.bf16.mxu1 %v5989_v16  ;;  %5645 = vmatprep.subr.bf16.mxu0 %v6237_v50 }
 0x2bf   : > { %5626 = vmatmul.mubr.bf16.gmra.mrb[92].mxu0 %v1735_v45 }
 0x2c0   : > { %5629 = vmatprep.mubr.msk.bf16.mxu0 %vm6238_vm7, %v6237_v50 }
 0x2c1   : > { %5298 = vmatpush3.bf16.msra.mxu1 %v5990_v17  ;;  %5646 = vmatpush3.bf16.msra.mxu0 %v5994_v25 }
 0x2c2   : > { %5299 = vmatprep.subr.bf16.mxu1 %v5992_v35  ;;  %5647 = vmatprep.subr.bf16.mxu0 %v6237_v50 }
 0x2c5   : > { %5300 = vmatpush3.bf16.msra.mxu1 %v5993_v21  ;;  %5648 = vmatpush3.bf16.msra.mxu0 %v5997_v22 }
 0x2c6   : > { %5319 = vmatprep.subr.bf16.mxu1 %v5995_v27  ;;  %5661 = vmatprep.subr.bf16.mxu0 %v6237_v50 }
 0x2c7   : > { %5630 = vmatmul.mubr.bf16.gmra.mrb[96].mxu0 %v1736_v57 }
 0x2c8   : > { %5649 = vmatprep.mubr.msk.bf16.mxu0 %vm6238_vm7, %v6237_v50 }
 0x352   : > { %v5196_v28 = vpop.f32.mrb[60].mxu0  ;;  %v5242_v30 = vpop.f32.mrb[60].mxu1 }
 0x353   : > { %v5197_v32 = vpop.f32.mrb[61].mxu0  ;;  %v5243_v9 = vpop.f32.mrb[61].mxu1 }
 0x354   : > { %v5198_v33 = vadd.f32 %v5197_v32, %v5196_v28  ;;  %v5244_v37 = vadd.f32 %v5243_v9, %v5242_v30  ;;  %v5199_v56 = vpop.f32.mrb[62].mxu0  ;;  %v5245_v59 = vpop.f32.mrb[62].mxu1 }
 0x355   : > { %v5200_v54 = vpop.f32.mrb[63].mxu0  ;;  %v5246_v39 = vpop.f32.mrb[63].mxu1 }
 0x356   : > { %v2150_v41 = vadd.f32 %v5198_v33, %v6724_v31  ;;  %v5201_v12 = vadd.f32 %v5200_v54, %v5199_v56  ;;  %v5247_v26 = vadd.f32 %v5246_v39, %v5245_v59 }
 0x358   : > { %v2153_v4 = vadd.f32 %v5201_v12, %v6724_v31  ;;  %v6728_v52 = vadd.f32 %v5244_v37, %v2150_v41 }
 0x35a   : > { %v5202_v23 = vpop.f32.mrb[64].mxu0  ;;  %v5248_v43 = vpop.f32.mrb[64].mxu1  ;;  %v6730_v57 = vadd.f32 %v5247_v26, %v2153_v4 }
 0x35b   : > { %v5203_v6 = vpop.f32.mrb[65].mxu0  ;;  %v5249_v11 = vpop.f32.mrb[65].mxu1 }
 0x35c   : > { %v5204_v44 = vadd.f32 %v5203_v6, %v5202_v23  ;;  %v5250_v24 = vadd.f32 %v5249_v11, %v5248_v43  ;;  %v5205_v36 = vpop.f32.mrb[66].mxu0  ;;  %v5251_v45 = vpop.f32.mrb[66].mxu1  ;;  %v6749_v11 = vld [vmem:[%s7019_s2 + $0x7] ss:$0 sm:$0xff] }
 0x35d   : > { %v5206_v8 = vpop.f32.mrb[67].mxu0  ;;  %v5252_v47 = vpop.f32.mrb[67].mxu1 }
 0x35e   : > { %v2158_v48 = vadd.f32 %v5204_v44, %v6724_v31  ;;  %v5207_v49 = vadd.f32 %v5206_v8, %v5205_v36  ;;  %v5253_v58 = vadd.f32 %v5252_v47, %v5251_v45 }
 0x360   : > { %v2161_v20 = vadd.f32 %v5207_v49, %v6724_v31  ;;  %v2230_v61 = vadd.f32 %v5250_v24, %v2158_v48 }
 0x362   : > { %v5208_v62 = vpop.f32.mrb[68].mxu0  ;;  %v5254_v51 = vpop.f32.mrb[68].mxu1  ;;  %v6734_v63 = vadd.f32 %v5253_v58, %v2161_v20 }
 0x363   : > { %v5209_v0 = vpop.f32.mrb[69].mxu0  ;;  %v5255_v53 = vpop.f32.mrb[69].mxu1 }
 0x364   : > { %v5210_v40 = vadd.f32 %v5209_v0, %v5208_v62  ;;  %v5256_v46 = vadd.f32 %v5255_v53, %v5254_v51  ;;  %v5211_v1 = vpop.f32.mrb[70].mxu0  ;;  %v5257_v2 = vpop.f32.mrb[70].mxu1 }
 0x365   : > { %v5212_v19 = vpop.f32.mrb[71].mxu0  ;;  %v5258_v29 = vpop.f32.mrb[71].mxu1 }
 0x366   : > { %v2166_v3 = vadd.f32 %v5210_v40, %v6724_v31  ;;  %v5213_v55 = vadd.f32 %v5212_v19, %v5211_v1  ;;  %v5259_v34 = vadd.f32 %v5258_v29, %v5257_v2 }
 0x368   : > { %v2169_v42 = vadd.f32 %v5213_v55, %v6724_v31  ;;  %v2238_v5 = vadd.f32 %v5256_v46, %v2166_v3 }
 0x36a   : > { %v5214_v7 = vpop.f32.mrb[72].mxu0  ;;  %v5260_v10 = vpop.f32.mrb[72].mxu1  ;;  %v2241_v38 = vadd.f32 %v5259_v34, %v2169_v42 }
 0x36b   : > { %v5215_v13 = vpop.f32.mrb[73].mxu0  ;;  %v5261_v60 = vpop.f32.mrb[73].mxu1 }
 0x36c   : > { %v5216_v14 = vadd.f32 %v5215_v13, %v5214_v7  ;;  %v5262_v15 = vadd.f32 %v5261_v60, %v5260_v10  ;;  %v5217_v16 = vpop.f32.mrb[74].mxu0  ;;  %v5263_v17 = vpop.f32.mrb[74].mxu1 }
 0x36d   : > { %v5218_v18 = vpop.f32.mrb[75].mxu0  ;;  %v5264_v35 = vpop.f32.mrb[75].mxu1 }
 0x36e   : > { %v2174_v21 = vadd.f32 %v5216_v14, %v6724_v31  ;;  %v5219_v25 = vadd.f32 %v5218_v18, %v5217_v16  ;;  %v5265_v27 = vadd.f32 %v5264_v35, %v5263_v17  ;;  %v5996_v16 = vld [vmem:[#allocation2 + $0x440] sm:$0xff]   ;;  %v5998_v35 = vld [vmem:[#allocation2 + $0x488] sm:$0xff]  }
 0x370   : > { %v2177_v22 = vadd.f32 %v5219_v25, %v6724_v31  ;;  %v2246_v28 = vadd.f32 %v5262_v15, %v2174_v21 }
 0x372   : > { %v5220_v30 = vpop.f32.mrb[76].mxu0  ;;  %v5266_v32 = vpop.f32.mrb[76].mxu1  ;;  %v6740_v9 = vadd.f32 %v5265_v27, %v2177_v22 }
 0x373   : > { %v5221_v33 = vpop.f32.mrb[77].mxu0  ;;  %v5267_v37 = vpop.f32.mrb[77].mxu1 }
 0x374   : > { %v5222_v56 = vadd.f32 %v5221_v33, %v5220_v30  ;;  %v5268_v59 = vadd.f32 %v5267_v37, %v5266_v32  ;;  %v5223_v54 = vpop.f32.mrb[78].mxu0  ;;  %v5269_v39 = vpop.f32.mrb[78].mxu1  ;;  %v5999_v30 = vld [vmem:[#allocation2 + $0x448] sm:$0xff]  }
 0x375   : > { %v5224_v41 = vpop.f32.mrb[79].mxu0  ;;  %v5270_v12 = vpop.f32.mrb[79].mxu1 }
 0x376   : > { %v2182_v26 = vadd.f32 %v5222_v56, %v6724_v31  ;;  %v6756_v31 = vld [vmem:[%s7019_s2 + $0x8] ss:$0 sm:$0xff]  ;;  %v6001_v12 = vld [vmem:[#allocation2 + $0x450] sm:$0xff]  }
 0x378   : > { %v6743_v4 = vadd.f32 %v5268_v59, %v2182_v26  ;;  %v6000_v59 = vld [vmem:[#allocation2 + $0x490] sm:$0xff]  }
 0x37a   : > { %v2293_v23 = vpop.f32.mrb[80].mxu0 }
 0x37b   : > { %v2294_v43 = vadd.f32 %v2293_v23, %v6728_v52  ;;  %v5615_v6 = vpop.f32.mrb[81].mxu0  ;;  %v6002_v23 = vld [vmem:[#allocation2 + $0x498] sm:$0xff]  }
 0x37c   : > { %v2296_v44 = vpop.f32.mrb[82].mxu0 }
 0x37d   : > { %v2331_v24 = vmax.f32 %v2294_v43, 0.0  ;;  %v2297_v36 = vadd.f32 %v2296_v44, %v6730_v57  ;;  %v5616_v45 = vpop.f32.mrb[83].mxu0 }
 0x37e   : > { %v6003_v45 = vld [vmem:[#allocation2 + $0x458] sm:$0xff]  }
 0x37f   : > { %v2344_v8 = vmul.f32 %v6749_v11, %v2331_v24  ;;  %v2332_v47 = vmax.f32 %v2297_v36, 0.0 }
 0x381   : > { %v2345_v52 = vmul.f32 %v6749_v11, %v2332_v47  ;;  %v2357_v49 = vadd.f32 %v6756_v31, %v2344_v8 }
 0x382   : > { %v2301_v48 = vpop.f32.mrb[84].mxu0 }
 0x383   : > { %v2358_v58 = vadd.f32 %v6756_v31, %v2345_v52  ;;  %v2302_v20 = vadd.f32 %v2301_v48, %v2230_v61  ;;  %v5619_v62 = vpop.f32.mrb[85].mxu0  ;;  %v6004_v48 = vld [vmem:[#allocation2 + $0x4a0] sm:$0xff]  }
 0x384   : > { %v2304_v51 = vpop.f32.mrb[86].mxu0 }
 0x385   : > { %v2366_v57 = vpack.c.bf16 %v2358_v58, %v2357_v49  ;;  %v2333_v0 = vmax.f32 %v2302_v20, 0.0  ;;  %v2305_v53 = vadd.f32 %v2304_v51, %v6734_v63  ;;  %v5620_v40 = vpop.f32.mrb[87].mxu0  ;;  %v6005_v20 = vld [vmem:[#allocation2 + $0x460] sm:$0xff]  }
 0x386   : > { %v6010_v40 = vld [vmem:[#allocation2 + $0x4b8] sm:$0xff]  }
 0x387   : > { %v2346_v46 = vmul.f32 %v6749_v11, %v2333_v0  ;;  %v2334_v1 = vmax.f32 %v2305_v53, 0.0  ;;  %v2374_v14 = vrot.slane %v2366_v57, 4  ;;  %v6009_v53 = vld [vmem:[#allocation2 + $0x470] sm:$0xff]  }
 0x389   : > { %v2347_v2 = vmul.f32 %v6749_v11, %v2334_v1  ;;  %v2359_v29 = vadd.f32 %v6756_v31, %v2346_v46  ;;  %v6011_v46 = vld [vmem:[#allocation2 + $0x478] sm:$0xff]   ;;  %v6013_v1 = vld [vmem:[#allocation2 + $0x540] sm:$0xff]  }
 0x38a   : > { %v2309_v19 = vpop.f32.mrb[88].mxu0 }
 0x38b   : > { %v2360_v3 = vadd.f32 %v6756_v31, %v2347_v2  ;;  %v2310_v55 = vadd.f32 %v2309_v19, %v2238_v5  ;;  %v5623_v34 = vpop.f32.mrb[89].mxu0  ;;  %v6014_v2 = vld [vmem:[#allocation2 + $0x500] sm:$0xff]   ;;  %v6015_v19 = vld [vmem:[#allocation2 + $0x588] sm:$0xff]  }
 0x38c   : > { %v2312_v61 = vpop.f32.mrb[90].mxu0  ;;  %v6019_v34 = vld [vmem:[#allocation2 + $0x550] sm:$0xff]  }
 0x38d   : > { %v6766_v42 = vpack.c.bf16 %v2360_v3, %v2359_v29  ;;  %v2335_v7 = vmax.f32 %v2310_v55, 0.0  ;;  %v2313_v10 = vadd.f32 %v2312_v61, %v2241_v38  ;;  %v5624_v13 = vpop.f32.mrb[91].mxu0  ;;  %v6016_v29 = vld [vmem:[#allocation2 + $0x548] sm:$0xff]   ;;  %v6018_v55 = vld [vmem:[#allocation2 + $0x590] sm:$0xff]  }
 0x38e   : > { %v6017_v3 = vld [vmem:[#allocation2 + $0x508] sm:$0xff]   ;;  %v6020_v61 = vld [vmem:[#allocation2 + $0x510] sm:$0xff]   ;;  %v6024_v13 = vld [vmem:[#allocation2 + $0x5a0] sm:$0xff]  }
 0x38f   : > { %v2348_v63 = vmul.f32 %v6749_v11, %v2335_v7  ;;  %v2336_v60 = vmax.f32 %v2313_v10, 0.0  ;;  %v2375_v15 = vrot.slane %v6766_v42, 4  ;;  %v6022_v7 = vld [vmem:[#allocation2 + $0x558] sm:$0xff]  }
 0x390   : > { %v6023_v10 = vld [vmem:[#allocation2 + $0x518] sm:$0xff]  }
 0x391   : > { %v2349_v17 = vmul.f32 %v6749_v11, %v2336_v60  ;;  %v2376_v18 = vsel %vm1105_vm5, %v2374_v14, %v2375_v15  ;;  %v2361_v21 = vadd.f32 %v6756_v31, %v2348_v63  ;;  %v6025_v63 = vld [vmem:[#allocation2 + $0x560] sm:$0xff]   ;;  %v6027_v14 = vld [vmem:[#allocation2 + $0x5a8] sm:$0xff]  }
 0x392   : > { %v2317_v5 = vpop.f32.mrb[92].mxu0  ;;  %2746 = vmatprep.mubr.bf16.mxu1 %v2376_v18  ;;  %v6026_v60 = vld [vmem:[#allocation2 + $0x520] sm:$0xff]   ;;  %v6031_v18 = vld [vmem:[#allocation2 + $0x570] sm:$0xff]  }
 0x393   : > { %v2362_v25 = vadd.f32 %v6756_v31, %v2349_v17  ;;  %v2318_v38 = vadd.f32 %v2317_v5, %v2246_v28  ;;  %v5627_v27 = vpop.f32.mrb[93].mxu0  ;;  %2747 = vmatmul.mubr.bf16.vlgmr.msra.gmra.mrb[80].mxu1 %v2366_v57  ;;  %v6007_v57 = vld [vmem:[#allocation2 + $0x468] sm:$0xff]   ;;  %v6030_v17 = vld [vmem:[#allocation2 + $0x5b0] sm:$0xff]   ;;  %v6033_v5 = vld [vmem:[#allocation2 + $0x5b8] sm:$0xff]  }
 0x394   : > { %5320 = vmatpush3.bf16.msra.mxu1 %v5996_v16  ;;  %v2320_v22 = vpop.f32.mrb[94].mxu0  ;;  %v6029_v16 = vld [vmem:[#allocation2 + $0x528] sm:$0xff]  }
 0x395   : > { %v2368_v32 = vpack.c.bf16 %v2362_v25, %v2361_v21  ;;  %v2337_v33 = vmax.f32 %v2318_v38, 0.0  ;;  %v2321_v37 = vadd.f32 %v2320_v22, %v6740_v9  ;;  %v5628_v56 = vpop.f32.mrb[95].mxu0  ;;  %5321 = vmatprep.subr.bf16.mxu1 %v5998_v35  ;;  %v6032_v35 = vld [vmem:[#allocation2 + $0x530] sm:$0xff]   ;;  %v6034_v21 = vld [vmem:[#allocation2 + $0x578] sm:$0xff]  }
 0x396   : > { %v6035_v25 = vld [vmem:[#allocation2 + $0x538] sm:$0xff]  }
 0x397   : > { %v2350_v54 = vmul.f32 %v6749_v11, %v2337_v33  ;;  %v2338_v39 = vmax.f32 %v2321_v37, 0.0  ;;  %5650 = vmatmul.mubr.bf16.vlgmr.msra.gmra.mrb[100].mxu0 %v2368_v32  ;;  %v2377_v41 = vrot.slane %v2368_v32, 4 }
 0x398   : > { %5322 = vmatpush3.bf16.msra.mxu1 %v5999_v30  ;;  %5653 = vmatprep.mubr.msk.bf16.mxu0 %vm6238_vm7, %v6237_v50 }
 0x399   : > { %v2351_v28 = vmul.f32 %v6749_v11, %v2338_v39  ;;  %v2378_v26 = vsel %vm1105_vm5, %v2375_v15, %v2377_v41  ;;  %5323 = vmatprep.subr.bf16.mxu1 %v6000_v59  ;;  %v2363_v43 = vadd.f32 %v6756_v31, %v2350_v54  ;;  %v6028_v15 = vld [vmem:[#allocation2 + $0x568] sm:$0xff]  }
 0x39a   : > { %v2325_v9 = vpop.f32.mrb[96].mxu0  ;;  %2754 = vmatprep.mubr.bf16.mxu1 %v2378_v26 }
 0x39b   : > { %v2364_v6 = vadd.f32 %v6756_v31, %v2351_v28  ;;  %v2326_v44 = vadd.f32 %v2325_v9, %v6743_v4  ;;  %v5631_v24 = vpop.f32.mrb[97].mxu0  ;;  %2755 = vmatmul.mubr.bf16.gmra.mrb[84].mxu1 %v6766_v42  ;;  %v6006_v4 = vld [vmem:[#allocation2 + $0x4a8] sm:$0xff]  }
 0x39c   : > { %5324 = vmatpush3.bf16.msra.mxu1 %v6001_v12  ;;  %v2328_v36 = vpop.f32.mrb[98].mxu0  ;;  %2762 = vmatprep.mubr.bf16.mxu1 %v2377_v41 }
 0x39d   : > { %v2339_v8 = vmax.f32 %v2326_v44, 0.0  ;;  %v5632_v47 = vpop.f32.mrb[99].mxu0  ;;  %5325 = vmatprep.subr.bf16.mxu1 %v6002_v23  ;;  %v2369_v52 = vpack.c.bf16 %v2364_v6, %v2363_v43 }
 0x39f   : > { %v2352_v49 = vmul.f32 %v6749_v11, %v2339_v8  ;;  %5654 = vmatmul.mubr.bf16.gmra.mrb[104].mxu0 %v2369_v52  ;;  %v2383_v58 = vrot.slane %v2369_v52, 4  ;;  %v6008_v11 = vld [vmem:[#allocation2 + $0x4b0] sm:$0xff]  }
 0x3a0   : > { %5326 = vmatpush3.bf16.msra.mxu1 %v6003_v45  ;;  %5657 = vmatprep.mubr.msk.bf16.mxu0 %vm6238_vm7, %v6237_v50 }
 0x3a1   : > { %5327 = vmatprep.subr.bf16.mxu1 %v6004_v48  ;;  %v2365_v62 = vadd.f32 %v6756_v31, %v2352_v49  ;;  %v2384_v51 = vsel %vm1105_vm5, %v2377_v41, %v2383_v58  ;;  %v6012_v31 = vld [vmem:[#allocation2 + $0x580] sm:$0xff]  }
 0x3a2   : > { %5662 = vmatpush3.bf16.msra.mxu0 %v6012_v31 }
 0x3a3   : > { %2763 = vmatmul.mubr.bf16.gmra.mrb[88].mxu1 %v2368_v32  ;;  %v2370_v0 = vpack.c.bf16 %v2365_v62, %v2365_v62  ;;  %5663 = vmatprep.subr.bf16.mxu0 %v6237_v50 }
 0x3a4   : > { %5328 = vmatpush3.bf16.msra.mxu1 %v6005_v20  ;;  %2802 = vmatprep.mubr.bf16.mxu1 %v2378_v26  ;;  %v4772_v20 = vld [vmem:[%s7019_s2 + $0x9] ss:$0 sm:$0xff] }
 0x3a5   : > { %5329 = vmatprep.subr.bf16.mxu1 %v6006_v4 }
 0x3a6   : > { %5664 = vmatpush3.bf16.msra.mxu0 %v6015_v19 }
 0x3a7   : > { %5658 = vmatmul.mubr.bf16.gmra.mrb[108].mxu0 %v2370_v0  ;;  %5665 = vmatprep.subr.bf16.mxu0 %v6237_v50 }
 0x3a8   : > { %5330 = vmatpush3.bf16.msra.mxu1 %v6007_v57  ;;  %5677 = vmatprep.mubr.msk.bf16.mxu0 %vm6238_vm7, %v6237_v50 }
 0x3a9   : > { %5331 = vmatprep.subr.bf16.mxu1 %v6008_v11 }
 0x3aa   : > { %5666 = vmatpush3.bf16.msra.mxu0 %v6018_v55 }
 0x3ab   : > { %5667 = vmatprep.subr.bf16.mxu0 %v6237_v50 }
 0x3ac   : > { %5332 = vmatpush3.bf16.msra.mxu1 %v6009_v53 }
 0x3ad   : > { %5333 = vmatprep.subr.bf16.mxu1 %v6010_v40 }
 0x3b0   : > { %5334 = vmatpush3.bf16.msra.mxu1 %v6011_v46 }
 0x3b1   : > { %5364 = vmatprep.subr.bf16.mxu1 %v6013_v1 }
 0x3b3   : > { %2803 = vmatmul.mubr.bf16.vlgmr.msra.gmra.mrb[92].mxu1 %v6766_v42  ;;  %v6021_v42 = vld [vmem:[#allocation2 + $0x598] sm:$0xff]  }
 0x3b4   : > { %2810 = vmatprep.mubr.bf16.mxu1 %v2384_v51  ;;  %5365 = vmatpush3.bf16.msra.mxu1 %v6014_v2  ;;  %v4813_v2 = vld [vmem:[%s7019_s2 + $0xa] ss:$0 sm:$0xff] }
 0x3b5   : > { %5366 = vmatprep.subr.bf16.mxu1 %v6016_v29  ;;  %5668 = vmatpush3.bf16.msra.mxu0 %v6021_v42 }
 0x3b6   : > { %5669 = vmatprep.subr.bf16.mxu0 %v6237_v50 }
 0x3b8   : > { %5367 = vmatpush3.bf16.msra.mxu1 %v6017_v3 }
 0x3b9   : > { %5368 = vmatprep.subr.bf16.mxu1 %v6019_v34  ;;  %5670 = vmatpush3.bf16.msra.mxu0 %v6024_v13  ;;  %v4814_v13 = vld [vmem:[%s7019_s2 + $0xb] ss:$0 sm:$0xff] }
 0x3ba   : > { %5671 = vmatprep.subr.bf16.mxu0 %v6237_v50 }
 0x3bb   : > { %2811 = vmatmul.mubr.bf16.gmra.mrb[96].mxu1 %v2368_v32 }
 0x3bc   : > { %2818 = vmatprep.mubr.bf16.mxu1 %v2383_v58  ;;  %5369 = vmatpush3.bf16.msra.mxu1 %v6020_v61 }
 0x3bd   : > { %5370 = vmatprep.subr.bf16.mxu1 %v6022_v7  ;;  %5672 = vmatpush3.bf16.msra.mxu0 %v6027_v14 }
 0x3be   : > { %5673 = vmatprep.subr.bf16.mxu0 %v6237_v50 }
 0x3c0   : > { %5371 = vmatpush3.bf16.msra.mxu1 %v6023_v10 }
 0x3c1   : > { %5372 = vmatprep.subr.bf16.mxu1 %v6025_v63  ;;  %5674 = vmatpush3.bf16.msra.mxu0 %v6030_v17 }
 0x3c2   : > { %5675 = vmatprep.subr.bf16.mxu0 %v6237_v50 }
 0x3c3   : > { %2819 = vmatmul.mubr.bf16.gmra.mrb[100].mxu1 %v2369_v52 }
 0x3c4   : > { %5373 = vmatpush3.bf16.msra.mxu1 %v6026_v60 }
 0x3c5   : > { %5374 = vmatprep.subr.bf16.mxu1 %v6028_v15  ;;  %5676 = vmatpush3.bf16.msra.mxu0 %v6033_v5 }
 0x3c6   : > { %5689 = vmatprep.subr.bf16.mxu0 %v6237_v50 }
 0x3c8   : > { %5375 = vmatpush3.bf16.msra.mxu1 %v6029_v16 }
 0x3c9   : > { %5376 = vmatprep.subr.bf16.mxu1 %v6031_v18 }
 0x3cc   : > { %5377 = vmatpush3.bf16.msra.mxu1 %v6032_v35 }
 0x3cd   : > { %5378 = vmatprep.subr.bf16.mxu1 %v6034_v21 }
 0x3d0   : > { %5379 = vmatpush3.bf16.msra.mxu1 %v6035_v25 }
 0x466   : > { %v5301_v38 = vpop.f32.mrb[80].mxu1 }
 0x467   : > { %v5302_v27 = vpop.f32.mrb[81].mxu1 }
 0x468   : > { %v5303_v22 = vadd.f32 %v5302_v27, %v5301_v38  ;;  %v5304_v30 = vpop.f32.mrb[82].mxu1 }
 0x469   : > { %v5305_v32 = vpop.f32.mrb[83].mxu1 }
 0x46a   : > { %v5306_v33 = vadd.f32 %v5305_v32, %v5304_v30  ;;  %v2860_v37 = vpop.f32.mrb[100].mxu0  ;;  %v2749_v51 = vadd.f32 %v5303_v22, %v4772_v20 }
 0x46b   : > { %v5651_v56 = vpop.f32.mrb[101].mxu0 }
 0x46c   : > { %v2863_v59 = vpop.f32.mrb[102].mxu0  ;;  %v2752_v53 = vadd.f32 %v5306_v33, %v4772_v20 }
 0x46d   : > { %v5652_v54 = vpop.f32.mrb[103].mxu0 }
 0x46e   : > { %v5307_v39 = vpop.f32.mrb[84].mxu1 }
 0x46f   : > { %v5308_v41 = vpop.f32.mrb[85].mxu1 }
 0x470   : > { %v5309_v12 = vadd.f32 %v5308_v41, %v5307_v39  ;;  %v5310_v28 = vpop.f32.mrb[86].mxu1 }
 0x471   : > { %v5311_v26 = vpop.f32.mrb[87].mxu1 }
 0x472   : > { %v5312_v23 = vadd.f32 %v5311_v26, %v5310_v28  ;;  %v2868_v9 = vpop.f32.mrb[104].mxu0  ;;  %v2757_v34 = vadd.f32 %v5309_v12, %v4772_v20 }
 0x473   : > { %v5655_v43 = vpop.f32.mrb[105].mxu0 }
 0x474   : > { %v2871_v6 = vpop.f32.mrb[106].mxu0  ;;  %v2760_v60 = vadd.f32 %v5312_v23, %v4772_v20 }
 0x475   : > { %v5656_v44 = vpop.f32.mrb[107].mxu0 }
 0x476   : > { %v5313_v24 = vpop.f32.mrb[88].mxu1 }
 0x477   : > { %v5314_v36 = vpop.f32.mrb[89].mxu1 }
 0x478   : > { %v5315_v45 = vadd.f32 %v5314_v36, %v5313_v24  ;;  %v5316_v8 = vpop.f32.mrb[90].mxu1 }
 0x479   : > { %v5317_v47 = vpop.f32.mrb[91].mxu1 }
 0x47a   : > { %v2876_v52 = vpop.f32.mrb[108].mxu0  ;;  %v2765_v30 = vadd.f32 %v5315_v45, %v4772_v20 }
 0x47b   : > { %v5659_v48 = vpop.f32.mrb[109].mxu0 }
 0x47c   : > { %v2879_v49 = vpop.f32.mrb[110].mxu0 }
 0x47d   : > { %v5660_v58 = vpop.f32.mrb[111].mxu0 }
 0x486   : > { %v5335_v4 = vpop.f32.mrb[92].mxu1 }
 0x487   : > { %v5336_v62 = vpop.f32.mrb[93].mxu1 }
 0x488   : > { %v5337_v57 = vadd.f32 %v5336_v62, %v5335_v4  ;;  %v5338_v0 = vpop.f32.mrb[94].mxu1 }
 0x489   : > { %v5339_v11 = vpop.f32.mrb[95].mxu1 }
 0x48a   : > { %v2805_v40 = vadd.f32 %v5337_v57, %v2749_v51  ;;  %v5340_v46 = vadd.f32 %v5339_v11, %v5338_v0 }
 0x48c   : > { %v2861_v31 = vadd.f32 %v2860_v37, %v2805_v40  ;;  %v2808_v1 = vadd.f32 %v5340_v46, %v2752_v53  ;;  %v6036_v46 = vld [vmem:[#allocation2 + $0x600] sm:$0xff]  }
 0x48d   : > { %5409 = vmatprep.subr.bf16.mxu1 %v6036_v46 }
 0x48e   : > { %v2882_v19 = vmax.f32 %v2861_v31, 0.0  ;;  %v2864_v29 = vadd.f32 %v2863_v59, %v2808_v1  ;;  %v5341_v3 = vpop.f32.mrb[96].mxu1  ;;  %v6037_v31 = vld [vmem:[#allocation2 + $0x640] sm:$0xff]  }
 0x48f   : > { %v5342_v55 = vpop.f32.mrb[97].mxu1  ;;  %v6038_v1 = vld [vmem:[#allocation2 + $0x5c0] sm:$0xff]  }
 0x490   : > { %v2891_v61 = vmul.f32 %v4813_v2, %v2882_v19  ;;  %v2883_v42 = vmax.f32 %v2864_v29, 0.0  ;;  %v5343_v7 = vadd.f32 %v5342_v55, %v5341_v3  ;;  %v5344_v10 = vpop.f32.mrb[98].mxu1  ;;  %v6040_v19 = vld [vmem:[#allocation2 + $0x648] sm:$0xff]   ;;  %v6042_v3 = vld [vmem:[#allocation2 + $0x610] sm:$0xff]  }
 0x491   : > { %v5345_v63 = vpop.f32.mrb[99].mxu1  ;;  %v6041_v29 = vld [vmem:[#allocation2 + $0x5c8] sm:$0xff]   ;;  %v6043_v55 = vld [vmem:[#allocation2 + $0x650] sm:$0xff]  }
 0x492   : > { %v2892_v14 = vmul.f32 %v4813_v2, %v2883_v42  ;;  %v2813_v15 = vadd.f32 %v5343_v7, %v2757_v34  ;;  %v5346_v16 = vadd.f32 %v5345_v63, %v5344_v10  ;;  %v2900_v17 = vadd.f32 %v4814_v13, %v2891_v61  ;;  %v6044_v34 = vld [vmem:[#allocation2 + $0x5d0] sm:$0xff]   ;;  %v6045_v61 = vld [vmem:[#allocation2 + $0x618] sm:$0xff]   ;;  %v6048_v10 = vld [vmem:[#allocation2 + $0x620] sm:$0xff]  }
 0x493   : > { %v6046_v42 = vld [vmem:[#allocation2 + $0x658] sm:$0xff]   ;;  %v6050_v63 = vld [vmem:[#allocation2 + $0x5e0] sm:$0xff]  }
 0x494   : > { %v2901_v18 = vadd.f32 %v4814_v13, %v2892_v14  ;;  %v2869_v35 = vadd.f32 %v2868_v9, %v2813_v15  ;;  %v2816_v5 = vadd.f32 %v5346_v16, %v2760_v60  ;;  %v6047_v7 = vld [vmem:[#allocation2 + $0x5d8] sm:$0xff]   ;;  %v6051_v60 = vld [vmem:[#allocation2 + $0x628] sm:$0xff]   ;;  %v6054_v16 = vld [vmem:[#allocation2 + $0x630] sm:$0xff]  }
 0x495   : > { %v6052_v14 = vld [vmem:[#allocation2 + $0x668] sm:$0xff]  }
 0x496   : > { %v2905_v21 = vpack.c.bf16 %v2901_v18, %v2900_v17  ;;  %v2884_v25 = vmax.f32 %v2869_v35, 0.0  ;;  %v2872_v38 = vadd.f32 %v2871_v6, %v2816_v5  ;;  %v5347_v27 = vpop.f32.mrb[100].mxu1  ;;  %v6053_v15 = vld [vmem:[#allocation2 + $0x5e8] sm:$0xff]   ;;  %v6055_v17 = vld [vmem:[#allocation2 + $0x670] sm:$0xff]   ;;  %v6057_v35 = vld [vmem:[#allocation2 + $0x638] sm:$0xff]  }
 0x497   : > { %v5348_v22 = vpop.f32.mrb[101].mxu1  ;;  %v6056_v18 = vld [vmem:[#allocation2 + $0x5f0] sm:$0xff]   ;;  %v6058_v5 = vld [vmem:[#allocation2 + $0x678] sm:$0xff]  }
 0x498   : > { %v2893_v32 = vmul.f32 %v4813_v2, %v2884_v25  ;;  %v2885_v33 = vmax.f32 %v2872_v38, 0.0  ;;  %v5349_v37 = vadd.f32 %v5348_v22, %v5347_v27  ;;  %v5350_v56 = vpop.f32.mrb[102].mxu1  ;;  %v2911_v41 = vshll.u32 %v2905_v21, 16  ;;  %v6060_v25 = vld [vmem:[#allocation2 + $0x6c0] sm:$0xff]  }
 0x499   : > { %v5351_v59 = vpop.f32.mrb[103].mxu1  ;;  %v2937_v44 = vrot.slane %v2905_v21, 1  ;;  %v2909_v36 = vshrl.u32 %v2905_v21, 16 }
 0x49a   : > { %v2894_v54 = vmul.f32 %v4813_v2, %v2885_v33  ;;  %v2821_v39 = vadd.f32 %v5349_v37, %v2765_v30  ;;  %v2902_v12 = vadd.f32 %v4814_v13, %v2893_v32  ;;  %v2913_v43 = vrot.slane %v2911_v41, 1  ;;  %v4815_v33 = vld [vmem:[%s7019_s2 + $0xc] ss:$0 sm:$0xff] }
 0x49c   : > { %v2903_v28 = vadd.f32 %v4814_v13, %v2894_v54  ;;  %v2877_v26 = vadd.f32 %v2876_v52, %v2821_v39  ;;  %v2914_v48 = vor.u32 %v2913_v43, %v2909_v36 }
 0x49e   : > { %v2906_v23 = vpack.c.bf16 %v2903_v28, %v2902_v12  ;;  %v2886_v9 = vmax.f32 %v2877_v26, 0.0 }
 0x4a0   : > { %v2895_v24 = vmul.f32 %v4813_v2, %v2886_v9  ;;  %v2938_v6 = vrot.slane %v2906_v23, 1  ;;  %v2916_v8 = vshll.u32 %v2906_v23, 16  ;;  %v2920_v52 = vshrl.u32 %v2906_v23, 16  ;;  %v6039_v2 = vld [vmem:[#allocation2 + $0x608] sm:$0xff]  }
 0x4a1   : > { %v4840_v9 = vld [vmem:[%s7019_s2 + $0xd] ss:$0 sm:$0xff] }
 0x4a2   : > { %v2904_v45 = vadd.f32 %v4814_v13, %v2895_v24  ;;  %v2939_v47 = vsel %vm351_vm2, %v2937_v44, %v2938_v6  ;;  %v2918_v49 = vrot.slane %v2916_v8, 1  ;;  %v6049_v13 = vld [vmem:[#allocation2 + $0x660] sm:$0xff]  }
 0x4a3   : > { %5678 = vmatmul.mubr.bf16.vlgmr.msra.gmra.mrb[112].mxu0 %v2939_v47 }
 0x4a4   : > { %v2907_v58 = vpack.c.bf16 %v2904_v45, %v2904_v45  ;;  %v2919_v20 = vsel %vm285_vm0, %v2914_v48, %v2918_v49  ;;  %5681 = vmatprep.mubr.msk.bf16.mxu0 %vm6238_vm7, %v6237_v50  ;;  %v2922_v51 = vor.u32 %v2920_v52, %v2918_v49  ;;  %5690 = vmatpush3.bf16.msra.mxu0 %v6037_v31 }
 0x4a5   : > { %3176 = vmatprep.mubr.bf16.mxu1 %v2919_v20  ;;  %5691 = vmatprep.subr.bf16.mxu0 %v6237_v50 }
 0x4a6   : > { %3177 = vmatmul.mubr.bf16.vlgmr.msra.gmra.mrb[104].mxu1 %v2905_v21  ;;  %v2924_v4 = vshll.u32 %v2907_v58, 16  ;;  %v2940_v62 = vrot.slane %v2907_v58, 1  ;;  %v2928_v53 = vshrl.u32 %v2907_v58, 16  ;;  %v6059_v21 = vld [vmem:[#allocation2 + $0x5f8] sm:$0xff]  }
 0x4a7   : > { %5410 = vmatpush3.bf16.msra.mxu1 %v6038_v1 }
 0x4a8   : > { %v2926_v57 = vrot.slane %v2924_v4, 1  ;;  %v2941_v0 = vsel %vm351_vm2, %v2938_v6, %v2940_v62  ;;  %5411 = vmatprep.subr.bf16.mxu1 %v6039_v2  ;;  %5692 = vmatpush3.bf16.msra.mxu0 %v6040_v19 }
 0x4a9   : > { %5693 = vmatprep.subr.bf16.mxu0 %v6237_v50 }
 0x4aa   : > { %v2927_v11 = vsel %vm285_vm0, %v2922_v51, %v2926_v57  ;;  %v2930_v40 = vor.u32 %v2928_v53, %v2926_v57 }
 0x4ab   : > { %3184 = vmatprep.mubr.bf16.mxu1 %v2927_v11  ;;  %5682 = vmatmul.mubr.bf16.gmra.mrb[116].mxu0 %v2941_v0 }
 0x4ac   : > { %5685 = vmatprep.mubr.msk.bf16.mxu0 %vm6238_vm7, %v6237_v50  ;;  %5412 = vmatpush3.bf16.msra.mxu1 %v6041_v29 }
 0x4ad   : > { %5413 = vmatprep.subr.bf16.mxu1 %v6042_v3  ;;  %5694 = vmatpush3.bf16.msra.mxu0 %v6043_v55 }
 0x4ae   : > { %3185 = vmatmul.mubr.bf16.gmra.mrb[108].mxu1 %v2906_v23  ;;  %5695 = vmatprep.subr.bf16.mxu0 %v6237_v50 }
 0x4af   : > { %3192 = vmatprep.mubr.bf16.mxu1 %v2930_v40 }
 0x4b0   : > { %5414 = vmatpush3.bf16.msra.mxu1 %v6044_v34 }
 0x4b1   : > { %5415 = vmatprep.subr.bf16.mxu1 %v6045_v61  ;;  %5696 = vmatpush3.bf16.msra.mxu0 %v6046_v42 }
 0x4b2   : > { %5697 = vmatprep.subr.bf16.mxu0 %v6237_v50 }
 0x4b3   : > { %5686 = vmatmul.mubr.bf16.gmra.mrb[120].mxu0 %v2940_v62 }
 0x4b4   : > { %5705 = vmatprep.mubr.msk.bf16.mxu0 %vm6238_vm7, %v6237_v50  ;;  %5416 = vmatpush3.bf16.msra.mxu1 %v6047_v7 }
 0x4b5   : > { %5417 = vmatprep.subr.bf16.mxu1 %v6048_v10  ;;  %5698 = vmatpush3.bf16.msra.mxu0 %v6049_v13 }
 0x4b6   : > { %3193 = vmatmul.mubr.bf16.gmra.mrb[112].mxu1 %v2907_v58  ;;  %5699 = vmatprep.subr.bf16.mxu0 %v6237_v50  ;;  %v4841_v58 = vld [vmem:[%s7019_s2 + $0xe] ss:$0 sm:$0xff] }
 0x4b8   : > { %5418 = vmatpush3.bf16.msra.mxu1 %v6050_v63 }
 0x4b9   : > { %5419 = vmatprep.subr.bf16.mxu1 %v6051_v60  ;;  %5700 = vmatpush3.bf16.msra.mxu0 %v6052_v14 }
 0x4ba   : > { %5701 = vmatprep.subr.bf16.mxu0 %v6237_v50 }
 0x4bc   : > { %5420 = vmatpush3.bf16.msra.mxu1 %v6053_v15 }
 0x4bd   : > { %5421 = vmatprep.subr.bf16.mxu1 %v6054_v16  ;;  %5702 = vmatpush3.bf16.msra.mxu0 %v6055_v17 }
 0x4be   : > { %5703 = vmatprep.subr.bf16.mxu0 %v6237_v50 }
 0x4c0   : > { %5422 = vmatpush3.bf16.msra.mxu1 %v6056_v18 }
 0x4c1   : > { %5423 = vmatprep.subr.bf16.mxu1 %v6057_v35  ;;  %5704 = vmatpush3.bf16.msra.mxu0 %v6058_v5 }
 0x4c4   : > { %5424 = vmatpush3.bf16.msra.mxu1 %v6059_v21 }
 0x4c5   : > { %5454 = vmatprep.subr.bf16.mxu1 %v6060_v25 }
 0x576   : > { %v3234_v38 = vpop.f32.mrb[112].mxu0 }
 0x577   : > { %v5679_v27 = vpop.f32.mrb[113].mxu0 }
 0x578   : > { %v3237_v22 = vpop.f32.mrb[114].mxu0 }
 0x579   : > { %v5380_v30 = vpop.f32.mrb[104].mxu1  ;;  %v5680_v32 = vpop.f32.mrb[115].mxu0 }
 0x57a   : > { %v5381_v37 = vpop.f32.mrb[105].mxu1 }
 0x57b   : > { %v5382_v56 = vadd.f32 %v5381_v37, %v5380_v30  ;;  %v5383_v59 = vpop.f32.mrb[106].mxu1 }
 0x57c   : > { %v5384_v54 = vpop.f32.mrb[107].mxu1 }
 0x57d   : > { %v3179_v39 = vadd.f32 %v5382_v56, %v4815_v33  ;;  %v5385_v41 = vadd.f32 %v5384_v54, %v5383_v59  ;;  %v6061_v56 = vld [vmem:[#allocation2 + $0x680] sm:$0xff]   ;;  %v6062_v59 = vld [vmem:[#allocation2 + $0x6c8] sm:$0xff]  }
 0x57e   : > { %v3242_v12 = vpop.f32.mrb[116].mxu0  ;;  %v6063_v54 = vld [vmem:[#allocation2 + $0x688] sm:$0xff]  }
 0x57f   : > { %v3235_v28 = vadd.f32 %v3234_v38, %v3179_v39  ;;  %v3182_v26 = vadd.f32 %v5385_v41, %v4815_v33  ;;  %v5683_v23 = vpop.f32.mrb[117].mxu0  ;;  %v6064_v39 = vld [vmem:[#allocation2 + $0x700] sm:$0xff]   ;;  %v6065_v41 = vld [vmem:[#allocation2 + $0x6d0] sm:$0xff]  }
 0x580   : > { %v3245_v43 = vpop.f32.mrb[118].mxu0  ;;  %5717 = vmatprep.subr.bf16.mxu0 %v6064_v39  ;;  %v6069_v23 = vld [vmem:[#allocation2 + $0x698] sm:$0xff]  }
 0x581   : > { %v3256_v44 = vmax.f32 %v3235_v28, 0.0  ;;  %v3238_v24 = vadd.f32 %v3237_v22, %v3182_v26  ;;  %v5386_v6 = vpop.f32.mrb[108].mxu1  ;;  %v5684_v36 = vpop.f32.mrb[119].mxu0  ;;  %v6067_v28 = vld [vmem:[#allocation2 + $0x708] sm:$0xff]   ;;  %v6068_v26 = vld [vmem:[#allocation2 + $0x6d8] sm:$0xff]  }
 0x582   : > { %v5387_v8 = vpop.f32.mrb[109].mxu1  ;;  %v6075_v36 = vld [vmem:[#allocation2 + $0x6a8] sm:$0xff]  }
 0x583   : > { %v3265_v45 = vmul.f32 %v4840_v9, %v3256_v44  ;;  %v3257_v47 = vmax.f32 %v3238_v24, 0.0  ;;  %v5388_v48 = vadd.f32 %v5387_v8, %v5386_v6  ;;  %v5389_v49 = vpop.f32.mrb[110].mxu1  ;;  %v6072_v44 = vld [vmem:[#allocation2 + $0x6a0] sm:$0xff]   ;;  %v6073_v24 = vld [vmem:[#allocation2 + $0x718] sm:$0xff]   ;;  %v6074_v6 = vld [vmem:[#allocation2 + $0x6e8] sm:$0xff]  }
 0x584   : > { %v5390_v20 = vpop.f32.mrb[111].mxu1  ;;  %v6076_v8 = vld [vmem:[#allocation2 + $0x720] sm:$0xff]  }
 0x585   : > { %v3266_v52 = vmul.f32 %v4840_v9, %v3257_v47  ;;  %v3187_v4 = vadd.f32 %v5388_v48, %v4815_v33  ;;  %v5391_v62 = vadd.f32 %v5390_v20, %v5389_v49  ;;  %v3274_v57 = vadd.f32 %v4841_v58, %v3265_v45  ;;  %v6077_v45 = vld [vmem:[#allocation2 + $0x6f0] sm:$0xff]   ;;  %v6079_v48 = vld [vmem:[#allocation2 + $0x728] sm:$0xff]   ;;  %v6080_v49 = vld [vmem:[#allocation2 + $0x6f8] sm:$0xff]  }
 0x586   : > { %v3250_v51 = vpop.f32.mrb[120].mxu0  ;;  %v6078_v47 = vld [vmem:[#allocation2 + $0x6b0] sm:$0xff]  }
 0x587   : > { %v3275_v0 = vadd.f32 %v4841_v58, %v3266_v52  ;;  %v3243_v11 = vadd.f32 %v3242_v12, %v3187_v4  ;;  %v3190_v53 = vadd.f32 %v5391_v62, %v4815_v33  ;;  %v5687_v40 = vpop.f32.mrb[121].mxu0  ;;  %v6066_v12 = vld [vmem:[#allocation2 + $0x690] sm:$0xff]   ;;  %v6083_v52 = vld [vmem:[#allocation2 + $0x738] sm:$0xff]   ;;  %v6085_v4 = vld [vmem:[#allocation2 + $0x780] sm:$0xff]  }
 0x588   : > { %v3253_v46 = vpop.f32.mrb[122].mxu0  ;;  %v6082_v20 = vld [vmem:[#allocation2 + $0x730] sm:$0xff]  }
 0x589   : > { %v3258_v31 = vmax.f32 %v3243_v11, 0.0  ;;  %v3246_v1 = vadd.f32 %v3245_v43, %v3190_v53  ;;  %v5392_v2 = vpop.f32.mrb[112].mxu1  ;;  %v5688_v19 = vpop.f32.mrb[123].mxu0  ;;  %v3279_v29 = vpack.c.bf16 %v3275_v0, %v3274_v57  ;;  %v6071_v43 = vld [vmem:[#allocation2 + $0x6e0] sm:$0xff]   ;;  %v4842_v0 = vld [vmem:[%s7019_s2 + $0xf] ss:$0 sm:$0xff] }
 0x58a   : > { %v5393_v3 = vpop.f32.mrb[113].mxu1 }
 0x58b   : > { %v3267_v55 = vmul.f32 %v4840_v9, %v3258_v31  ;;  %v3259_v34 = vmax.f32 %v3246_v1, 0.0  ;;  %v5394_v61 = vadd.f32 %v5393_v3, %v5392_v2  ;;  %v5395_v42 = vpop.f32.mrb[114].mxu1  ;;  %v3285_v17 = vrot.slane %v3279_v29, 1 }
 0x58c   : > { %v5396_v7 = vpop.f32.mrb[115].mxu1  ;;  %v3293_v5 = vrot.slane %v3279_v29, 2 }
 0x58d   : > { %v3268_v10 = vmul.f32 %v4840_v9, %v3259_v34  ;;  %v3195_v13 = vadd.f32 %v5394_v61, %v4815_v33  ;;  %v3276_v63 = vadd.f32 %v4841_v58, %v3267_v55  ;;  %v4867_v55 = vld [vmem:[%s7019_s2 + $0x10] ss:$0 sm:$0xff] }
 0x58f   : > { %v3277_v60 = vadd.f32 %v4841_v58, %v3268_v10  ;;  %v3251_v14 = vadd.f32 %v3250_v51, %v3195_v13 }
 0x591   : > { %v3260_v15 = vmax.f32 %v3251_v14, 0.0  ;;  %v3280_v16 = vpack.c.bf16 %v3277_v60, %v3276_v63 }
 0x593   : > { %v3269_v18 = vmul.f32 %v4840_v9, %v3260_v15  ;;  %v3286_v35 = vrot.slane %v3280_v16, 1  ;;  %v3294_v21 = vrot.slane %v3280_v16, 2  ;;  %v6070_v9 = vld [vmem:[#allocation2 + $0x710] sm:$0xff]  }
 0x595   : > { %v3278_v25 = vadd.f32 %v4841_v58, %v3269_v18  ;;  %v3287_v38 = vsel %vm351_vm2, %v3285_v17, %v3286_v35  ;;  %v3295_v27 = vsel %vm407_vm3, %v3293_v5, %v3294_v21  ;;  %v6081_v58 = vld [vmem:[#allocation2 + $0x6b8] sm:$0xff]   ;;  %v4868_v18 = vld [vmem:[%s7019_s2 + $0x11] ss:$0 sm:$0xff] }
 0x596   : > { %3532 = vmatprep.mubr.bf16.mxu1 %v3287_v38  ;;  %5706 = vmatmul.mubr.bf16.vlgmr.msra.gmra.mrb[124].mxu0 %v3295_v27 }
 0x597   : > { %v3281_v22 = vpack.c.bf16 %v3278_v25, %v3278_v25  ;;  %3533 = vmatmul.mubr.bf16.vlgmr.msra.gmra.mrb[116].mxu1 %v3279_v29  ;;  %5709 = vmatprep.mubr.msk.bf16.mxu0 %vm6238_vm7, %v6237_v50 }
 0x598   : > { %5455 = vmatpush3.bf16.msra.mxu1 %v6061_v56  ;;  %5718 = vmatpush3.bf16.msra.mxu0 %v6064_v39 }
 0x599   : > { %v3288_v30 = vrot.slane %v3281_v22, 1  ;;  %v3296_v32 = vrot.slane %v3281_v22, 2  ;;  %5456 = vmatprep.subr.bf16.mxu1 %v6062_v59  ;;  %5719 = vmatprep.subr.bf16.mxu0 %v6067_v28 }
 0x59b   : > { %v3289_v33 = vsel %vm351_vm2, %v3286_v35, %v3288_v30  ;;  %v3297_v37 = vsel %vm407_vm3, %v3294_v21, %v3296_v32 }
 0x59c   : > { %3540 = vmatprep.mubr.bf16.mxu1 %v3289_v33  ;;  %5457 = vmatpush3.bf16.msra.mxu1 %v6063_v54 }
 0x59d   : > { %5458 = vmatprep.subr.bf16.mxu1 %v6065_v41  ;;  %5720 = vmatpush3.bf16.msra.mxu0 %v6067_v28 }
 0x59e   : > { %5710 = vmatmul.mubr.bf16.gmra.mrb[128].mxu0 %v3297_v37  ;;  %5721 = vmatprep.subr.bf16.mxu0 %v6070_v9 }
 0x59f   : > { %3541 = vmatmul.mubr.bf16.gmra.mrb[120].mxu1 %v3280_v16  ;;  %5713 = vmatprep.mubr.msk.bf16.mxu0 %vm6238_vm7, %v6237_v50 }
 0x5a0   : > { %3548 = vmatprep.mubr.bf16.mxu1 %v3288_v30  ;;  %5459 = vmatpush3.bf16.msra.mxu1 %v6066_v12 }
 0x5a1   : > { %5460 = vmatprep.subr.bf16.mxu1 %v6068_v26  ;;  %5722 = vmatpush3.bf16.msra.mxu0 %v6070_v9 }
 0x5a2   : > { %5723 = vmatprep.subr.bf16.mxu0 %v6073_v24 }
 0x5a4   : > { %5461 = vmatpush3.bf16.msra.mxu1 %v6069_v23 }
 0x5a5   : > { %5462 = vmatprep.subr.bf16.mxu1 %v6071_v43  ;;  %5724 = vmatpush3.bf16.msra.mxu0 %v6073_v24 }
 0x5a6   : > { %5714 = vmatmul.mubr.bf16.gmra.mrb[132].mxu0 %v3296_v32  ;;  %5725 = vmatprep.subr.bf16.mxu0 %v6076_v8 }
 0x5a7   : > { %3549 = vmatmul.mubr.bf16.gmra.mrb[124].mxu1 %v3281_v22 }
 0x5a8   : > { %5463 = vmatpush3.bf16.msra.mxu1 %v6072_v44 }
 0x5a9   : > { %5464 = vmatprep.subr.bf16.mxu1 %v6074_v6  ;;  %5726 = vmatpush3.bf16.msra.mxu0 %v6076_v8 }
 0x5aa   : > { %5727 = vmatprep.subr.bf16.mxu0 %v6079_v48 }
 0x5ac   : > { %5465 = vmatpush3.bf16.msra.mxu1 %v6075_v36 }
 0x5ad   : > { %5466 = vmatprep.subr.bf16.mxu1 %v6077_v45  ;;  %5728 = vmatpush3.bf16.msra.mxu0 %v6079_v48 }
 0x5ae   : > { %5729 = vmatprep.subr.bf16.mxu0 %v6082_v20 }
 0x5b0   : > { %5467 = vmatpush3.bf16.msra.mxu1 %v6078_v47 }
 0x5b1   : > { %5468 = vmatprep.subr.bf16.mxu1 %v6080_v49  ;;  %5730 = vmatpush3.bf16.msra.mxu0 %v6082_v20 }
 0x5b2   : > { %5731 = vmatprep.subr.bf16.mxu0 %v6083_v52 }
 0x5b4   : > { %5469 = vmatpush3.bf16.msra.mxu1 %v6081_v58 }
 0x5b5   : > { %5732 = vmatpush3.bf16.msra.mxu0 %v6083_v52  ;;  %5492 = vmatprep.subr.bf16.mxu1 %v6085_v4  ;;  %v6086_v4 = vld [vmem:[#allocation2 + $0x740] sm:$0xff]  }
 0x5b6   : > { %5737 = vmatprep.subr.bf16.mxu0 %v6237_v50 }
 0x669   : > { %v3590_v62 = vpop.f32.mrb[124].mxu0 }
 0x66a   : > { %v5425_v51 = vpop.f32.mrb[116].mxu1  ;;  %v5707_v57 = vpop.f32.mrb[125].mxu0 }
 0x66b   : > { %v5426_v11 = vpop.f32.mrb[117].mxu1  ;;  %v3593_v53 = vpop.f32.mrb[126].mxu0 }
 0x66c   : > { %v5427_v40 = vadd.f32 %v5426_v11, %v5425_v51  ;;  %v5428_v46 = vpop.f32.mrb[118].mxu1  ;;  %v5708_v31 = vpop.f32.mrb[127].mxu0 }
 0x66d   : > { %v5429_v1 = vpop.f32.mrb[119].mxu1  ;;  %v6088_v31 = vld [vmem:[#allocation2 + $0x788] sm:$0xff]  }
 0x66e   : > { %v3535_v2 = vadd.f32 %v5427_v40, %v4842_v0  ;;  %v5430_v19 = vadd.f32 %v5429_v1, %v5428_v46  ;;  %v6087_v46 = vld [vmem:[#allocation2 + $0x7c8] sm:$0xff]  }
 0x66f   : > { %v6089_v1 = vld [vmem:[#allocation2 + $0x748] sm:$0xff]  }
 0x670   : > { %v3591_v29 = vadd.f32 %v3590_v62, %v3535_v2  ;;  %v3538_v3 = vadd.f32 %v5430_v19, %v4842_v0  ;;  %v6090_v2 = vld [vmem:[#allocation2 + $0x7d0] sm:$0xff]  }
 0x671   : > { %v3598_v34 = vpop.f32.mrb[128].mxu0  ;;  %v6091_v19 = vld [vmem:[#allocation2 + $0x790] sm:$0xff]  }
 0x672   : > { %v3612_v61 = vmax.f32 %v3591_v29, 0.0  ;;  %v3594_v42 = vadd.f32 %v3593_v53, %v3538_v3  ;;  %v5431_v7 = vpop.f32.mrb[120].mxu1  ;;  %v5711_v10 = vpop.f32.mrb[129].mxu0  ;;  %v6084_v53 = vld [vmem:[#allocation2 + $0x7c0] sm:$0xff]   ;;  %v6092_v29 = vld [vmem:[#allocation2 + $0x750] sm:$0xff]   ;;  %v6093_v3 = vld [vmem:[#allocation2 + $0x7d8] sm:$0xff]  }
 0x673   : > { %v5432_v13 = vpop.f32.mrb[121].mxu1  ;;  %v3601_v63 = vpop.f32.mrb[130].mxu0  ;;  %v6099_v10 = vld [vmem:[#allocation2 + $0x7e8] sm:$0xff]  }
 0x674   : > { %v3621_v60 = vmul.f32 %v4867_v55, %v3612_v61  ;;  %v3613_v14 = vmax.f32 %v3594_v42, 0.0  ;;  %v5433_v15 = vadd.f32 %v5432_v13, %v5431_v7  ;;  %v5434_v16 = vpop.f32.mrb[122].mxu1  ;;  %v5712_v17 = vpop.f32.mrb[131].mxu0  ;;  %v6096_v61 = vld [vmem:[#allocation2 + $0x7e0] sm:$0xff]   ;;  %v6100_v13 = vld [vmem:[#allocation2 + $0x7a8] sm:$0xff]  }
 0x675   : > { %v5435_v35 = vpop.f32.mrb[123].mxu1  ;;  %v6097_v42 = vld [vmem:[#allocation2 + $0x7a0] sm:$0xff]   ;;  %v6106_v17 = vld [vmem:[#allocation2 + $0x7b8] sm:$0xff]  }
 0x676   : > { %v3622_v5 = vmul.f32 %v4867_v55, %v3613_v14  ;;  %v3543_v21 = vadd.f32 %v5433_v15, %v4842_v0  ;;  %v5436_v25 = vadd.f32 %v5435_v35, %v5434_v16  ;;  %v3630_v38 = vadd.f32 %v4868_v18, %v3621_v60  ;;  %v6098_v7 = vld [vmem:[#allocation2 + $0x760] sm:$0xff]   ;;  %v6102_v60 = vld [vmem:[#allocation2 + $0x7f0] sm:$0xff]   ;;  %v6105_v16 = vld [vmem:[#allocation2 + $0x7f8] sm:$0xff]  }
 0x677   : > { %v6103_v14 = vld [vmem:[#allocation2 + $0x7b0] sm:$0xff]  }
 0x678   : > { %v3631_v27 = vadd.f32 %v4868_v18, %v3622_v5  ;;  %v3599_v22 = vadd.f32 %v3598_v34, %v3543_v21  ;;  %v3546_v30 = vadd.f32 %v5436_v25, %v4842_v0  ;;  %v6095_v34 = vld [vmem:[#allocation2 + $0x758] sm:$0xff]   ;;  %v6104_v15 = vld [vmem:[#allocation2 + $0x770] sm:$0xff]  }
 0x679   : > { %v3606_v32 = vpop.f32.mrb[132].mxu0  ;;  %v4869_v21 = vld [vmem:[%s7019_s2 + $0x12] ss:$0 sm:$0xff] }
 0x67a   : > { %v3614_v33 = vmax.f32 %v3599_v22, 0.0  ;;  %v3602_v37 = vadd.f32 %v3601_v63, %v3546_v30  ;;  %v5437_v56 = vpop.f32.mrb[124].mxu1  ;;  %v5715_v59 = vpop.f32.mrb[133].mxu0  ;;  %v3635_v54 = vpack.c.bf16 %v3631_v27, %v3630_v38  ;;  %v6101_v63 = vld [vmem:[#allocation2 + $0x768] sm:$0xff]  }
 0x67b   : > { %v5438_v39 = vpop.f32.mrb[125].mxu1  ;;  %v3609_v41 = vpop.f32.mrb[134].mxu0 }
 0x67c   : > { %v3623_v12 = vmul.f32 %v4867_v55, %v3614_v33  ;;  %v3615_v28 = vmax.f32 %v3602_v37, 0.0  ;;  %v5439_v26 = vadd.f32 %v5438_v39, %v5437_v56  ;;  %v5440_v23 = vpop.f32.mrb[126].mxu1  ;;  %v5716_v9 = vpop.f32.mrb[135].mxu0  ;;  %v3640_v48 = vrot.slane %v3635_v54, 2 }
 0x67d   : > { %v5441_v43 = vpop.f32.mrb[127].mxu1  ;;  %v3646_v20 = vrot.slane %v3635_v54, 4 }
 0x67e   : > { %v3624_v44 = vmul.f32 %v4867_v55, %v3615_v28  ;;  %v3551_v24 = vadd.f32 %v5439_v26, %v4842_v0  ;;  %v3632_v6 = vadd.f32 %v4868_v18, %v3623_v12 }
 0x680   : > { %v3633_v36 = vadd.f32 %v4868_v18, %v3624_v44  ;;  %v3607_v8 = vadd.f32 %v3606_v32, %v3551_v24 }
 0x682   : > { %v3616_v45 = vmax.f32 %v3607_v8, 0.0  ;;  %v3636_v47 = vpack.c.bf16 %v3633_v36, %v3632_v6  ;;  %v4895_v6 = vld [vmem:[%s7019_s2 + $0x14] ss:$0 sm:$0xff] }
 0x684   : > { %v3625_v49 = vmul.f32 %v4867_v55, %v3616_v45  ;;  %v3641_v58 = vrot.slane %v3636_v47, 2  ;;  %v3647_v52 = vrot.slane %v3636_v47, 4  ;;  %v6094_v55 = vld [vmem:[#allocation2 + $0x798] sm:$0xff]  }
 0x686   : > { %v3634_v62 = vadd.f32 %v4868_v18, %v3625_v49  ;;  %v3642_v51 = vsel %vm407_vm3, %v3640_v48, %v3641_v58  ;;  %v3648_v57 = vsel %vm1105_vm5, %v3646_v20, %v3647_v52  ;;  %v6107_v18 = vld [vmem:[#allocation2 + $0x778] sm:$0xff]  }
 0x687   : > { %3884 = vmatprep.mubr.bf16.mxu1 %v3642_v51  ;;  %5733 = vmatprep.mubr.bf16.mxu0 %v3648_v57 }
 0x688   : > { %v3637_v11 = vpack.c.bf16 %v3634_v62, %v3634_v62  ;;  %3885 = vmatmul.mubr.bf16.vlgmr.msra.gmra.mrb[128].mxu1 %v3635_v54  ;;  %v4894_v54 = vld [vmem:[%s7019_s2 + $0x13] ss:$0 sm:$0xff] }
 0x689   : > { %3892 = vmatprep.mubr.bf16.mxu1 %v3641_v58  ;;  %5493 = vmatpush3.bf16.msra.mxu1 %v6086_v4 }
 0x68a   : > { %v3649_v0 = vrot.slane %v3637_v11, 4  ;;  %5494 = vmatprep.subr.bf16.mxu1 %v6088_v31  ;;  %v6108_v31 = vld [vmem:[%s7020_s3] sm:$0xff]  }
 0x68c   : > { %v3650_v40 = vsel %vm1105_vm5, %v3647_v52, %v3649_v0 }
 0x68d   : > { %5734 = vmatmul.mubr.bf16.vlgmr.msra.gmra.mrb[136].mxu0 %v3650_v40  ;;  %5495 = vmatpush3.bf16.msra.mxu1 %v6089_v1 }
 0x68e   : > { %5738 = vmatpush3.bf16.msra.mxu0 %v6084_v53  ;;  %5753 = vmatprep.mubr.msk.bf16.mxu0 %vm6238_vm7, %v6237_v50 }
 0x68f   : > { %5739 = vmatprep.subr.bf16.mxu0 %v6237_v50  ;;  %5496 = vmatprep.subr.bf16.mxu1 %v6091_v19  ;;  %v6110_v19 = vld [vmem:[%s7020_s3 + $0x10] sm:$0xff]  }
 0x690   : > { %3893 = vmatmul.mubr.bf16.gmra.mrb[132].mxu1 %v3636_v47 }
 0x691   : > { %5497 = vmatpush3.bf16.msra.mxu1 %v6092_v29  ;;  %v6111_v29 = vld [vmem:[%s7020_s3 + $0x18] sm:$0xff]  }
 0x692   : > { %5740 = vmatpush3.bf16.msra.mxu0 %v6087_v46  ;;  %5498 = vmatprep.subr.bf16.mxu1 %v6094_v55  ;;  %v6113_v55 = vld [vmem:[%s7020_s3 + $0x28] sm:$0xff]  }
 0x693   : > { %5741 = vmatprep.subr.bf16.mxu0 %v6237_v50 }
 0x695   : > { %5499 = vmatpush3.bf16.msra.mxu1 %v6095_v34  ;;  %v6114_v34 = vld [vmem:[%s7020_s3 + $0x30] sm:$0xff]  }
 0x696   : > { %5742 = vmatpush3.bf16.msra.mxu0 %v6090_v2  ;;  %5500 = vmatprep.subr.bf16.mxu1 %v6097_v42  ;;  %v6109_v2 = vld [vmem:[%s7020_s3 + $0x8] sm:$0xff]  }
 0x697   : > { %5743 = vmatprep.subr.bf16.mxu0 %v6237_v50 }
 0x699   : > { %5501 = vmatpush3.bf16.msra.mxu1 %v6098_v7 }
 0x69a   : > { %5744 = vmatpush3.bf16.msra.mxu0 %v6093_v3  ;;  %5502 = vmatprep.subr.bf16.mxu1 %v6100_v13  ;;  %v6112_v3 = vld [vmem:[%s7020_s3 + $0x20] sm:$0xff]  }
 0x69b   : > { %5745 = vmatprep.subr.bf16.mxu0 %v6237_v50 }
 0x69d   : > { %5503 = vmatpush3.bf16.msra.mxu1 %v6101_v63 }
 0x69e   : > { %5746 = vmatpush3.bf16.msra.mxu0 %v6096_v61  ;;  %5504 = vmatprep.subr.bf16.mxu1 %v6103_v14  ;;  %v6115_v61 = vld [vmem:[%s7020_s3 + $0x38] sm:$0xff]  }
 0x69f   : > { %5747 = vmatprep.subr.bf16.mxu0 %v6237_v50 }
 0x6a1   : > { %5505 = vmatpush3.bf16.msra.mxu1 %v6104_v15 }
 0x6a2   : > { %5748 = vmatpush3.bf16.msra.mxu0 %v6099_v10  ;;  %5506 = vmatprep.subr.bf16.mxu1 %v6106_v17 }
 0x6a3   : > { %5749 = vmatprep.subr.bf16.mxu0 %v6237_v50 }
 0x6a5   : > { %5507 = vmatpush3.bf16.msra.mxu1 %v6107_v18 }
 0x6a6   : > { %5750 = vmatpush3.bf16.msra.mxu0 %v6102_v60  ;;  %5757 = vmatprep.subr.bf16.mxu1 %v6237_v50  ;;  %v4896_v60 = vld [vmem:[%s7019_s2 + $0x15] ss:$0 sm:$0xff] }
 0x6a7   : > { %5751 = vmatprep.subr.bf16.mxu0 %v6237_v50 }
 0x6aa   : > { %5752 = vmatpush3.bf16.msra.mxu0 %v6105_v16 }
 0x6ab   : > { %5777 = vmatprep.subr.bf16.mxu0 %v6237_v50 }
 0x75b   : > { %v5470_v35 = vpop.f32.mrb[128].mxu1 }
 0x75c   : > { %v5471_v5 = vpop.f32.mrb[129].mxu1 }
 0x75d   : > { %v5472_v25 = vadd.f32 %v5471_v5, %v5470_v35  ;;  %v5473_v38 = vpop.f32.mrb[130].mxu1 }
 0x75e   : > { %v5474_v27 = vpop.f32.mrb[131].mxu1 }
 0x75f   : > { %v5475_v22 = vadd.f32 %v5474_v27, %v5473_v38  ;;  %v3887_v30 = vadd.f32 %v5472_v25, %v4869_v21  ;;  %v4921_v25 = vld [vmem:[%s7019_s2 + $0x16] ss:$0 sm:$0xff] }
 0x760   : > { %v5735_v32 = vpop.f32.mrb[136].mxu0 }
 0x761   : > { %v3935_v33 = vpop.f32.mrb[137].mxu0  ;;  %v3890_v37 = vadd.f32 %v5475_v22, %v4869_v21 }
 0x762   : > { %v3936_v56 = vadd.f32 %v3935_v33, %v3887_v30  ;;  %v5736_v59 = vpop.f32.mrb[138].mxu0 }
 0x763   : > { %v5476_v39 = vpop.f32.mrb[132].mxu1  ;;  %v3938_v41 = vpop.f32.mrb[139].mxu0 }
 0x764   : > { %v3950_v12 = vmax.f32 %v3936_v56, 0.0  ;;  %v3939_v28 = vadd.f32 %v3938_v41, %v3890_v37  ;;  %v5477_v26 = vpop.f32.mrb[133].mxu1 }
 0x765   : > { %v5478_v23 = vadd.f32 %v5477_v26, %v5476_v39  ;;  %v5479_v9 = vpop.f32.mrb[134].mxu1  ;;  %v4923_v39 = vld [vmem:[%s7021_s4] ss:$0 sm:$0xff] }
 0x766   : > { %v3958_v43 = vmul.f32 %v4894_v54, %v3950_v12  ;;  %v3951_v44 = vmax.f32 %v3939_v28, 0.0  ;;  %v5480_v24 = vpop.f32.mrb[135].mxu1 }
 0x767   : > { %v3895_v36 = vadd.f32 %v5478_v23, %v4869_v21  ;;  %v5481_v8 = vadd.f32 %v5480_v24, %v5479_v9 }
 0x768   : > { %v3959_v45 = vmul.f32 %v4894_v54, %v3951_v44  ;;  %v3966_v49 = vadd.f32 %v4895_v6, %v3958_v43  ;;  %v4932_v43 = vld [vmem:[%s7021_s4 + $0x1] ss:$0 sm:$0xff] }
 0x769   : > { %v3944_v47 = vadd.f32 %v5735_v32, %v3895_v36  ;;  %v3898_v48 = vadd.f32 %v5481_v8, %v4869_v21  ;;  %v4922_v32 = vld [vmem:[%s7019_s2 + $0x17] ss:$0 sm:$0xff]  ;;  %v6116_v8 = vld [vmem:[%s7022_s5] sm:$0xff]  }
 0x76a   : > { %v3967_v58 = vadd.f32 %v4895_v6, %v3959_v45  ;;  %v6117_v45 = vld [vmem:[%s7022_s5 + $0x8] sm:$0xff]  }
 0x76b   : > { %v3952_v20 = vmax.f32 %v3944_v47, 0.0  ;;  %v3947_v52 = vadd.f32 %v5736_v59, %v3898_v48  ;;  %v6118_v47 = vld [vmem:[%s7022_s5 + $0x10] sm:$0xff]   ;;  %v6119_v48 = vld [vmem:[%s7022_s5 + $0x18] sm:$0xff]  }
 0x76c   : > { %v3970_v4 = vpack.c.bf16 %v3967_v58, %v3966_v49  ;;  %v6120_v49 = vld [vmem:[%s7022_s5 + $0x20] sm:$0xff]   ;;  %v6121_v58 = vld [vmem:[%s7022_s5 + $0x28] sm:$0xff]  }
 0x76d   : > { %v3960_v62 = vmul.f32 %v4894_v54, %v3952_v20  ;;  %v3953_v51 = vmax.f32 %v3947_v52, 0.0  ;;  %v6122_v20 = vld [vmem:[%s7022_s5 + $0x30] sm:$0xff]   ;;  %v6123_v52 = vld [vmem:[%s7022_s5 + $0x38] sm:$0xff]  }
 0x76e   : > { %v3974_v40 = vrot.slane %v3970_v4, 4 }
 0x76f   : > { %v3961_v57 = vmul.f32 %v4894_v54, %v3953_v51  ;;  %v3968_v11 = vadd.f32 %v4895_v6, %v3960_v62 }
 0x771   : > { %v3969_v0 = vadd.f32 %v4895_v6, %v3961_v57 }
 0x773   : > { %v3971_v53 = vpack.c.bf16 %v3969_v0, %v3968_v11 }
 0x775   : > { %5754 = vmatmul.mubr.bf16.vlgmr.msra.gmra.mrb[140].mxu0 %v3971_v53  ;;  %v3975_v46 = vrot.slane %v3971_v53, 4 }
 0x776   : > { %5793 = vmatprep.mubr.msk.bf16.mxu0 %vm6238_vm7, %v6237_v50  ;;  %5778 = vmatpush3.bf16.msra.mxu0 %v6116_v8 }
 0x777   : > { %v3976_v1 = vsel %vm1105_vm5, %v3974_v40, %v3975_v46  ;;  %5779 = vmatprep.subr.bf16.mxu0 %v6237_v50 }
 0x778   : > { %4209 = vmatprep.mubr.bf16.mxu1 %v3976_v1 }
 0x779   : > { %4210 = vmatmul.mubr.bf16.vlgmr.msra.gmra.mrb[136].mxu1 %v3970_v4 }
 0x77a   : > { %5758 = vmatpush3.bf16.msra.mxu1 %v6108_v31  ;;  %5773 = vmatprep.mubr.msk.bf16.mxu1 %vm6238_vm7, %v6237_v50 }
 0x77b   : > { %5759 = vmatprep.subr.bf16.mxu1 %v6237_v50  ;;  %5780 = vmatpush3.bf16.msra.mxu0 %v6117_v45 }
 0x77c   : > { %5781 = vmatprep.subr.bf16.mxu0 %v6237_v50 }
 0x77e   : > { %5760 = vmatpush3.bf16.msra.mxu1 %v6109_v2 }
 0x77f   : > { %5761 = vmatprep.subr.bf16.mxu1 %v6237_v50  ;;  %5782 = vmatpush3.bf16.msra.mxu0 %v6118_v47 }
 0x780   : > { %5783 = vmatprep.subr.bf16.mxu0 %v6237_v50 }
 0x782   : > { %5762 = vmatpush3.bf16.msra.mxu1 %v6110_v19 }
 0x783   : > { %5763 = vmatprep.subr.bf16.mxu1 %v6237_v50  ;;  %5784 = vmatpush3.bf16.msra.mxu0 %v6119_v48 }
 0x784   : > { %5785 = vmatprep.subr.bf16.mxu0 %v6237_v50 }
 0x786   : > { %5764 = vmatpush3.bf16.msra.mxu1 %v6111_v29 }
 0x787   : > { %5765 = vmatprep.subr.bf16.mxu1 %v6237_v50  ;;  %5786 = vmatpush3.bf16.msra.mxu0 %v6120_v49 }
 0x788   : > { %5787 = vmatprep.subr.bf16.mxu0 %v6237_v50 }
 0x78a   : > { %5766 = vmatpush3.bf16.msra.mxu1 %v6112_v3 }
 0x78b   : > { %5767 = vmatprep.subr.bf16.mxu1 %v6237_v50  ;;  %5788 = vmatpush3.bf16.msra.mxu0 %v6121_v58 }
 0x78c   : > { %5789 = vmatprep.subr.bf16.mxu0 %v6237_v50 }
 0x78e   : > { %5768 = vmatpush3.bf16.msra.mxu1 %v6113_v55 }
 0x78f   : > { %5769 = vmatprep.subr.bf16.mxu1 %v6237_v50  ;;  %5790 = vmatpush3.bf16.msra.mxu0 %v6122_v20 }
 0x790   : > { %5791 = vmatprep.subr.bf16.mxu0 %v6237_v50 }
 0x792   : > { %5770 = vmatpush3.bf16.msra.mxu1 %v6114_v34 }
 0x793   : > { %5771 = vmatprep.subr.bf16.mxu1 %v6237_v50  ;;  %5792 = vmatpush3.bf16.msra.mxu0 %v6123_v52 }
 0x796   : > { %5772 = vmatpush3.bf16.msra.mxu1 %v6115_v61 }
 0x848   : > { %v4252_v42 = vpop.f32.mrb[140].mxu0 }
 0x849   : > { %v5755_v7 = vpop.f32.mrb[141].mxu0 }
 0x84a   : > { %v4255_v10 = vpop.f32.mrb[142].mxu0 }
 0x84b   : > { %v5756_v13 = vpop.f32.mrb[143].mxu0 }
 0x84c   : > { %v5508_v63 = vpop.f32.mrb[136].mxu1 }
 0x84d   : > { %v5509_v14 = vpop.f32.mrb[137].mxu1 }
 0x84e   : > { %v5510_v15 = vadd.f32 %v5509_v14, %v5508_v63  ;;  %v5511_v16 = vpop.f32.mrb[138].mxu1 }
 0x84f   : > { %v5512_v17 = vpop.f32.mrb[139].mxu1 }
 0x850   : > { %v4212_v18 = vadd.f32 %v5510_v15, %v4896_v60  ;;  %v5513_v35 = vadd.f32 %v5512_v17, %v5511_v16 }
 0x852   : > { %v4253_v5 = vadd.f32 %v4252_v42, %v4212_v18  ;;  %v4215_v21 = vadd.f32 %v5513_v35, %v4896_v60 }
 0x854   : > { %v4259_v38 = vmax.f32 %v4253_v5, 0.0  ;;  %v4256_v27 = vadd.f32 %v4255_v10, %v4215_v21 }
 0x856   : > { %v4265_v22 = vmul.f32 %v4921_v25, %v4259_v38  ;;  %v4260_v30 = vmax.f32 %v4256_v27, 0.0 }
 0x858   : > { %v4266_v33 = vmul.f32 %v4921_v25, %v4260_v30  ;;  %v6921_v37 = vadd.f32 %v4922_v32, %v4265_v22 }
 0x85a   : > { %v6923_v56 = vadd.f32 %v4922_v32, %v4266_v33  ;;  %v4539_v32 = vlaneseq }
 0x85c   : > { %v4273_v59 = vpack.c.bf16 %v6923_v56, %v6921_v37  ;;  %v4540_v33 = vand.u32 127, %v4539_v32 }
 0x85e   : > { %5774 = vmatmul.mubr.bf16.vlgmr.msra.gmra.mrb[140].mxu1 %v4273_v59  ;;  %vm4541_vm8 = vcmp.lt.s32.totalorder %v4540_v33, 4 }
 0x931   : > { %v4377_v54 = vpop.f32.mrb[140].mxu1 }
 0x932   : > { %v5775_v41 = vpop.f32.mrb[141].mxu1  ;;  %v4378_v23 = vadd.f32 %v4923_v39, %v4377_v54 }
 0x933   : > { %v4380_v12 = vpop.f32.mrb[142].mxu1 }
 0x934   : > { %v4381_v28 = vadd.f32 %v4923_v39, %v4380_v12  ;;  %v5776_v26 = vpop.f32.mrb[143].mxu1 }
 0x936   : > { %6124 = vtanh.f32 %v4381_v28 }
 0x937   : > { %6126 = vtanh.f32 %v4378_v23 }
 0x940   : > { %v6125_v9 = vpop.eup %6124 }
 0x941   : > { %v4392_v44 = vmul.f32 %v6125_v9, %v4932_v43  ;;  %v6127_v24 = vpop.eup %6126 }
 0x942   : > { %v4391_v36 = vmul.f32 %v6127_v24, %v4932_v43 }
 0x943   : > { %v4396_v6 = vsel %vm1771_vm6, %v4392_v44, 0.0 }
 0x944   : > { %4397 = vadd.xlane.f32.xlu0 %v4396_v6 }
 0x948   : > { %4393 = vadd.xlane.f32.xlu0 %v4391_v36 }
 0x9d1   : > { %v4398_v4 = vpop.xlane.xlu0 %4397 }
 0x9d2   : > { %v4399_v62 = vsel %vm1771_vm6, %v4398_v4, -inf }
 0x9d5   : > { %v4394_v51 = vpop.xlane.xlu0 %4393 }
 0x9d6   : > { %v4400_v57 = vmax.f32 %v4394_v51, %v4399_v62 }
 0x9d8   : > { %v4401_v11 = vrot.slane %v4400_v57, 4 }
 0x9da   : > { %v4402_v0 = vmax.f32 %v4400_v57, %v4401_v11 }
 0x9dc   : > { %v4403_v53 = vrot.slane %v4402_v0, 2 }
 0x9de   : > { %v4404_v40 = vmax.f32 %v4402_v0, %v4403_v53 }
 0x9e0   : > { %v4405_v46 = vrot.slane %v4404_v40, 1 }
 0x9e2   : > { %v4406_v31 = vmax.f32 %v4404_v40, %v4405_v46 }
 0x9e4   : > { %v4407_v1 = vsub.f32 %v4394_v51, %v4406_v31  ;;  %v4408_v2 = vsub.f32 %v4398_v4, %v4406_v31 }
 0x9e6   : > { %v4409_v19 = vmul.f32 1.442695, %v4407_v1  ;;  %v4411_v29 = vmul.f32 1.442695, %v4408_v2 }
 0x9e8   : > { %6128 = vpow2.f32 %v4409_v19 }
 0x9e9   : > { %6130 = vpow2.f32 %v4411_v29 }
 0x9f2   : > { %v6129_v3 = vpop.eup %6128 }
 0x9f3   : > { %v6131_v50 = vpop.eup %6130 }
 0x9f4   : > { %v4413_v55 = vsel %vm1771_vm6, %v6131_v50, 0.0 }
 0x9f5   : > { %v4414_v34 = vadd.f32 %v6129_v3, %v4413_v55 }
 0x9f7   : > { %v4415_v61 = vrot.slane %v4414_v34, 4 }
 0x9f9   : > { %v4416_v42 = vadd.f32 %v4415_v61, %v4414_v34 }
 0x9fb   : > { %v4417_v7 = vrot.slane %v4416_v42, 2 }
 0x9fd   : > { %v4418_v10 = vadd.f32 %v4417_v7, %v4416_v42 }
 0x9ff   : > { %v4419_v13 = vrot.slane %v4418_v10, 1 }
 0xa01   : > { %v4420_v63 = vadd.f32 %v4419_v13, %v4418_v10 }
 0xa03   : > { %6132 = vrcp.f32 %v4420_v63 }
 0xa0d   : > { %v6133_v60 = vpop.eup %6132 }
 0xa0e   : > { %v4422_v14 = vmul.f32 %v6133_v60, %v6129_v3  ;;  %v4423_v15 = vmul.f32 %v6133_v60, %v6131_v50 }
 0xa10   : > { %v4424_v16 = vmul.f32 %v4422_v14, %v6921_v37  ;;  %v4425_v17 = vmul.f32 %v4423_v15, %v6923_v56 }
 0xa12   : > { %v4426_v18 = vsel %vm1771_vm6, %v4425_v17, 0.0 }
 0xa13   : > { %v4427_v35 = vadd.f32 %v4426_v18, %v4424_v16 }
 0xa15   : > { %v4428_v5 = vrot.slane %v4427_v35, 4 }
 0xa17   : > { %v4429_v21 = vadd.f32 %v4428_v5, %v4427_v35 }
 0xa19   : > { %v4430_v25 = vrot.slane %v4429_v21, 2 }
 0xa1b   : > { %v4431_v38 = vadd.f32 %v4430_v25, %v4429_v21 }
 0xa1d   : > { %v4432_v27 = vrot.slane %v4431_v38, 1 }
 0xa1f   : > { %v4433_v22 = vadd.f32 %v4432_v27, %v4431_v38 }
 0xa21   : > { %v4434_v30 = vpack.c.bf16 %v4433_v22, %v4433_v22 }
 0xa23   : > { %5794 = vmatmul.mubr.bf16.vlgmr.msra.gmra.mrb[144].mxu0 %v4434_v30 }
 0xaf6   : > { %v4533_v59 = vpop.f32.mrb[144].mxu0 }
 0xaf7   : > { %v4542_v37 = vsel %vm4541_vm8, %v4533_v59, -1e+30  ;;  %v5795_v56 = vpop.f32.mrb[145].mxu0 }
 0xaf8   : > { %v4536_v54 = vpop.f32.mrb[146].mxu0  ;;  %v4544_v39 = vsel %vm4543_vm9, %v4542_v37, -inf }
 0xaf9   : > { %4545 = vmax.xlane.f32.xlu1 %v4544_v39  ;;  %v5796_v41 = vpop.f32.mrb[147].mxu0 }
 0xb86   : > { %v4546_v12 = vpop.xlane.xlu1 %4545 }
 0xb87   : > { %v4547_v28 = vsub.f32 %v4542_v37, %v4546_v12 }
 0xb89   : > { %v4548_v26 = vmul.f32 1.442695, %v4547_v28 }
 0xb8b   : > { %6134 = vpow2.f32 %v4548_v26 }
 0xb95   : > { %v6135_v23 = vpop.eup %6134 }
 0xb96   : > { %v4550_v9 = vsel %vm4543_vm9, %v6135_v23, 0.0 }
 0xb97   : > { %4551 = vadd.xlane.f32.xlu1 %v4550_v9 }
 0xc24   : > { %v4552_v43 = vpop.xlane.xlu1 %4551 }
 0xc25   : > { %6136 = vrcp.f32 %v4552_v43 }
 0xc2f   : > { %v6137_v44 = vpop.eup %6136 }
 0xc30   : > { %v4554_v24 = vmul.f32 %v6137_v44, %v6135_v23 }
 0xc32   : > { %4555 = vst [vmem:[%s258_s11] sm:$0x1] %v4554_v24 }
 0xc33   : > { %6179 = shalt.err (!%p6176_p7)
}
 0xc34   : > { %s6180_s20 = scalar_lea.hbm %s6975_s15, 16  ;;  %s6184_s29 = scalar_lea.hbm %s7023_s6, 32 }
 0xc35   : > { %p6181_p8 = scmp.ne.s32.totalorder %s6975_s15, %s6180_s20  ;;  %p6185_p1 = scmp.lt.u32.totalorder %s6975_s15, %s7023_s6 }
 0xc36   : > { %p6186_p0 = scmp.lt.u32.totalorder %s6184_s29, %s6180_s20  ;;  %p6188_p6 = scmp.lt.u32.totalorder %s6180_s20, %s6975_s15 }
 0xc37   : > { %p6182_p11 = pnand %p6181_p8, %p7034_p9 }
 0xc38   : > { %p6187_p5 = por %p6186_p0, %p6185_p1 }
 0xc39   : > { %p6183_p13 = pneg %p6182_p11 }
 0xc3a   : > { %p6189_p10 = por %p6188_p6, %p6187_p5 }
 0xc3c   : > { %p6190_p12 = pnand %p6189_p10, %p6183_p13 }
 0xc3e   : > { %6193 = shalt.err (!%p6190_p12)
}
 0xc3f   : > { %5802 = dma.vmem_to_hbm [thread:$0]  (%p7034_p9), %s6977_s12, 16, %s6975_s15, %s4557_s16  }
 0xc40 PF: > { %p5814_p2 = scmp.ge.s32.totalorder %s6232_s24, 2  ;;  %s4581_s11 = sand.u32 1, %s6220_s21  }
 0xc41   : > { %p7035_p3 = scmp.ne.s32.totalorder %s7028_s8, 0  ;;  %s4582_s13 = scalar_lea.sflag [#allocation4], %s4581_s11 }
 0xc43   : > { %p5809_p4 = pnand %p5814_p2, %p7035_p3 }
 0xc45   : > { %6215 = dma.done.wait (!%p5809_p4), %s4582_s13, 16  }
 0xc46   : > { %6217 = vsyncadd (!%p5809_p4), %s4582_s13, 4294967280  ;;  %p17_p7 = scmp.ge.s32.totalorder %s6300_s27, 4   ;;  %s7036_s21 = smov %s6224_s22 }
 0xc47   : > { %s7037_s22 = smov %s6228_s23  ;;  %s7038_s23 = smov %s6311_s30 }
 0xc48   : > { %s7039_s24 = smov %s6300_s27  ;;  %19 = sbr.rel (!%p17_p7) target bundleno = 4 (0x4), region = 84 }
 0xc4f   :  { %4586 = vsyncpa [#allocation3], 1 }
 0xc50   :  { %4588 = vsyncpa [#allocation3 + $0x1], 1 }
 0xc51   :  { %4589 = vsyncpa [#allocation4], 1 }
 0xc52   :  { %4591 = vsyncpa [#allocation4 + $0x1], 1 }

</bundles_post_ra>
